<compile_context>
chip_gen: v7x
topology: tpu7x:2x2x1
jax: 0.10.0
libtpu: 0.0.40
codegen_flags: <defaults>
</compile_context>

<pallas_src>
import functools
import math

import jax
import jax.numpy as jnp
from jax import lax
from jax.experimental import pallas as pl
from jax.experimental.pallas import tpu as pltpu


# VGG16 configuration 'D' used by the FeatureExtractor.
CFG_D = [64, 64, "M", 128, 128, "M", 256, 256, 256, "M",
         512, 512, 512, "M", 512, 512, 512, "M"]

_BN_EPS = 1e-5
_PAD = 2            # interior offset (rows and cols) of the shared padded layout
_EXTRA_ROWS = 4     # rows added around the image: 2 on top, 2 at the bottom
_TAPS_3X3 = tuple((dy, dx) for dy in range(3) for dx in range(3))


# --------------------------------------------------------------------------
# Layout helpers
# --------------------------------------------------------------------------
def _round_up(x, m):
    return ((x + m - 1) // m) * m


def _padded_width(w):
    # >= w + 3 (2 left pad cols + >=1 right pad col) and a multiple of 8 so the
    # interior flat offset (2*wp) and the interior run stay sublane-aligned.
    return _round_up(w + 3, 8)


def _block_vmem_bytes(shape, itemsize=4):
    """VMEM footprint of a block (last dim -> 128 lanes, 2nd-last -> 8 sublanes)."""
    lead = 1
    for d in shape[:-2]:
        lead *= int(d)
    return lead * _round_up(int(shape[-2]), 8) * _round_up(int(shape[-1]), 128) * itemsize


def _default_cout_tile():
    """256-wide output tiles on v6e/v7x (256x256 MXU), 128 on older chips."""
    try:
        kind = jax.devices()[0].device_kind.lower()
    except Exception:
        return 128
    if any(s in kind for s in ("v2", "v3", "v4", "v5")):
        return 128
    return 256


def to_padded_flat(x_nhwc, h, w):
    """Embed a dense NHWC tensor into the shared padded, flattened layout."""
    n, hh, ww, c = x_nhwc.shape
    assert hh == h and ww == w
    wp = _padded_width(w)
    xp = jnp.pad(x_nhwc, ((0, 0),
                          (_PAD, _EXTRA_ROWS - _PAD),
                          (_PAD, wp - w - _PAD),
                          (0, 0)))
    return xp.reshape(n, (h + _EXTRA_ROWS) * wp, c)


def im2col_first_layer(x_nhwc, k_pad=32):
    """Cin=3 first conv: build K=27 im2col patches (padded to 32) so the kernel
    runs a single lane/MXU-friendly matmul instead of nine K=3 matmuls."""
    n, h, w, c = x_nhwc.shape
    xs = jnp.pad(x_nhwc, ((0, 0), (1, 1), (1, 1), (0, 0)))
    patches = jnp.concatenate(
        [xs[:, dy:dy + h, dx:dx + w, :] for dy, dx in _TAPS_3X3], axis=-1)
    patches = jnp.pad(patches, ((0, 0), (0, 0), (0, 0), (0, k_pad - 9 * c)))
    return to_padded_flat(patches, h, w)


# --------------------------------------------------------------------------
# Fused 3x3 conv + folded BN + ReLU kernel (writes next layer's padded layout)
# --------------------------------------------------------------------------
def _conv_bn_relu_kernel(x_ref, w_ref, shift_ref, o_ref, *, taps, wp, w_img, m):
    # x_ref:     (1, L, Cin)   padded, row-major flattened input
    # w_ref:     (T, Cin, Ct)  per-tap weights (BN scale folded in)
    # shift_ref: (1, Ct)       folded BN shift (incl. conv bias)
    # o_ref:     (1, L, Ct)    output in the SAME padded layout
    s0 = 2 * wp                       # start of the interior run (multiple of 8)
    tc = o_ref.shape[2]
    l_out = o_ref.shape[1]
    tail = l_out - s0 - m             # == 2 * wp

    # Zero the 2 top + 2 bottom padding rows of the next layer's layout.
    o_ref[0, pl.ds(0, s0), :] = jnp.zeros((s0, tc), o_ref.dtype)
    o_ref[0, pl.ds(s0 + m, tail), :] = jnp.zeros((tail, tc), o_ref.dtype)

    # Column-validity mask: interior columns of a padded row are [2, 2 + w_img).
    col = lax.broadcasted_iota(jnp.int32, (m, 1), 0) % wp
    keep = jnp.where(jnp.logical_and(col >= _PAD, col < _PAD + w_img), 1.0, 0.0)

    n_taps = len(taps)
    for t, (dy, dx) in enumerate(taps):
        start = s0 + (dy - 1) * wp + (dx - 1)
        xwin = x_ref[0, pl.ds(start, m), :]                       # (m, Cin)
        prod = jnp.dot(xwin, w_ref[t], preferred_element_type=jnp.float32)
        if t == 0:
            acc = prod
        else:
            acc = o_ref[0, pl.ds(s0, m), :] + prod
        if t == n_taps - 1:
            # Epilogue fused into the last tap: +shift, ReLU, zero pad columns.
            y = jnp.maximum(acc + shift_ref[...], 0.0) * keep
            o_ref[0, pl.ds(s0, m), :] = y.astype(o_ref.dtype)
        else:
            o_ref[0, pl.ds(s0, m), :] = acc


def conv3x3_bn_relu_padded(x_flat, w_taps, shift, taps, h, w, *, cout_tile):
    """x_flat: (N, (h+4)*wp, Cin) padded layout; returns same layout with Cout."""
    n, l_in, cin = x_flat.shape
    n_taps, cin_w, cout = w_taps.shape
    assert cin_w == cin
    wp = _padded_width(w)
    assert l_in == (h + _EXTRA_ROWS) * wp
    m = h * wp

    tc = min(cout, cout_tile)
    while cout % tc:
        tc //= 2
    n_ct = cout // tc

    kernel = functools.partial(_conv_bn_relu_kernel,
                               taps=taps, wp=wp, w_img=w, m=m)

    x_bytes = _block_vmem_bytes((1, l_in, cin))
    w_bytes = _block_vmem_bytes((n_taps, cin, tc))
    o_bytes = _block_vmem_bytes((1, l_in, tc))

    # Keep the LARGER operand resident across the inner grid axis and re-stream
    # the smaller one (activation-resident for early layers, weight-resident for
    # the deep, small-spatial layers).
    act_resident = x_bytes >= w_bytes
    if act_resident:
        grid = (n, n_ct)
        x_map = lambda i, j: (i, 0, 0)
        w_map = lambda i, j: (0, 0, j)
        s_map = lambda i, j: (0, j)
        o_map = lambda i, j: (i, 0, j)
    else:
        grid = (n_ct, n)
        x_map = lambda j, i: (i, 0, 0)
        w_map = lambda j, i: (0, 0, j)
        s_map = lambda j, i: (0, j)
        o_map = lambda j, i: (i, 0, j)

    vmem_limit = int(min(max(2 * (x_bytes + w_bytes + o_bytes) + (4 << 20),
                             32 << 20), 96 << 20))

    return pl.pallas_call(
        kernel,
        out_shape=jax.ShapeDtypeStruct((n, l_in, cout), jnp.float32),
        grid_spec=pltpu.PrefetchScalarGridSpec(
            num_scalar_prefetch=0,
            grid=grid,
            in_specs=[
                pl.BlockSpec((1, l_in, cin), x_map),
                pl.BlockSpec((n_taps, cin, tc), w_map),
                pl.BlockSpec((1, tc), s_map),
            ],
            out_specs=pl.BlockSpec((1, l_in, tc), o_map),
        ),
        compiler_params=pltpu.CompilerParams(
            dimension_semantics=("parallel", "parallel"),
            vmem_limit_bytes=vmem_limit),
    )(x_flat, w_taps, shift)


# --------------------------------------------------------------------------
# 2x2 / stride-2 max-pool kernel (reads the padded conv output directly)
# --------------------------------------------------------------------------
def _maxpool2x2_kernel(x_ref, o_ref, *, ho, wo):
    # x_ref: (R/2, 2, wp/2, 2, Cb) paired view of the padded layout
    # o_ref: (1, ho, wo, Cb)       dense pooled output
    p00 = x_ref[pl.ds(1, ho), 0, pl.ds(1, wo), 0, :]
    p01 = x_ref[pl.ds(1, ho), 0, pl.ds(1, wo), 1, :]
    p10 = x_ref[pl.ds(1, ho), 1, pl.ds(1, wo), 0, :]
    p11 = x_ref[pl.ds(1, ho), 1, pl.ds(1, wo), 1, :]
    o_ref[0] = jnp.maximum(jnp.maximum(p00, p01), jnp.maximum(p10, p11))


def maxpool2x2_from_padded(x_flat, h, w, c, *, block_budget_bytes=8 << 20):
    """x_flat: padded layout (N, (h+4)*wp, C) -> dense (N, h/2, w/2, C)."""
    n, l_in, c_in = x_flat.shape
    assert c_in == c
    assert h % 2 == 0 and w % 2 == 0, "VGG pooling needs even spatial dims"
    wp = _padded_width(w)
    r = h + _EXTRA_ROWS
    assert l_in == r * wp
    ho, wo = h // 2, w // 2
    r2, wp2 = r // 2, wp // 2

    # Free reshape: pair rows and columns so pooling is plain indexing.
    xv = x_flat.reshape(n * r2, 2, wp2, 2, c)

    # Channel tile from a byte budget (accounts for the sublane-2 padding and
    # double buffering) instead of a fixed ladder.
    cb = c
    while cb > 128 and 2 * _block_vmem_bytes((r2, 2, wp2, 2, cb)) > block_budget_bytes:
        cb //= 2
    assert c % cb == 0
    n_cb = c // cb

    in_bytes = _block_vmem_bytes((r2, 2, wp2, 2, cb))
    out_bytes = _block_vmem_bytes((1, ho, wo, cb))
    vmem_limit = int(min(max(2 * (in_bytes + out_bytes) + (4 << 20),
                             32 << 20), 96 << 20))

    return pl.pallas_call(
        functools.partial(_maxpool2x2_kernel, ho=ho, wo=wo),
        out_shape=jax.ShapeDtypeStruct((n, ho, wo, c), jnp.float32),
        grid_spec=pltpu.PrefetchScalarGridSpec(
            num_scalar_prefetch=0,
            grid=(n, n_cb),
            in_specs=[pl.BlockSpec((r2, 2, wp2, 2, cb),
                                   lambda i, j: (i, 0, 0, 0, j))],
            out_specs=pl.BlockSpec((1, ho, wo, cb), lambda i, j: (i, 0, 0, j)),
        ),
        compiler_params=pltpu.CompilerParams(
            dimension_semantics=("parallel", "parallel"),
            vmem_limit_bytes=vmem_limit),
    )(xv)


# --------------------------------------------------------------------------
# FeatureExtractor forward (Pallas) and parameter helpers
# --------------------------------------------------------------------------
def feature_extractor_forward(x_nchw, folded_params, *, cout_tile=None):
    """Returns [pool2, pool3, pool4, pool5] in NCHW, like the PyTorch module."""
    if cout_tile is None:
        cout_tile = _default_cout_tile()
    x = jnp.transpose(x_nchw, (0, 2, 3, 1)).astype(jnp.float32)  # NHWC once
    n, h, w, _ = x.shape

    outs = []
    li = 0
    x_flat = None
    cur_c = None
    for idx, v in enumerate(CFG_D):
        if v == "M":
            pooled = maxpool2x2_from_padded(x_flat, h, w, cur_c)
            outs.append(pooled)
            h, w = h // 2, w // 2
            if idx != len(CFG_D) - 1:
                # Only the quarter-resolution pool output is re-padded by XLA.
                x_flat = to_padded_flat(pooled, h, w)
        else:
            if li == 0:
                x_flat = im2col_first_layer(x)
            w_taps, shift, taps = folded_params[li]
            x_flat = conv3x3_bn_relu_padded(x_flat, w_taps, shift, taps, h, w,
                                            cout_tile=cout_tile)
            cur_c = int(w_taps.shape[2])
            li += 1

    return [jnp.transpose(o, (0, 3, 1, 2)) for o in outs[1:]]


def _init_raw_params(key, cfg):
    """Per conv layer: (w_hwio, bias, gamma, beta, running_mean, running_var)."""
    params = []
    in_ch = 3
    for v in cfg:
        if v == "M":
            continue
        out_ch = int(v)
        key, kw, kg, kb, km, kv = jax.random.split(key, 6)
        # kaiming_normal_(mode='fan_out', nonlinearity='relu'): std=sqrt(2/(9*Cout))
        std = math.sqrt(2.0 / (out_ch * 9))
        w = jax.random.normal(kw, (3, 3, in_ch, out_ch), jnp.float32) * std
        b = jnp.zeros((out_ch,), jnp.float32)
        gamma = 1.0 + 0.1 * jax.random.normal(kg, (out_ch,), jnp.float32)
        beta = 0.1 * jax.random.normal(kb, (out_ch,), jnp.float32)
        mean = 0.1 * jax.random.normal(km, (out_ch,), jnp.float32)
        var = jax.random.uniform(kv, (out_ch,), jnp.float32, minval=0.5, maxval=1.5)
        params.append((w, b, gamma, beta, mean, var))
        in_ch = out_ch
    return params


def _fold_params(raw_params, eps):
    """Fold conv bias + inference BN fully into (w_taps, shift, taps).

    The BN scale is multiplied into the weights so the kernel epilogue is only
    `+ shift` and ReLU.  The first layer is pre-flattened for the im2col path.
    """
    folded = []
    for li, (w, b, gamma, beta, mean, var) in enumerate(raw_params):
        cin, cout = w.shape[2], w.shape[3]
        inv = gamma * lax.rsqrt(var + eps)
        shift = (beta + (b - mean) * inv).reshape(1, cout).astype(jnp.float32)
        w_s = (w * inv[None, None, None, :]).astype(jnp.float32)
        if li == 0:
            wt = w_s.reshape(9 * cin, cout)                  # (27, cout)
            wt = jnp.pad(wt, ((0, 32 - 9 * cin), (0, 0)))    # K: 27 -> 32
            wt = wt.reshape(1, 32, cout)
            taps = ((1, 1),)
        else:
            wt = w_s.reshape(9, cin, cout)
            taps = _TAPS_3X3
        folded.append((wt, shift, taps))
    return folded


def _ref_forward(x_nchw, raw_params, eps):
    """Pure-JAX (XLA) reference: conv + unfused BN(eval) + ReLU + maxpool."""
    x = jnp.transpose(x_nchw, (0, 2, 3, 1)).astype(jnp.float32)
    outs = []
    li = 0
    for v in CFG_D:
        if v == "M":
            x = lax.reduce_window(x, -jnp.inf, lax.max,
                                  (1, 2, 2, 1), (1, 2, 2, 1), "VALID")
            outs.append(x)
        else:
            w, b, gamma, beta, mean, var = raw_params[li]
            y = lax.conv_general_dilated(
                x, w, window_strides=(1, 1), padding="SAME",
                dimension_numbers=("NHWC", "HWIO", "NHWC"),
                precision=lax.Precision.HIGHEST) + b
            y = (y - mean) * (gamma * lax.rsqrt(var + eps)) + beta
            x = jnp.maximum(y, 0.0)
            li += 1
    return [jnp.transpose(o, (0, 3, 1, 2)) for o in outs[1:]]


if __name__ == "__main__":
    key = jax.random.PRNGKey(0)
    k_x, k_p = jax.random.split(key)

    # Small but valid shape: 32x32 input survives all 5 pooling stages.
    N, C, H, W = 2, 3, 32, 32
    x = jax.random.normal(k_x, (N, C, H, W), dtype=jnp.float32)

    raw = _init_raw_params(k_p, CFG_D)
    folded = _fold_params(raw, _BN_EPS)

    outs = feature_extractor_forward(x, folded)
    outs = jax.block_until_ready(outs)

    expected = [(N, 128, 8, 8), (N, 256, 4, 4), (N, 512, 2, 2), (N, 512, 1, 1)]
    assert [tuple(o.shape) for o in outs] == expected, \
        [tuple(o.shape) for o in outs]

    refs = _ref_forward(x, raw, _BN_EPS)
    for got, ref in zip(outs, refs):
        assert jnp.allclose(got, ref, atol=3e-2, rtol=3e-2), \
            float(jnp.max(jnp.abs(got - ref)))

    print("KERNEL_OK")
</pallas_src>

<mosaic_0001>
module attributes {stable_mosaic.version = 11 : i64} {
  func.func @_conv_bn_relu_kernel(%arg0: i32, %arg1: i32, %arg2: memref<1x1440x32xf32, #tpu.memory_space<vmem>>, %arg3: memref<1x32x64xf32, #tpu.memory_space<vmem>>, %arg4: memref<1x64xf32, #tpu.memory_space<vmem>>, %arg5: memref<1x1440x64xf32, #tpu.memory_space<vmem>>) attributes {dimension_semantics = [#tpu.dimension_semantics<parallel>, #tpu.dimension_semantics<parallel>], iteration_bounds = array<i64: 2, 1>, scalar_prefetch = 0 : i64, scratch_operands = 0 : i64, tpu.core_type = #tpu.core_type<tc>, window_params = [{transform_indices = @transform_0, window_bounds = array<i64: 1, 1440, 32>}, {transform_indices = @transform_1, window_bounds = array<i64: 1, 32, 64>}, {transform_indices = @transform_2, window_bounds = array<i64: 1, 64>}, {transform_indices = @transform_3, window_bounds = array<i64: 1, 1440, 64>}]} {
    %cst = arith.constant 0.000000e+00 : f32
    %0 = vector.broadcast %cst : f32 to vector<80x64xf32>
    %c0 = arith.constant 0 : index
    %c0_0 = arith.constant 0 : index
    %c0_1 = arith.constant 0 : index
    %1 = vector.load %arg5[%c0, %c0_0, %c0_1] : memref<1x1440x64xf32, #tpu.memory_space<vmem>>, vector<1x80x64xf32>
    %2 = vector.shape_cast %1 : vector<1x80x64xf32> to vector<80x64xf32>
    %3 = vector.shape_cast %0 : vector<80x64xf32> to vector<1x80x64xf32>
    tpu.vector_store %arg5[%c0, %c0_0, %c0_1], %3 {strides = array<i32>} : memref<1x1440x64xf32, #tpu.memory_space<vmem>>, vector<1x80x64xf32>,
    %cst_2 = arith.constant 0.000000e+00 : f32
    %4 = vector.broadcast %cst_2 : f32 to vector<80x64xf32>
    %c0_3 = arith.constant 0 : index
    %c1360 = arith.constant 1360 : index
    %c0_4 = arith.constant 0 : index
    %5 = vector.load %arg5[%c0_3, %c1360, %c0_4] : memref<1x1440x64xf32, #tpu.memory_space<vmem>>, vector<1x80x64xf32>
    %6 = vector.shape_cast %5 : vector<1x80x64xf32> to vector<80x64xf32>
    %7 = vector.shape_cast %4 : vector<80x64xf32> to vector<1x80x64xf32>
    tpu.vector_store %arg5[%c0_3, %c1360, %c0_4], %7 {strides = array<i32>} : memref<1x1440x64xf32, #tpu.memory_space<vmem>>, vector<1x80x64xf32>,
    %8 = tpu.iota {dimensions = array<i32: 0>} : vector<1280x1xi32>
    %c40_i32 = arith.constant 40 : i32
    %c0_i32 = arith.constant 0 : i32
    %9 = arith.cmpi eq, %c40_i32, %c0_i32 : i32
    %c1_i32 = arith.constant 1 : i32
    %10 = arith.select %9, %c1_i32, %c40_i32 : i32
    %11 = vector.broadcast %10 : i32 to vector<1280x1xi32>
    %12 = arith.remsi %8, %11 : vector<1280x1xi32>
    %c0_i32_5 = arith.constant 0 : i32
    %13 = vector.broadcast %c0_i32_5 : i32 to vector<1280x1xi32>
    %14 = arith.cmpi ne, %12, %13 : vector<1280x1xi32>
    %c0_i32_6 = arith.constant 0 : i32
    %15 = vector.broadcast %c0_i32_6 : i32 to vector<1280x1xi32>
    %16 = arith.cmpi slt, %12, %15 : vector<1280x1xi32>
    %c0_i32_7 = arith.constant 0 : i32
    %17 = arith.cmpi slt, %10, %c0_i32_7 : i32
    %18 = vector.broadcast %17 : i1 to vector<1280x1xi1>
    %19 = vector.broadcast %18 : vector<1280x1xi1> to vector<1280x1xi1>
    %20 = arith.xori %16, %19 : vector<1280x1xi1>
    %21 = arith.andi %20, %14 : vector<1280x1xi1>
    %22 = vector.broadcast %10 : i32 to vector<1280x1xi32>
    %23 = arith.addi %12, %22 : vector<1280x1xi32>
    %24 = arith.select %21, %23, %12 : vector<1280x1xi1>, vector<1280x1xi32>
    %c2_i32 = arith.constant 2 : i32
    %25 = vector.broadcast %c2_i32 : i32 to vector<1280x1xi32>
    %26 = arith.cmpi sge, %24, %25 : vector<1280x1xi32>
    %c34_i32 = arith.constant 34 : i32
    %27 = vector.broadcast %c34_i32 : i32 to vector<1280x1xi32>
    %28 = arith.cmpi slt, %24, %27 : vector<1280x1xi32>
    %29 = arith.andi %26, %28 : vector<1280x1xi1>
    %cst_8 = arith.constant 1.000000e+00 : f32
    %cst_9 = arith.constant 0.000000e+00 : f32
    %30 = vector.broadcast %cst_8 : f32 to vector<1280x1xf32>
    %31 = vector.broadcast %cst_9 : f32 to vector<1280x1xf32>
    %32 = arith.select %29, %30, %31 : vector<1280x1xi1>, vector<1280x1xf32>
    %c0_10 = arith.constant 0 : index
    %c80 = arith.constant 80 : index
    %c0_11 = arith.constant 0 : index
    %33 = vector.load %arg2[%c0_10, %c80, %c0_11] : memref<1x1440x32xf32, #tpu.memory_space<vmem>>, vector<1x1280x32xf32>
    %34 = vector.shape_cast %33 : vector<1x1280x32xf32> to vector<1280x32xf32>
    %c0_12 = arith.constant 0 : index
    %c0_13 = arith.constant 0 : index
    %c0_14 = arith.constant 0 : index
    %35 = vector.load %arg3[%c0_12, %c0_13, %c0_14] : memref<1x32x64xf32, #tpu.memory_space<vmem>>, vector<1x32x64xf32>
    %36 = vector.shape_cast %35 : vector<1x32x64xf32> to vector<32x64xf32>
    %cst_15 = arith.constant dense<0.000000e+00> : vector<1280x64xf32>
    %37 = tpu.matmul %34, %36, %cst_15 {dimension_numbers = #tpu.dot_dimension_numbers<[1], [0], [0], [1], [0, 0, 1, 1], [], []>} : vector<1280x32xf32>, vector<32x64xf32>, vector<1280x64xf32> -> vector<1280x64xf32>
    %c0_16 = arith.constant 0 : index
    %c0_17 = arith.constant 0 : index
    %38 = vector.load %arg4[%c0_16, %c0_17] : memref<1x64xf32, #tpu.memory_space<vmem>>, vector<1x64xf32>
    %39 = vector.broadcast %38 : vector<1x64xf32> to vector<1280x64xf32>
    %40 = arith.addf %37, %39 : vector<1280x64xf32>
    %cst_18 = arith.constant 0.000000e+00 : f32
    %41 = vector.broadcast %cst_18 : f32 to vector<1280x64xf32>
    %42 = arith.maximumf %40, %41 : vector<1280x64xf32>
    %43 = vector.broadcast %32 : vector<1280x1xf32> to vector<1280x64xf32>
    %44 = arith.mulf %42, %43 : vector<1280x64xf32>
    %c0_19 = arith.constant 0 : index
    %c80_20 = arith.constant 80 : index
    %c0_21 = arith.constant 0 : index
    %45 = vector.load %arg5[%c0_19, %c80_20, %c0_21] : memref<1x1440x64xf32, #tpu.memory_space<vmem>>, vector<1x1280x64xf32>
    %46 = vector.shape_cast %45 : vector<1x1280x64xf32> to vector<1280x64xf32>
    %47 = vector.shape_cast %44 : vector<1280x64xf32> to vector<1x1280x64xf32>
    tpu.vector_store %arg5[%c0_19, %c80_20, %c0_21], %47 {strides = array<i32>} : memref<1x1440x64xf32, #tpu.memory_space<vmem>>, vector<1x1280x64xf32>,
    return
  }
  func.func @transform_0(%arg0: i32, %arg1: i32) -> (i32, i32, i32) {
    %c0_i32 = arith.constant 0 : i32
    %c0_i32_0 = arith.constant 0 : i32
    %c0_i32_1 = arith.constant 0 : i32
    return %arg0, %c0_i32, %c0_i32_0 : i32, i32, i32
  }
  func.func @transform_1(%arg0: i32, %arg1: i32) -> (i32, i32, i32) {
    %c0_i32 = arith.constant 0 : i32
    %c0_i32_0 = arith.constant 0 : i32
    %c0_i32_1 = arith.constant 0 : i32
    return %c0_i32, %c0_i32_0, %arg1 : i32, i32, i32
  }
  func.func @transform_2(%arg0: i32, %arg1: i32) -> (i32, i32) {
    %c0_i32 = arith.constant 0 : i32
    %c0_i32_0 = arith.constant 0 : i32
    return %c0_i32, %arg1 : i32, i32
  }
  func.func @transform_3(%arg0: i32, %arg1: i32) -> (i32, i32, i32) {
    %c0_i32 = arith.constant 0 : i32
    %c0_i32_0 = arith.constant 0 : i32
    return %arg0, %c0_i32, %arg1 : i32, i32, i32
  }
}

</mosaic_0001>

<bundles_post_ra>
// kernel: tpu_custom_call.1
= control target key start
LH: loop header
LB: loop body
LE: loop exit
PB: predicated region body
PF: predicated region fallthrough
CT: control target
= control target key end

     0   :  { %s6697_s12 = smov 0   ;;  %s6699_s13 = smov 0   ;;  %s10030_s0 = inlined_call_operand.vmem [shape: f32[2,1440,32], index: 0, kind: input, shape index: {}]   ;;  %s10031_s1 = inlined_call_operand.vmem [shape: f32[1,32,64], index: 1, kind: input, shape index: {}]   ;;  %s10032_s2 = inlined_call_operand.vmem [shape: f32[1,64], index: 2, kind: input, shape index: {}]   ;;  %s10033_s3 = inlined_call_operand.vmem [shape: f32[2,1440,64], index: 3, kind: output, shape index: {}]  }
   0x1   :  { %s6701_s14 = smov 0  }
   0x2 LB: > { %s25_s15 = sadd.s32 1, %s6670_s13  ;;  %p5712_p0 = scmp.ge.s32.totalorder %s6674_s14, 1  ;;  %s6674_s14 = sphi %s6701_s14, %s13_s14   ;;  %s6670_s13 = sphi %s6699_s13, %s10125_s13   ;;  %s6666_s12 = sphi %s6697_s12, %s10124_s12  }
   0x3   : > { %p27_p1 = scmp.ge.s32.totalorder %s25_s15, 2  ;;  %p168_p2 = scmp.lt.s32.totalorder %s6674_s14, 3 }
   0x5   : > { %s10127_s15 = smov (%p27_p1, %s25_s15), 0  ;;  %p169_p3 = pnand %p5712_p0, %p168_p2 }
   0x7   : > { %172 = sbr.rel (%p169_p3) target bundleno = 745 (0x2e9), region = 32 }
   0xe   : > { %v3764_v0 = vld [vmem:[%s10031_s1] sm:$0xff]  ;;  %v3765_v1 = vld [vmem:[%s10031_s1 + $0x8] sm:$0xff]  ;;  %v3766_v2 = vld [vmem:[%s10031_s1 + $0x10] sm:$0xff]  ;;  %p202_p4 = scmp.lt.s32.totalorder %s6666_s12, 1  ;;  %vm3775_vm0 = vcmask 261120   ;;  %vm222_vm1 = vcmask 523264   ;;  %v243_v45 = vlaneseq }
   0xf   : > { %v6290_v3 = vpack.c.bf16 %v3765_v1, %v3764_v0  ;;  %v3767_v4 = vld [vmem:[%s10031_s1 + $0x18] sm:$0xff]  ;;  %v10034_v42 = vmov 0.0  }
  0x10   : > { %v6294_v5 = vpack.c.bf16 %v3767_v4, %v3766_v2  ;;  %s10129_s12 = smov (!%p202_p4, %s6666_s12), 1  ;;  %v6884_v50 = vshrl.u32 %v243_v45, 7 }
  0x11   : > { %6291 = vmatprep.subr.bf16.mxu0 %v6290_v3  ;;  %6298 = vmatprep.subr.bf16.mxu1 %v6290_v3  ;;  %s6302_s24 = smul.u32 1440, %s10129_s12 }
  0x12   : > { %6293 = vmatpush3.bf16.msra.mxu0 %v6290_v3  ;;  %6300 = vmatpush3.bf16.msra.mxu1 %v6290_v3  ;;  %v245_v55 = vadd.s32 8, %v6884_v50  ;;  %v6985_v45 = vadd.s32 664, %v6884_v50 }
  0x13   : > { %6295 = vmatprep.subr.bf16.mxu0 %v6294_v5  ;;  %6299 = vmatprep.subr.bf16.mxu1 %v6294_v5  ;;  %s6735_s27 = scalar_lea.vmem %s10030_s0, %s6302_s24  ;;  %s6806_s30 = scalar_lea.vmem %s10033_s3, %s6302_s24 }
  0x14   : > { %v3604_v6 = vld [vmem:[%s6735_s27 + $0x50] sm:$0xff]  ;;  %v3605_v8 = vld [vmem:[%s6735_s27 + $0x58] sm:$0xff]  ;;  %v3606_v10 = vld [vmem:[%s6735_s27 + $0x60] sm:$0xff]  ;;  %223 = vst.msk [vmem:[%s6806_s30] sm:$0xff] %vm222_vm1, %v10034_v42  ;;  %v6903_v60 = vmul.u32.u64.low 3435973837, %v245_v55  ;;  %v6904_v61 = vmul.u32.u64.high 3435973837, %v245_v55, %v6903_v60 }
  0x15   : > { %v3684_v7 = vld [vmem:[%s6735_s27 + $0x2d0] sm:$0xff]  ;;  %v3685_v9 = vld [vmem:[%s6735_s27 + $0x2d8] sm:$0xff]  ;;  %6050 = vmatprep.mubr.msk.f32.mxu0 %vm3775_vm0, %v3604_v6  ;;  %v3686_v11 = vld [vmem:[%s6735_s27 + $0x2e0] sm:$0xff]  ;;  %224 = vst.msk [vmem:[%s6806_s30 + $0x8] sm:$0xff] %vm222_vm1, %v10034_v42 }
  0x16   : > { %6297 = vmatpush3.bf16.msra.mxu0 %v6294_v5  ;;  %6301 = vmatpush3.bf16.msra.mxu1 %v6294_v5  ;;  %v3607_v12 = vld [vmem:[%s6735_s27 + $0x68] sm:$0xff]  ;;  %v3608_v14 = vld [vmem:[%s6735_s27 + $0x70] sm:$0xff]  ;;  %v3609_v16 = vld [vmem:[%s6735_s27 + $0x78] sm:$0xff]  ;;  %225 = vst.msk [vmem:[%s6806_s30 + $0x10] sm:$0xff] %vm222_vm1, %v10034_v42  ;;  %v421_v6 = vshrl.u32 %v6904_v61, 5 }
  0x17   : > { %6170 = vmatprep.mubr.msk.f32.mxu1 %vm3775_vm0, %v3684_v7  ;;  %v3687_v13 = vld [vmem:[%s6735_s27 + $0x2e8] sm:$0xff]  ;;  %v3688_v15 = vld [vmem:[%s6735_s27 + $0x2f0] sm:$0xff]  ;;  %v3689_v17 = vld [vmem:[%s6735_s27 + $0x2f8] sm:$0xff]  ;;  %226 = vst.msk [vmem:[%s6806_s30 + $0x18] sm:$0xff] %vm222_vm1, %v10034_v42 }
  0x18   : > { %v3610_v18 = vld [vmem:[%s6735_s27 + $0x80] sm:$0xff]  ;;  %v3611_v20 = vld [vmem:[%s6735_s27 + $0x88] sm:$0xff]  ;;  %v3612_v22 = vld [vmem:[%s6735_s27 + $0x90] sm:$0xff]  ;;  %227 = vst.msk [vmem:[%s6806_s30 + $0x20] sm:$0xff] %vm222_vm1, %v10034_v42 }
  0x19   : > { %6051 = vmatmul.mubr.msk.f32.vlgmr.msra.gmra.mrb[0].mxu0 %vm3775_vm0, %v3605_v8  ;;  %6171 = vmatmul.mubr.msk.f32.vlgmr.msra.gmra.mrb[0].mxu1 %vm3775_vm0, %v3685_v9  ;;  %v3690_v19 = vld [vmem:[%s6735_s27 + $0x300] sm:$0xff]  ;;  %v3691_v21 = vld [vmem:[%s6735_s27 + $0x308] sm:$0xff]  ;;  %v3692_v23 = vld [vmem:[%s6735_s27 + $0x310] sm:$0xff]  ;;  %228 = vst.msk [vmem:[%s6806_s30 + $0x28] sm:$0xff] %vm222_vm1, %v10034_v42 }
  0x1a   : > { %6053 = vmatprep.mubr.msk.f32.mxu0 %vm3775_vm0, %v3606_v10  ;;  %6173 = vmatprep.mubr.msk.f32.mxu1 %vm3775_vm0, %v3686_v11  ;;  %v3613_v24 = vld [vmem:[%s6735_s27 + $0x98] sm:$0xff]  ;;  %v3614_v26 = vld [vmem:[%s6735_s27 + $0xa0] sm:$0xff]  ;;  %v3615_v28 = vld [vmem:[%s6735_s27 + $0xa8] sm:$0xff]  ;;  %229 = vst.msk [vmem:[%s6806_s30 + $0x30] sm:$0xff] %vm222_vm1, %v10034_v42  ;;  %v422_v11 = vmul.u32 40, %v421_v6 }
  0x1b   : > { %v3693_v25 = vld [vmem:[%s6735_s27 + $0x318] sm:$0xff]  ;;  %v3694_v27 = vld [vmem:[%s6735_s27 + $0x320] sm:$0xff]  ;;  %v3695_v29 = vld [vmem:[%s6735_s27 + $0x328] sm:$0xff]  ;;  %230 = vst.msk [vmem:[%s6806_s30 + $0x38] sm:$0xff] %vm222_vm1, %v10034_v42 }
  0x1c   : > { %v3616_v30 = vld [vmem:[%s6735_s27 + $0xb0] sm:$0xff]  ;;  %v3617_v32 = vld [vmem:[%s6735_s27 + $0xb8] sm:$0xff]  ;;  %v3618_v34 = vld [vmem:[%s6735_s27 + $0xc0] sm:$0xff]  ;;  %231 = vst.msk [vmem:[%s6806_s30 + $0x40] sm:$0xff] %vm222_vm1, %v10034_v42 }
  0x1d   : > { %6054 = vmatmul.mubr.msk.f32.gmra.mrb[2].mxu0 %vm3775_vm0, %v3607_v12  ;;  %6174 = vmatmul.mubr.msk.f32.gmra.mrb[2].mxu1 %vm3775_vm0, %v3687_v13  ;;  %v3696_v31 = vld [vmem:[%s6735_s27 + $0x330] sm:$0xff]  ;;  %v3697_v33 = vld [vmem:[%s6735_s27 + $0x338] sm:$0xff]  ;;  %v3698_v35 = vld [vmem:[%s6735_s27 + $0x340] sm:$0xff]  ;;  %232 = vst.msk [vmem:[%s6806_s30 + $0x48] sm:$0xff] %vm222_vm1, %v10034_v42 }
  0x1e   : > { %6056 = vmatprep.mubr.msk.f32.mxu0 %vm3775_vm0, %v3608_v14  ;;  %6176 = vmatprep.mubr.msk.f32.mxu1 %vm3775_vm0, %v3688_v15  ;;  %v3619_v36 = vld [vmem:[%s6735_s27 + $0xc8] sm:$0xff]  ;;  %v3620_v38 = vld [vmem:[%s6735_s27 + $0xd0] sm:$0xff]  ;;  %v3621_v40 = vld [vmem:[%s6735_s27 + $0xd8] sm:$0xff]  ;;  %233 = vst.msk [vmem:[%s6806_s30 + $0x550] sm:$0xff] %vm222_vm1, %v10034_v42 }
  0x1f   : > { %v3699_v37 = vld [vmem:[%s6735_s27 + $0x348] sm:$0xff]  ;;  %v3700_v39 = vld [vmem:[%s6735_s27 + $0x350] sm:$0xff]  ;;  %v3701_v41 = vld [vmem:[%s6735_s27 + $0x358] sm:$0xff]  ;;  %234 = vst.msk [vmem:[%s6806_s30 + $0x558] sm:$0xff] %vm222_vm1, %v10034_v42 }
  0x20   : > { %235 = vst.msk [vmem:[%s6806_s30 + $0x560] sm:$0xff] %vm222_vm1, %v10034_v42  ;;  %236 = vst.msk [vmem:[%s6806_s30 + $0x568] sm:$0xff] %vm222_vm1, %v10034_v42  ;;  %v3622_v43 = vld [vmem:[%s6735_s27 + $0xe0] sm:$0xff]  ;;  %v3623_v46 = vld [vmem:[%s6735_s27 + $0xe8] sm:$0xff] }
  0x21   : > { %6057 = vmatmul.mubr.msk.f32.gmra.mrb[4].mxu0 %vm3775_vm0, %v3609_v16  ;;  %6177 = vmatmul.mubr.msk.f32.gmra.mrb[4].mxu1 %vm3775_vm0, %v3689_v17  ;;  %237 = vst.msk [vmem:[%s6806_s30 + $0x570] sm:$0xff] %vm222_vm1, %v10034_v42  ;;  %238 = vst.msk [vmem:[%s6806_s30 + $0x578] sm:$0xff] %vm222_vm1, %v10034_v42  ;;  %v3702_v44 = vld [vmem:[%s6735_s27 + $0x360] sm:$0xff]  ;;  %v3703_v47 = vld [vmem:[%s6735_s27 + $0x368] sm:$0xff]  ;;  %v423_v16 = vsub.s32 %v245_v55, %v422_v11 }
  0x22   : > { %6059 = vmatprep.mubr.msk.f32.mxu0 %vm3775_vm0, %v3610_v18  ;;  %6179 = vmatprep.mubr.msk.f32.mxu1 %vm3775_vm0, %v3690_v19  ;;  %239 = vst.msk [vmem:[%s6806_s30 + $0x580] sm:$0xff] %vm222_vm1, %v10034_v42  ;;  %240 = vst.msk [vmem:[%s6806_s30 + $0x588] sm:$0xff] %vm222_vm1, %v10034_v42  ;;  %v3624_v48 = vld [vmem:[%s6735_s27 + $0xf0] sm:$0xff]  ;;  %v3625_v51 = vld [vmem:[%s6735_s27 + $0xf8] sm:$0xff] }
  0x23   : > { %241 = vst.msk [vmem:[%s6806_s30 + $0x590] sm:$0xff] %vm222_vm1, %v10034_v42  ;;  %242 = vst.msk [vmem:[%s6806_s30 + $0x598] sm:$0xff] %vm222_vm1, %v10034_v42  ;;  %v3704_v49 = vld [vmem:[%s6735_s27 + $0x370] sm:$0xff]  ;;  %v3705_v52 = vld [vmem:[%s6735_s27 + $0x378] sm:$0xff]  ;;  %vm2165_vm2 = vcmp.ne.s32.totalorder %v423_v16, 0  ;;  %vm2325_vm3 = vcmp.lt.s32.totalorder %v423_v16, 0 }
  0x24   : > { %v3626_v53 = vld [vmem:[%s6735_s27 + $0x100] sm:$0xff]  ;;  %v3627_v56 = vld [vmem:[%s6735_s27 + $0x108] sm:$0xff]  ;;  %v3628_v58 = vld [vmem:[%s6735_s27 + $0x110] sm:$0xff] }
  0x25   : > { %6060 = vmatmul.mubr.msk.f32.gmra.mrb[6].mxu0 %vm3775_vm0, %v3611_v20  ;;  %6180 = vmatmul.mubr.msk.f32.gmra.mrb[6].mxu1 %vm3775_vm0, %v3691_v21  ;;  %v3706_v54 = vld [vmem:[%s6735_s27 + $0x380] sm:$0xff]  ;;  %v3707_v57 = vld [vmem:[%s6735_s27 + $0x388] sm:$0xff]  ;;  %v3708_v59 = vld [vmem:[%s6735_s27 + $0x390] sm:$0xff] }
  0x26   : > { %6062 = vmatprep.mubr.msk.f32.mxu0 %vm3775_vm0, %v3612_v22  ;;  %6182 = vmatprep.mubr.msk.f32.mxu1 %vm3775_vm0, %v3692_v23  ;;  %v3629_v62 = vld [vmem:[%s6735_s27 + $0x118] sm:$0xff]  ;;  %v3630_v0 = vld [vmem:[%s6735_s27 + $0x120] sm:$0xff]  ;;  %v3631_v2 = vld [vmem:[%s6735_s27 + $0x128] sm:$0xff]  ;;  %v2645_v23 = vadd.s32 40, %v423_v16 }
  0x27   : > { %v3709_v63 = vld [vmem:[%s6735_s27 + $0x398] sm:$0xff]  ;;  %v3710_v1 = vld [vmem:[%s6735_s27 + $0x3a0] sm:$0xff]  ;;  %v3711_v3 = vld [vmem:[%s6735_s27 + $0x3a8] sm:$0xff] }
  0x28   : > { %v3632_v4 = vld [vmem:[%s6735_s27 + $0x130] sm:$0xff]  ;;  %v3633_v7 = vld [vmem:[%s6735_s27 + $0x138] sm:$0xff]  ;;  %v3634_v9 = vld [vmem:[%s6735_s27 + $0x140] sm:$0xff] }
  0x29   : > { %6063 = vmatmul.mubr.msk.f32.gmra.mrb[8].mxu0 %vm3775_vm0, %v3613_v24  ;;  %6183 = vmatmul.mubr.msk.f32.gmra.mrb[8].mxu1 %vm3775_vm0, %v3693_v25  ;;  %v3712_v5 = vld [vmem:[%s6735_s27 + $0x3b0] sm:$0xff]  ;;  %v3713_v8 = vld [vmem:[%s6735_s27 + $0x3b8] sm:$0xff]  ;;  %v3714_v10 = vld [vmem:[%s6735_s27 + $0x3c0] sm:$0xff] }
  0x2a   : > { %6065 = vmatprep.mubr.msk.f32.mxu0 %vm3775_vm0, %v3614_v26  ;;  %6185 = vmatprep.mubr.msk.f32.mxu1 %vm3775_vm0, %v3694_v27  ;;  %v3635_v12 = vld [vmem:[%s6735_s27 + $0x148] sm:$0xff]  ;;  %v3636_v14 = vld [vmem:[%s6735_s27 + $0x150] sm:$0xff]  ;;  %v3637_v17 = vld [vmem:[%s6735_s27 + $0x158] sm:$0xff] }
  0x2b   : > { %v3715_v13 = vld [vmem:[%s6735_s27 + $0x3c8] sm:$0xff]  ;;  %v3716_v15 = vld [vmem:[%s6735_s27 + $0x3d0] sm:$0xff]  ;;  %v3717_v18 = vld [vmem:[%s6735_s27 + $0x3d8] sm:$0xff] }
  0x2c   : > { %v3638_v19 = vld [vmem:[%s6735_s27 + $0x160] sm:$0xff]  ;;  %v3639_v21 = vld [vmem:[%s6735_s27 + $0x168] sm:$0xff]  ;;  %v3640_v24 = vld [vmem:[%s6735_s27 + $0x170] sm:$0xff] }
  0x2d   : > { %6066 = vmatmul.mubr.msk.f32.gmra.mrb[10].mxu0 %vm3775_vm0, %v3615_v28  ;;  %6186 = vmatmul.mubr.msk.f32.gmra.mrb[10].mxu1 %vm3775_vm0, %v3695_v29  ;;  %v3718_v20 = vld [vmem:[%s6735_s27 + $0x3e0] sm:$0xff]  ;;  %v3719_v22 = vld [vmem:[%s6735_s27 + $0x3e8] sm:$0xff]  ;;  %v3720_v25 = vld [vmem:[%s6735_s27 + $0x3f0] sm:$0xff] }
  0x2e   : > { %6068 = vmatprep.mubr.msk.f32.mxu0 %vm3775_vm0, %v3616_v30  ;;  %6188 = vmatprep.mubr.msk.f32.mxu1 %vm3775_vm0, %v3696_v31  ;;  %vm2485_vm4 = vmand %vm2325_vm3, %vm2165_vm2  ;;  %v3641_v26 = vld [vmem:[%s6735_s27 + $0x178] sm:$0xff]  ;;  %v3642_v29 = vld [vmem:[%s6735_s27 + $0x180] sm:$0xff]  ;;  %v325_v31 = vadd.s32 648, %v6884_v50 }
  0x2f   : > { %v3721_v27 = vld [vmem:[%s6735_s27 + $0x3f8] sm:$0xff]  ;;  %v2805_v28 = vsel %vm2485_vm4, %v2645_v23, %v423_v16  ;;  %v3722_v30 = vld [vmem:[%s6735_s27 + $0x400] sm:$0xff] }
  0x30   : > { %vm2965_vm5 = vcmp.ge.s32.totalorder %v2805_v28, 2  ;;  %vm3125_vm6 = vcmp.lt.s32.totalorder %v2805_v28, 34  ;;  %v3726_v60 = vld [vmem:[%s6735_s27 + $0x420] sm:$0xff]  ;;  %v3729_v23 = vld [vmem:[%s6735_s27 + $0x438] sm:$0xff] }
  0x31   : > { %6069 = vmatmul.mubr.msk.f32.gmra.mrb[12].mxu0 %vm3775_vm0, %v3617_v32  ;;  %6189 = vmatmul.mubr.msk.f32.gmra.mrb[12].mxu1 %vm3775_vm0, %v3697_v33  ;;  %v324_v32 = vadd.s32 640, %v6884_v50  ;;  %vm6994_vm7 = vmand %vm2965_vm5, %vm3125_vm6 }
  0x32   : > { %6071 = vmatprep.mubr.msk.f32.mxu0 %vm3775_vm0, %v3618_v34  ;;  %6191 = vmatprep.mubr.msk.f32.mxu1 %vm3775_vm0, %v3698_v35  ;;  %v6967_v33 = vmul.u32.u64.low 3435973837, %v325_v31  ;;  %v6968_v34 = vmul.u32.u64.high 3435973837, %v325_v31, %v6967_v33  ;;  %v3643_v35 = vld [vmem:[%s6735_s27 + $0x188] sm:$0xff] }
  0x35   : > { %6072 = vmatmul.mubr.msk.f32.gmra.mrb[14].mxu0 %vm3775_vm0, %v3619_v36  ;;  %6192 = vmatmul.mubr.msk.f32.gmra.mrb[14].mxu1 %vm3775_vm0, %v3699_v37  ;;  %v3723_v36 = vld [vmem:[%s6735_s27 + $0x408] sm:$0xff] }
  0x36   : > { %6074 = vmatprep.mubr.msk.f32.mxu0 %vm3775_vm0, %v3620_v38  ;;  %6194 = vmatprep.mubr.msk.f32.mxu1 %vm3775_vm0, %v3700_v39  ;;  %v6975_v37 = vmul.u32.u64.low 3435973837, %v6884_v50  ;;  %v6976_v38 = vmul.u32.u64.high 3435973837, %v6884_v50, %v6975_v37 }
  0x37   : > { %v3731_v37 = vld [vmem:[%s6735_s27 + $0x448] sm:$0xff] }
  0x38   : > { %v410_v55 = vshrl.u32 %v6976_v38, 5 }
  0x39   : > { %6075 = vmatmul.mubr.msk.f32.gmra.mrb[16].mxu0 %vm3775_vm0, %v3621_v40  ;;  %6195 = vmatmul.mubr.msk.f32.gmra.mrb[16].mxu1 %vm3775_vm0, %v3701_v41  ;;  %v6978_v39 = vmul.u32.u64.low 3435973837, %v324_v32  ;;  %v6979_v40 = vmul.u32.u64.high 3435973837, %v324_v32, %v6978_v39  ;;  %v3644_v41 = vld [vmem:[%s6735_s27 + $0x190] sm:$0xff] }
  0x3a   : > { %6077 = vmatprep.mubr.msk.f32.mxu0 %vm3775_vm0, %v3622_v43  ;;  %6197 = vmatprep.mubr.msk.f32.mxu1 %vm3775_vm0, %v3702_v44  ;;  %v3724_v43 = vld [vmem:[%s6735_s27 + $0x410] sm:$0xff]  ;;  %v247_v44 = vadd.s32 24, %v6884_v50 }
  0x3d   : > { %6078 = vmatmul.mubr.msk.f32.gmra.mrb[18].mxu0 %vm3775_vm0, %v3623_v46  ;;  %6198 = vmatmul.mubr.msk.f32.gmra.mrb[18].mxu1 %vm3775_vm0, %v3703_v47  ;;  %v6988_v46 = vadd.s32 16, %v6884_v50 }
  0x3e   : > { %6080 = vmatprep.mubr.msk.f32.mxu0 %vm3775_vm0, %v3624_v48  ;;  %6200 = vmatprep.mubr.msk.f32.mxu1 %vm3775_vm0, %v3704_v49  ;;  %v1301_v48 = vshrl.u32 %v6968_v34, 5 }
  0x40   : > { %v1302_v61 = vmul.u32 40, %v1301_v48 }
  0x41   : > { %6081 = vmatmul.mubr.msk.f32.gmra.mrb[20].mxu0 %vm3775_vm0, %v3625_v51  ;;  %6201 = vmatmul.mubr.msk.f32.gmra.mrb[20].mxu1 %vm3775_vm0, %v3705_v52  ;;  %v6999_v49 = vmul.u32.u64.low 3435973837, %v247_v44  ;;  %v7000_v51 = vmul.u32.u64.high 3435973837, %v247_v44, %v6999_v49  ;;  %v7003_v52 = vadd.s32 656, %v6884_v50 }
  0x42   : > { %6083 = vmatprep.mubr.msk.f32.mxu0 %vm3775_vm0, %v3626_v53  ;;  %6203 = vmatprep.mubr.msk.f32.mxu1 %vm3775_vm0, %v3706_v54  ;;  %v3645_v53 = vld [vmem:[%s6735_s27 + $0x198] sm:$0xff] }
  0x43   : > { %v3725_v54 = vld [vmem:[%s6735_s27 + $0x418] sm:$0xff] }
  0x45   : > { %6084 = vmatmul.mubr.msk.f32.gmra.mrb[22].mxu0 %vm3775_vm0, %v3627_v56  ;;  %6204 = vmatmul.mubr.msk.f32.gmra.mrb[22].mxu1 %vm3775_vm0, %v3707_v57  ;;  %v1290_v56 = vshrl.u32 %v6979_v40, 5 }
  0x46   : > { %6086 = vmatprep.mubr.msk.f32.mxu0 %vm3775_vm0, %v3628_v58  ;;  %6206 = vmatprep.mubr.msk.f32.mxu1 %vm3775_vm0, %v3708_v59  ;;  %v7012_v57 = vmul.u32.u64.low 3435973837, %v6985_v45  ;;  %v7013_v58 = vmul.u32.u64.high 3435973837, %v6985_v45, %v7012_v57  ;;  %v3646_v59 = vld [vmem:[%s6735_s27 + $0x1a0] sm:$0xff] }
  0x47   : > { %v3653_v57 = vld [vmem:[%s6735_s27 + $0x1d8] sm:$0xff] }
  0x49   : > { %6087 = vmatmul.mubr.msk.f32.gmra.mrb[24].mxu0 %vm3775_vm0, %v3629_v62  ;;  %6207 = vmatmul.mubr.msk.f32.gmra.mrb[24].mxu1 %vm3775_vm0, %v3709_v63  ;;  %v7018_v62 = vmul.u32.u64.low 3435973837, %v6988_v46  ;;  %v7019_v63 = vmul.u32.u64.high 3435973837, %v6988_v46, %v7018_v62 }
  0x4a   : > { %6089 = vmatprep.mubr.msk.f32.mxu0 %vm3775_vm0, %v3630_v0  ;;  %6209 = vmatprep.mubr.msk.f32.mxu1 %vm3775_vm0, %v3710_v1  ;;  %v7024_v0 = vsel %vm6994_vm7, 1.0, %v10034_v42  ;;  %v411_v1 = vmul.u32 40, %v410_v55  ;;  %v3734_v62 = vld [vmem:[%s6735_s27 + $0x460] sm:$0xff] }
  0x4b   : > { %v432_v34 = vshrl.u32 %v7019_v63, 5 }
  0x4d   : > { %6090 = vmatmul.mubr.msk.f32.gmra.mrb[26].mxu0 %vm3775_vm0, %v3631_v2  ;;  %6210 = vmatmul.mubr.msk.f32.gmra.mrb[26].mxu1 %vm3775_vm0, %v3711_v3  ;;  %v1291_v2 = vmul.u32 40, %v1290_v56  ;;  %v7027_v3 = vadd.s32 40, %v6884_v50  ;;  %v433_v49 = vmul.u32 40, %v432_v34 }
  0x4e   : > { %6092 = vmatprep.mubr.msk.f32.mxu0 %vm3775_vm0, %v3632_v4  ;;  %6212 = vmatprep.mubr.msk.f32.mxu1 %vm3775_vm0, %v3712_v5  ;;  %v1303_v4 = vsub.s32 %v325_v31, %v1302_v61  ;;  %v443_v5 = vshrl.u32 %v7000_v51, 5  ;;  %v3654_v61 = vld [vmem:[%s6735_s27 + $0x1e0] sm:$0xff] }
  0x4f   : > { %v1292_v11 = vsub.s32 %v324_v32, %v1291_v2  ;;  %v3738_v31 = vld [vmem:[%s6735_s27 + $0x480] sm:$0xff] }
  0x50   : > { %vm2245_vm8 = vcmp.ne.s32.totalorder %v1303_v4, 0  ;;  %vm2405_vm9 = vcmp.lt.s32.totalorder %v1303_v4, 0  ;;  %v2725_v16 = vadd.s32 40, %v1303_v4 }
  0x51   : > { %6093 = vmatmul.mubr.msk.f32.gmra.mrb[28].mxu0 %vm3775_vm0, %v3633_v7  ;;  %6213 = vmatmul.mubr.msk.f32.gmra.mrb[28].mxu1 %vm3775_vm0, %v3713_v8  ;;  %v7033_v6 = vmul.u32.u64.low 3435973837, %v7003_v52  ;;  %v7034_v7 = vmul.u32.u64.high 3435973837, %v7003_v52, %v7033_v6  ;;  %v3647_v8 = vld [vmem:[%s6735_s27 + $0x1a8] sm:$0xff]  ;;  %vm2565_vm10 = vmand %vm2405_vm9, %vm2245_vm8  ;;  %vm2244_vm13 = vcmp.ne.s32.totalorder %v1292_v11, 0  ;;  %vm2404_vm15 = vcmp.lt.s32.totalorder %v1292_v11, 0 }
  0x52   : > { %6095 = vmatprep.mubr.msk.f32.mxu0 %vm3775_vm0, %v3634_v9  ;;  %6215 = vmatprep.mubr.msk.f32.mxu1 %vm3775_vm0, %v3714_v10  ;;  %v3727_v9 = vld [vmem:[%s6735_s27 + $0x428] sm:$0xff]  ;;  %v412_v10 = vsub.s32 %v6884_v50, %v411_v1  ;;  %vm2564_vm4 = vmand %vm2404_vm15, %vm2244_vm13 }
  0x53   : > { %v1312_v39 = vshrl.u32 %v7034_v7, 5  ;;  %v7137_v7 = vadd.s32 56, %v6884_v50 }
  0x54   : > { %vm2164_vm11 = vcmp.ne.s32.totalorder %v412_v10, 0  ;;  %vm2324_vm12 = vcmp.lt.s32.totalorder %v412_v10, 0 }
  0x55   : > { %6096 = vmatmul.mubr.msk.f32.gmra.mrb[30].mxu0 %vm3775_vm0, %v3635_v12  ;;  %6216 = vmatmul.mubr.msk.f32.gmra.mrb[30].mxu1 %vm3775_vm0, %v3715_v13  ;;  %v1323_v12 = vshrl.u32 %v7013_v58, 5  ;;  %v7043_v13 = vadd.s32 680, %v6884_v50  ;;  %vm2484_vm14 = vmand %vm2324_vm12, %vm2164_vm11  ;;  %v1313_v51 = vmul.u32 40, %v1312_v39  ;;  %v3733_v58 = vld [vmem:[%s6735_s27 + $0x458] sm:$0xff] }
  0x56   : > { %6098 = vmatprep.mubr.msk.f32.mxu0 %vm3775_vm0, %v3636_v14  ;;  %6218 = vmatprep.mubr.msk.f32.mxu1 %vm3775_vm0, %v3716_v15  ;;  %v3648_v14 = vld [vmem:[%s6735_s27 + $0x1b0] sm:$0xff] }
  0x57   : > { %v3728_v15 = vld [vmem:[%s6735_s27 + $0x430] sm:$0xff]  ;;  %v7105_v55 = vmul.u32.u64.low 3435973837, %v7043_v13  ;;  %v7106_v56 = vmul.u32.u64.high 3435973837, %v7043_v13, %v7105_v55  ;;  %v1314_v1 = vsub.s32 %v7003_v52, %v1313_v51 }
  0x58   : > { %v3660_v51 = vld [vmem:[%s6735_s27 + $0x210] sm:$0xff] }
  0x59   : > { %6099 = vmatmul.mubr.msk.f32.gmra.mrb[32].mxu0 %vm3775_vm0, %v3637_v17  ;;  %6219 = vmatmul.mubr.msk.f32.gmra.mrb[32].mxu1 %vm3775_vm0, %v3717_v18  ;;  %v444_v17 = vmul.u32 40, %v443_v5  ;;  %v2644_v18 = vadd.s32 40, %v412_v10  ;;  %v2726_v52 = vadd.s32 40, %v1314_v1 }
  0x5a   : > { %6101 = vmatprep.mubr.msk.f32.mxu0 %vm3775_vm0, %v3638_v19  ;;  %6221 = vmatprep.mubr.msk.f32.mxu1 %vm3775_vm0, %v3718_v20  ;;  %v2885_v19 = vsel %vm2565_vm10, %v2725_v16, %v1303_v4  ;;  %v2724_v20 = vadd.s32 40, %v1292_v11  ;;  %v3656_v16 = vld [vmem:[%s6735_s27 + $0x1f0] sm:$0xff] }
  0x5b   : > { %vm3045_vm2 = vcmp.ge.s32.totalorder %v2885_v19, 2  ;;  %vm3205_vm3 = vcmp.lt.s32.totalorder %v2885_v19, 34 }
  0x5c   : > { %vm7056_vm5 = vmand %vm3045_vm2, %vm3205_vm3 }
  0x5d   : > { %6102 = vmatmul.mubr.msk.f32.gmra.mrb[34].mxu0 %vm3775_vm0, %v3639_v21  ;;  %6222 = vmatmul.mubr.msk.f32.gmra.mrb[34].mxu1 %vm3775_vm0, %v3719_v22  ;;  %v445_v21 = vsub.s32 %v247_v44, %v444_v17  ;;  %v3649_v22 = vld [vmem:[%s6735_s27 + $0x1b8] sm:$0xff]  ;;  %v7081_v38 = vsel %vm7056_vm5, 1.0, %v10034_v42  ;;  %v3732_v44 = vld [vmem:[%s6735_s27 + $0x450] sm:$0xff] }
  0x5e   : > { %6104 = vmatprep.mubr.msk.f32.mxu0 %vm3775_vm0, %v3640_v24  ;;  %6224 = vmatprep.mubr.msk.f32.mxu1 %vm3775_vm0, %v3720_v25  ;;  %v2804_v24 = vsel %vm2484_vm14, %v2644_v18, %v412_v10  ;;  %v1324_v25 = vmul.u32 40, %v1323_v12  ;;  %v3735_v10 = vld [vmem:[%s6735_s27 + $0x468] sm:$0xff]  ;;  %v1345_v12 = vshrl.u32 %v7106_v56, 5  ;;  %v3736_v17 = vld [vmem:[%s6735_s27 + $0x470] sm:$0xff] }
  0x5f   : > { %vm2964_vm6 = vcmp.ge.s32.totalorder %v2804_v24, 2  ;;  %vm3124_vm7 = vcmp.lt.s32.totalorder %v2804_v24, 34  ;;  %vm2167_vm8 = vcmp.ne.s32.totalorder %v445_v21, 0  ;;  %vm2327_vm11 = vcmp.lt.s32.totalorder %v445_v21, 0 }
  0x60   : > { %vm7065_vm12 = vmand %vm2964_vm6, %vm3124_vm7  ;;  %v2647_v32 = vadd.s32 40, %v445_v21  ;;  %v1325_v33 = vsub.s32 %v6985_v45, %v1324_v25  ;;  %v3737_v25 = vld [vmem:[%s6735_s27 + $0x478] sm:$0xff]  ;;  %v3739_v45 = vld [vmem:[%s6735_s27 + $0x488] sm:$0xff] }
  0x61   : > { %6105 = vmatmul.mubr.msk.f32.gmra.mrb[36].mxu0 %vm3775_vm0, %v3641_v26  ;;  %6225 = vmatmul.mubr.msk.f32.gmra.mrb[36].mxu1 %vm3775_vm0, %v3721_v27  ;;  %v3650_v26 = vld [vmem:[%s6735_s27 + $0x1c0] sm:$0xff]  ;;  %vm2487_vm13 = vmand %vm2327_vm11, %vm2167_vm8 }
  0x62   : > { %6107 = vmatprep.mubr.msk.f32.mxu0 %vm3775_vm0, %v3642_v29  ;;  %6227 = vmatprep.mubr.msk.f32.mxu1 %vm3775_vm0, %v3722_v30  ;;  %v3730_v27 = vld [vmem:[%s6735_s27 + $0x440] sm:$0xff]  ;;  %v2884_v29 = vsel %vm2564_vm4, %v2724_v20, %v1292_v11  ;;  %v7061_v30 = vadd.s32 32, %v6884_v50  ;;  %v2807_v47 = vsel %vm2487_vm13, %v2647_v32, %v445_v21  ;;  %vm2247_vm15 = vcmp.ne.s32.totalorder %v1325_v33, 0 }
  0x63   : > { %vm3044_vm9 = vcmp.ge.s32.totalorder %v2884_v29, 2  ;;  %vm3204_vm10 = vcmp.lt.s32.totalorder %v2884_v29, 34  ;;  %vm2407_vm2 = vcmp.lt.s32.totalorder %v1325_v33, 0  ;;  %v2727_v48 = vadd.s32 40, %v1325_v33  ;;  %v3658_v29 = vld [vmem:[%s6735_s27 + $0x200] sm:$0xff] }
  0x64   : > { %vm7093_vm14 = vmand %vm3044_vm9, %vm3204_vm10  ;;  %vm2967_vm3 = vcmp.ge.s32.totalorder %v2807_v47, 2  ;;  %vm3127_vm4 = vcmp.lt.s32.totalorder %v2807_v47, 34  ;;  %v7129_v4 = vmul.u32.u64.low 3435973837, %v7061_v30  ;;  %v7130_v5 = vmul.u32.u64.high 3435973837, %v7061_v30, %v7129_v4 }
  0x65   : > { %6108 = vmatmul.mubr.msk.f32.gmra.mrb[38].mxu0 %vm3775_vm0, %v3643_v35  ;;  %6228 = vmatmul.mubr.msk.f32.gmra.mrb[38].mxu1 %vm3775_vm0, %v3723_v36  ;;  %v7072_v35 = vadd.s32 672, %v6884_v50  ;;  %v3651_v36 = vld [vmem:[%s6735_s27 + $0x1c8] sm:$0xff]  ;;  %vm2567_vm5 = vmand %vm2407_vm2, %vm2247_vm15  ;;  %vm2246_vm13 = vcmp.ne.s32.totalorder %v1314_v1, 0 }
  0x66   : > { %6110 = vmatprep.mubr.msk.f32.mxu0 %vm3775_vm0, %v3644_v41  ;;  %6230 = vmatprep.mubr.msk.f32.mxu1 %vm3775_vm0, %v3724_v43  ;;  %v7086_v40 = vmul.u32.u64.low 3435973837, %v7027_v3  ;;  %v7087_v41 = vmul.u32.u64.high 3435973837, %v7027_v3, %v7086_v40  ;;  %v3652_v43 = vld [vmem:[%s6735_s27 + $0x1d0] sm:$0xff]  ;;  %vm7122_vm8 = vmand %vm2967_vm3, %vm3127_vm4 }
  0x67   : > { %v7155_v18 = vsel %vm7122_vm8, 1.0, %v10034_v42 }
  0x68   : > { %v465_v2 = vshrl.u32 %v7087_v41, 5 }
  0x69   : > { %6111 = vmatmul.mubr.msk.f32.gmra.mrb[40].mxu0 %vm3775_vm0, %v3645_v53  ;;  %6231 = vmatmul.mubr.msk.f32.gmra.mrb[40].mxu1 %vm3775_vm0, %v3725_v54  ;;  %v7102_v53 = vsel %vm7065_vm12, 1.0, %v10034_v42  ;;  %v2887_v54 = vsel %vm2567_vm5, %v2727_v48, %v1325_v33 }
  0x6a   : > { %6113 = vmatprep.mubr.msk.f32.mxu0 %vm3775_vm0, %v3646_v59  ;;  %6233 = vmatprep.mubr.msk.f32.mxu1 %vm3775_vm0, %v3726_v60  ;;  %v7115_v59 = vsel %vm7093_vm14, 1.0, %v10034_v42  ;;  %vm3047_vm6 = vcmp.ge.s32.totalorder %v2887_v54, 2  ;;  %vm3207_vm7 = vcmp.lt.s32.totalorder %v2887_v54, 34  ;;  %v434_v60 = vsub.s32 %v6988_v46, %v433_v49  ;;  %v3740_v54 = vld [vmem:[%s6735_s27 + $0x490] sm:$0xff] }
  0x6b   : > { %vm7132_vm9 = vmand %vm3047_vm6, %vm3207_vm7  ;;  %vm2406_vm14 = vcmp.lt.s32.totalorder %v1314_v1, 0  ;;  %v7214_v49 = vadd.s32 688, %v6884_v50  ;;  %v7250_v46 = vadd.s32 72, %v6884_v50 }
  0x6c   : > { %vm2166_vm10 = vcmp.ne.s32.totalorder %v434_v60, 0  ;;  %vm2326_vm11 = vcmp.lt.s32.totalorder %v434_v60, 0  ;;  %v2646_v6 = vadd.s32 40, %v434_v60  ;;  %vm2566_vm15 = vmand %vm2406_vm14, %vm2246_vm13  ;;  %v7160_v19 = vsel %vm7132_vm9, 1.0, %v10034_v42 }
  0x6d   : > { %6114 = vmatmul.mubr.msk.f32.gmra.mrb[42].mxu0 %vm3775_vm0, %v3647_v8  ;;  %6234 = vmatmul.mubr.msk.f32.gmra.mrb[42].mxu1 %vm3775_vm0, %v3727_v9  ;;  %vm2486_vm12 = vmand %vm2326_vm11, %vm2166_vm10  ;;  %v466_v8 = vmul.u32 40, %v465_v2  ;;  %v3655_v9 = vld [vmem:[%s6735_s27 + $0x1e8] sm:$0xff]  ;;  %v2886_v20 = vsel %vm2566_vm15, %v2726_v52, %v1314_v1  ;;  %v3741_v2 = vld [vmem:[%s6735_s27 + $0x498] sm:$0xff] }
  0x6e   : > { %6116 = vmatprep.mubr.msk.f32.mxu0 %vm3775_vm0, %v3648_v14  ;;  %6236 = vmatprep.mubr.msk.f32.mxu1 %vm3775_vm0, %v3728_v15  ;;  %v2806_v11 = vsel %vm2486_vm12, %v2646_v6, %v434_v60  ;;  %v7147_v14 = vmul.u32.u64.low 3435973837, %v7072_v35  ;;  %v7148_v15 = vmul.u32.u64.high 3435973837, %v7072_v35, %v7147_v14  ;;  %vm3046_vm4 = vcmp.ge.s32.totalorder %v2886_v20, 2  ;;  %v3662_v6 = vld [vmem:[%s6735_s27 + $0x220] sm:$0xff] }
  0x6f   : > { %v467_v21 = vsub.s32 %v7027_v3, %v466_v8  ;;  %vm2966_vm2 = vcmp.ge.s32.totalorder %v2806_v11, 2  ;;  %vm3126_vm3 = vcmp.lt.s32.totalorder %v2806_v11, 34  ;;  %v3657_v3 = vld [vmem:[%s6735_s27 + $0x1f8] sm:$0xff]  ;;  %vm3206_vm7 = vcmp.lt.s32.totalorder %v2886_v20, 34  ;;  %v3742_v52 = vld [vmem:[%s6735_s27 + $0x4a0] sm:$0xff]  ;;  %v3663_v20 = vld [vmem:[%s6735_s27 + $0x228] sm:$0xff] }
  0x70   : > { %v1334_v28 = vshrl.u32 %v7148_v15, 5  ;;  %vm7176_vm9 = vmand %vm2966_vm2, %vm3126_vm3 }
  0x71   : > { %6117 = vmatmul.mubr.msk.f32.gmra.mrb[44].mxu0 %vm3775_vm0, %v3649_v22  ;;  %6237 = vmatmul.mubr.msk.f32.gmra.mrb[44].mxu1 %vm3775_vm0, %v3729_v23  ;;  %v1346_v22 = vmul.u32 40, %v1345_v12  ;;  %v454_v23 = vshrl.u32 %v7130_v5, 5  ;;  %vm2169_vm5 = vcmp.ne.s32.totalorder %v467_v21, 0  ;;  %vm2329_vm6 = vcmp.lt.s32.totalorder %v467_v21, 0  ;;  %vm7191_vm14 = vmand %vm3046_vm4, %vm3206_vm7 }
  0x72   : > { %6119 = vmatprep.mubr.msk.f32.mxu0 %vm3775_vm0, %v3650_v26  ;;  %6239 = vmatprep.mubr.msk.f32.mxu1 %vm3775_vm0, %v3730_v27  ;;  %v2649_v24 = vadd.s32 40, %v467_v21  ;;  %vm2489_vm8 = vmand %vm2329_vm6, %vm2169_vm5  ;;  %v1335_v41 = vmul.u32 40, %v1334_v28  ;;  %v7206_v47 = vsel %vm7176_vm9, 1.0, %v10034_v42 }
  0x73   : > { %v1347_v26 = vsub.s32 %v7043_v13, %v1346_v22  ;;  %v455_v27 = vmul.u32 40, %v454_v23  ;;  %v7185_v13 = vadd.s32 696, %v6884_v50 }
  0x74   : > { %v2809_v33 = vsel %vm2489_vm8, %v2649_v24, %v467_v21  ;;  %v7256_v11 = vmul.u32.u64.low 3435973837, %v7214_v49  ;;  %v7257_v12 = vmul.u32.u64.high 3435973837, %v7214_v49, %v7256_v11  ;;  %v3743_v21 = vld [vmem:[%s6735_s27 + $0x4a8] sm:$0xff]  ;;  %v7272_v24 = vadd.s32 712, %v6884_v50 }
  0x75   : > { %6120 = vmatmul.mubr.msk.f32.gmra.mrb[46].mxu0 %vm3775_vm0, %v3651_v36  ;;  %6240 = vmatmul.mubr.msk.f32.gmra.mrb[46].mxu1 %vm3775_vm0, %v3731_v37  ;;  %v7181_v34 = vmul.u32.u64.low 3435973837, %v7137_v7  ;;  %v7182_v36 = vmul.u32.u64.high 3435973837, %v7137_v7, %v7181_v34  ;;  %vm2969_vm10 = vcmp.ge.s32.totalorder %v2809_v33, 2  ;;  %vm3129_vm11 = vcmp.lt.s32.totalorder %v2809_v33, 34 }
  0x76   : > { %6122 = vmatprep.mubr.msk.f32.mxu0 %vm3775_vm0, %v3652_v43  ;;  %6242 = vmatprep.mubr.msk.f32.mxu1 %vm3775_vm0, %v3732_v44  ;;  %vm2249_vm12 = vcmp.ne.s32.totalorder %v1347_v26, 0  ;;  %vm2409_vm13 = vcmp.lt.s32.totalorder %v1347_v26, 0  ;;  %v2729_v39 = vadd.s32 40, %v1347_v26  ;;  %v456_v40 = vsub.s32 %v7061_v30, %v455_v27  ;;  %v3659_v44 = vld [vmem:[%s6735_s27 + $0x208] sm:$0xff]  ;;  %vm7220_vm2 = vmand %vm2969_vm10, %vm3129_vm11  ;;  %v3665_v34 = vld [vmem:[%s6735_s27 + $0x238] sm:$0xff] }
  0x77   : > { %v7197_v43 = vadd.s32 48, %v6884_v50  ;;  %vm2569_vm15 = vmand %vm2409_vm13, %vm2249_vm12  ;;  %v7210_v48 = vmul.u32.u64.low 3435973837, %v7185_v13  ;;  %v7211_v30 = vmul.u32.u64.high 3435973837, %v7185_v13, %v7210_v48  ;;  %v487_v60 = vshrl.u32 %v7182_v36, 5  ;;  %v3745_v36 = vld [vmem:[%s6735_s27 + $0x4b8] sm:$0xff] }
  0x78   : > { %v2889_v56 = vsel %vm2569_vm15, %v2729_v39, %v1347_v26  ;;  %vm2168_vm3 = vcmp.ne.s32.totalorder %v456_v40, 0  ;;  %vm2328_vm4 = vcmp.lt.s32.totalorder %v456_v40, 0  ;;  %v7244_v4 = vsel %vm7220_vm2, 1.0, %v10034_v42  ;;  %v3666_v39 = vld [vmem:[%s6735_s27 + $0x240] sm:$0xff] }
  0x79   : > { %6123 = vmatmul.mubr.msk.f32.gmra.mrb[48].mxu0 %vm3775_vm0, %v3653_v57  ;;  %6243 = vmatmul.mubr.msk.f32.gmra.mrb[48].mxu1 %vm3775_vm0, %v3733_v58  ;;  %v2648_v57 = vadd.s32 40, %v456_v40  ;;  %vm3049_vm5 = vcmp.ge.s32.totalorder %v2889_v56, 2  ;;  %vm3209_vm6 = vcmp.lt.s32.totalorder %v2889_v56, 34  ;;  %vm2488_vm7 = vmand %vm2328_vm4, %vm2168_vm3  ;;  %v1336_v58 = vsub.s32 %v7072_v35, %v1335_v41  ;;  %v3661_v35 = vld [vmem:[%s6735_s27 + $0x218] sm:$0xff] }
  0x7a   : > { %6125 = vmatprep.mubr.msk.f32.mxu0 %vm3775_vm0, %v3654_v61  ;;  %6245 = vmatprep.mubr.msk.f32.mxu1 %vm3775_vm0, %v3734_v62  ;;  %v7231_v61 = vsel %vm7191_vm14, 1.0, %v10034_v42  ;;  %vm3369_vm8 = vmand %vm3049_vm5, %vm3209_vm6  ;;  %v7234_v63 = vmul.u32.u64.low 3435973837, %v7197_v43  ;;  %v7235_v1 = vmul.u32.u64.high 3435973837, %v7197_v43, %v7234_v63  ;;  %v1356_v28 = vshrl.u32 %v7257_v12, 5 }
  0x7b   : > { %v2808_v62 = vsel %vm2488_vm7, %v2648_v57, %v456_v40  ;;  %v7247_v5 = vsel %vm3369_vm8, 1.0, %v10034_v42  ;;  %vm2248_vm9 = vcmp.ne.s32.totalorder %v1336_v58, 0  ;;  %vm2408_vm10 = vcmp.lt.s32.totalorder %v1336_v58, 0  ;;  %v3746_v40 = vld [vmem:[%s6735_s27 + $0x4c0] sm:$0xff] }
  0x7c   : > { %v2728_v8 = vadd.s32 40, %v1336_v58  ;;  %vm2968_vm11 = vcmp.ge.s32.totalorder %v2808_v62, 2  ;;  %vm3128_vm12 = vcmp.lt.s32.totalorder %v2808_v62, 34  ;;  %vm2568_vm13 = vmand %vm2408_vm10, %vm2248_vm9  ;;  %v1357_v37 = vmul.u32 40, %v1356_v28 }
  0x7d   : > { %6126 = vmatmul.mubr.msk.f32.gmra.mrb[50].mxu0 %vm3775_vm0, %v3655_v9  ;;  %6246 = vmatmul.mubr.msk.f32.gmra.mrb[50].mxu1 %vm3775_vm0, %v3735_v10  ;;  %v488_v9 = vmul.u32 40, %v487_v60  ;;  %v1367_v10 = vshrl.u32 %v7211_v30, 5  ;;  %v7268_v22 = vmul.u32.u64.low 3435973837, %v7250_v46  ;;  %v7269_v23 = vmul.u32.u64.high 3435973837, %v7250_v46, %v7268_v22  ;;  %vm7285_vm5 = vmand %vm2968_vm11, %vm3128_vm12  ;;  %v3747_v60 = vld [vmem:[%s6735_s27 + $0x4c8] sm:$0xff] }
  0x7e   : > { %6128 = vmatprep.mubr.msk.f32.mxu0 %vm3775_vm0, %v3656_v16  ;;  %6248 = vmatprep.mubr.msk.f32.mxu1 %vm3775_vm0, %v3736_v17  ;;  %v2888_v14 = vsel %vm2568_vm13, %v2728_v8, %v1336_v58  ;;  %v476_v17 = vshrl.u32 %v7235_v1, 5  ;;  %v7304_v48 = vmul.u32.u64.low 3435973837, %v7272_v24  ;;  %v7305_v30 = vmul.u32.u64.high 3435973837, %v7272_v24, %v7304_v48  ;;  %v3667_v58 = vld [vmem:[%s6735_s27 + $0x248] sm:$0xff] }
  0x7f   : > { %v489_v15 = vsub.s32 %v7137_v7, %v488_v9  ;;  %v1368_v16 = vmul.u32 40, %v1367_v10  ;;  %vm3048_vm14 = vcmp.ge.s32.totalorder %v2888_v14, 2  ;;  %vm3208_vm3 = vcmp.lt.s32.totalorder %v2888_v14, 34 }
  0x80   : > { %v477_v27 = vmul.u32 40, %v476_v17  ;;  %vm7298_vm11 = vmand %vm3048_vm14, %vm3208_vm3  ;;  %v1358_v56 = vsub.s32 %v7214_v49, %v1357_v37  ;;  %v3668_v49 = vld [vmem:[%s6735_s27 + $0x250] sm:$0xff]  ;;  %v1389_v11 = vshrl.u32 %v7305_v30, 5  ;;  %v3749_v17 = vld [vmem:[%s6735_s27 + $0x4d8] sm:$0xff] }
  0x81   : > { %6129 = vmatmul.mubr.msk.f32.gmra.mrb[52].mxu0 %vm3775_vm0, %v3657_v3  ;;  %6249 = vmatmul.mubr.msk.f32.gmra.mrb[52].mxu1 %vm3775_vm0, %v3737_v25  ;;  %v3664_v3 = vld [vmem:[%s6735_s27 + $0x230] sm:$0xff]  ;;  %vm2171_vm15 = vcmp.ne.s32.totalorder %v489_v15, 0  ;;  %vm2331_vm2 = vcmp.lt.s32.totalorder %v489_v15, 0  ;;  %v2651_v7 = vadd.s32 40, %v489_v15  ;;  %v1369_v26 = vsub.s32 %v7185_v13, %v1368_v16 }
  0x82   : > { %6131 = vmatprep.mubr.msk.f32.mxu0 %vm3775_vm0, %v3658_v29  ;;  %6251 = vmatprep.mubr.msk.f32.mxu1 %vm3775_vm0, %v3738_v31  ;;  %v3744_v25 = vld [vmem:[%s6735_s27 + $0x4b0] sm:$0xff]  ;;  %vm2491_vm4 = vmand %vm2331_vm2, %vm2171_vm15  ;;  %v7279_v29 = vadd.s32 64, %v6884_v50  ;;  %v478_v13 = vsub.s32 %v7197_v43, %v477_v27  ;;  %v7310_v43 = vsel %vm7285_vm5, 1.0, %v10034_v42  ;;  %v7330_v62 = vsel %vm7298_vm11, 1.0, %v10034_v42 }
  0x83   : > { %v2811_v32 = vsel %vm2491_vm4, %v2651_v7, %v489_v15  ;;  %vm2251_vm6 = vcmp.ne.s32.totalorder %v1369_v26, 0  ;;  %vm2411_vm7 = vcmp.lt.s32.totalorder %v1369_v26, 0  ;;  %v2731_v33 = vadd.s32 40, %v1369_v26 }
  0x84   : > { %vm2971_vm8 = vcmp.ge.s32.totalorder %v2811_v32, 2  ;;  %vm3131_vm9 = vcmp.lt.s32.totalorder %v2811_v32, 34  ;;  %vm2571_vm10 = vmand %vm2411_vm7, %vm2251_vm6  ;;  %vm2170_vm15 = vcmp.ne.s32.totalorder %v478_v13, 0  ;;  %vm2330_vm3 = vcmp.lt.s32.totalorder %v478_v13, 0 }
  0x85   : > { %6132 = vmatmul.mubr.msk.f32.gmra.mrb[54].mxu0 %vm3775_vm0, %v3659_v44  ;;  %6252 = vmatmul.mubr.msk.f32.gmra.mrb[54].mxu1 %vm3775_vm0, %v3739_v45  ;;  %v2891_v44 = vsel %vm2571_vm10, %v2731_v33, %v1369_v26  ;;  %v509_v45 = vshrl.u32 %v7269_v23, 5  ;;  %vm7312_vm12 = vmand %vm2971_vm8, %vm3131_vm9  ;;  %v2650_v55 = vadd.s32 40, %v478_v13  ;;  %vm2250_vm5 = vcmp.ne.s32.totalorder %v1358_v56, 0 }
  0x86   : > { %6134 = vmatprep.mubr.msk.f32.mxu0 %vm3775_vm0, %v3660_v51  ;;  %6254 = vmatprep.mubr.msk.f32.mxu1 %vm3775_vm0, %v3740_v54  ;;  %vm3051_vm13 = vcmp.ge.s32.totalorder %v2891_v44, 2  ;;  %vm3211_vm14 = vcmp.lt.s32.totalorder %v2891_v44, 34  ;;  %vm2490_vm4 = vmand %vm2330_vm3, %vm2170_vm15  ;;  %v7333_v63 = vmul.u32.u64.low 3435973837, %v7279_v29  ;;  %v7334_v1 = vmul.u32.u64.high 3435973837, %v7279_v29, %v7333_v63 }
  0x87   : > { %vm7318_vm2 = vmand %vm3051_vm13, %vm3211_vm14  ;;  %v510_v57 = vmul.u32 40, %v509_v45  ;;  %vm2410_vm6 = vcmp.lt.s32.totalorder %v1358_v56, 0  ;;  %v7344_v8 = vsel %vm7312_vm12, 1.0, %v10034_v42  ;;  %v7360_v16 = vadd.s32 88, %v6884_v50  ;;  %v3674_v63 = vld [vmem:[%s6735_s27 + $0x280] sm:$0xff] }
  0x88   : > { %v7349_v9 = vsel %vm7318_vm2, 1.0, %v10034_v42  ;;  %vm2570_vm7 = vmand %vm2410_vm6, %vm2250_vm5  ;;  %v1390_v23 = vmul.u32 40, %v1389_v11  ;;  %v7374_v26 = vadd.s32 728, %v6884_v50  ;;  %v7410_v51 = vadd.s32 80, %v6884_v50 }
  0x89   : > { %6135 = vmatmul.mubr.msk.f32.gmra.mrb[56].mxu0 %vm3775_vm0, %v3661_v35  ;;  %6255 = vmatmul.mubr.msk.f32.gmra.mrb[56].mxu1 %vm3775_vm0, %v3741_v2  ;;  %v7337_v35 = vadd.s32 704, %v6884_v50  ;;  %v3748_v2 = vld [vmem:[%s6735_s27 + $0x4d0] sm:$0xff]  ;;  %v511_v10 = vsub.s32 %v7250_v46, %v510_v57  ;;  %v3669_v46 = vld [vmem:[%s6735_s27 + $0x258] sm:$0xff] }
  0x8a   : > { %6137 = vmatprep.mubr.msk.f32.mxu0 %vm3775_vm0, %v3662_v6  ;;  %6257 = vmatprep.mubr.msk.f32.mxu1 %vm3775_vm0, %v3742_v52  ;;  %v2810_v6 = vsel %vm2490_vm4, %v2650_v55, %v478_v13  ;;  %v2730_v52 = vadd.s32 40, %v1358_v56  ;;  %v1391_v31 = vsub.s32 %v7272_v24, %v1390_v23  ;;  %v3753_v57 = vld [vmem:[%s6735_s27 + $0x4f8] sm:$0xff]  ;;  %v3676_v23 = vld [vmem:[%s6735_s27 + $0x290] sm:$0xff] }
  0x8b   : > { %v7356_v14 = vmul.u32.u64.low 3435973837, %v7337_v35  ;;  %v7357_v15 = vmul.u32.u64.high 3435973837, %v7337_v35, %v7356_v14  ;;  %vm2970_vm8 = vcmp.ge.s32.totalorder %v2810_v6, 2  ;;  %vm3130_vm9 = vcmp.lt.s32.totalorder %v2810_v6, 34 }
  0x8c   : > { %v2890_v12 = vsel %vm2570_vm7, %v2730_v52, %v1358_v56  ;;  %vm2173_vm11 = vcmp.ne.s32.totalorder %v511_v10, 0  ;;  %vm2333_vm12 = vcmp.lt.s32.totalorder %v511_v10, 0  ;;  %v2653_v22 = vadd.s32 40, %v511_v10  ;;  %vm7380_vm15 = vmand %vm2970_vm8, %vm3130_vm9  ;;  %v3673_v56 = vld [vmem:[%s6735_s27 + $0x278] sm:$0xff] }
  0x8d   : > { %6138 = vmatmul.mubr.msk.f32.gmra.mrb[58].mxu0 %vm3775_vm0, %v3663_v20  ;;  %6258 = vmatmul.mubr.msk.f32.gmra.mrb[58].mxu1 %vm3775_vm0, %v3743_v21  ;;  %vm3050_vm10 = vcmp.ge.s32.totalorder %v2890_v12, 2  ;;  %v3670_v20 = vld [vmem:[%s6735_s27 + $0x260] sm:$0xff]  ;;  %vm3210_vm13 = vcmp.lt.s32.totalorder %v2890_v12, 34  ;;  %vm2493_vm14 = vmand %vm2333_vm12, %vm2173_vm11  ;;  %v1378_v33 = vshrl.u32 %v7357_v15, 5  ;;  %vm2253_vm5 = vcmp.ne.s32.totalorder %v1391_v31, 0 }
  0x8e   : > { %6140 = vmatprep.mubr.msk.f32.mxu0 %vm3775_vm0, %v3664_v3  ;;  %6260 = vmatprep.mubr.msk.f32.mxu1 %vm3775_vm0, %v3744_v25  ;;  %v3750_v21 = vld [vmem:[%s6735_s27 + $0x4e0] sm:$0xff]  ;;  %v498_v3 = vshrl.u32 %v7334_v1, 5  ;;  %v7370_v25 = vmul.u32.u64.low 3435973837, %v7360_v16  ;;  %v7371_v7 = vmul.u32.u64.high 3435973837, %v7360_v16, %v7370_v25  ;;  %v2813_v28 = vsel %vm2493_vm14, %v2653_v22, %v511_v10  ;;  %vm7398_vm4 = vmand %vm3050_vm10, %vm3210_vm13 }
  0x8f   : > { %vm2973_vm2 = vcmp.ge.s32.totalorder %v2813_v28, 2  ;;  %vm3133_vm3 = vcmp.lt.s32.totalorder %v2813_v28, 34  ;;  %v7391_v13 = vmul.u32.u64.low 3435973837, %v7374_v26  ;;  %v7392_v37 = vmul.u32.u64.high 3435973837, %v7374_v26, %v7391_v13  ;;  %v3754_v1 = vld [vmem:[%s6735_s27 + $0x500] sm:$0xff] }
  0x90   : > { %v499_v32 = vmul.u32 40, %v498_v3  ;;  %vm2413_vm6 = vcmp.lt.s32.totalorder %v1391_v31, 0  ;;  %v2733_v41 = vadd.s32 40, %v1391_v31  ;;  %v7406_v45 = vsel %vm7380_vm15, 1.0, %v10034_v42  ;;  %vm7416_vm8 = vmand %vm2973_vm2, %vm3133_vm3  ;;  %v3756_v3 = vld [vmem:[%s6735_s27 + $0x510] sm:$0xff]  ;;  %v3757_v13 = vld [vmem:[%s6735_s27 + $0x518] sm:$0xff] }
  0x91   : > { %6141 = vmatmul.mubr.msk.f32.gmra.mrb[60].mxu0 %vm3775_vm0, %v3665_v34  ;;  %6261 = vmatmul.mubr.msk.f32.gmra.mrb[60].mxu1 %vm3775_vm0, %v3745_v36  ;;  %v3671_v34 = vld [vmem:[%s6735_s27 + $0x268] sm:$0xff]  ;;  %vm2573_vm7 = vmand %vm2413_vm6, %vm2253_vm5  ;;  %v1379_v48 = vmul.u32 40, %v1378_v33  ;;  %v531_v30 = vshrl.u32 %v7371_v7, 5  ;;  %v1411_v6 = vshrl.u32 %v7392_v37, 5  ;;  %v7467_v22 = vadd.s32 104, %v6884_v50 }
  0x92   : > { %6143 = vmatprep.mubr.msk.f32.mxu0 %vm3775_vm0, %v3666_v39  ;;  %6263 = vmatprep.mubr.msk.f32.mxu1 %vm3775_vm0, %v3746_v40  ;;  %v3751_v36 = vld [vmem:[%s6735_s27 + $0x4e8] sm:$0xff]  ;;  %v3672_v39 = vld [vmem:[%s6735_s27 + $0x270] sm:$0xff]  ;;  %v500_v44 = vsub.s32 %v7279_v29, %v499_v32  ;;  %v2893_v54 = vsel %vm2573_vm7, %v2733_v41, %v1391_v31  ;;  %v7433_v52 = vmul.u32.u64.low 3435973837, %v7410_v51  ;;  %v7434_v10 = vmul.u32.u64.high 3435973837, %v7410_v51, %v7433_v52 }
  0x93   : > { %v3752_v40 = vld [vmem:[%s6735_s27 + $0x4f0] sm:$0xff]  ;;  %vm3053_vm11 = vcmp.ge.s32.totalorder %v2893_v54, 2  ;;  %vm3213_vm12 = vcmp.lt.s32.totalorder %v2893_v54, 34  ;;  %v1412_v15 = vmul.u32 40, %v1411_v6  ;;  %v7493_v37 = vadd.s32 744, %v6884_v50 }
  0x94   : > { %vm2172_vm9 = vcmp.ne.s32.totalorder %v500_v44, 0  ;;  %vm2332_vm10 = vcmp.lt.s32.totalorder %v500_v44, 0  ;;  %v2652_v55 = vadd.s32 40, %v500_v44  ;;  %vm7427_vm14 = vmand %vm3053_vm11, %vm3213_vm12  ;;  %v520_v28 = vshrl.u32 %v7434_v10, 5  ;;  %v3760_v6 = vld [vmem:[%s6735_s27 + $0x530] sm:$0xff] }
  0x95   : > { %6144 = vmatmul.mubr.msk.f32.gmra.mrb[62].mxu0 %vm3775_vm0, %v3667_v58  ;;  %6264 = vmatmul.mubr.msk.f32.gmra.mrb[62].mxu1 %vm3775_vm0, %v3747_v60  ;;  %vm2492_vm13 = vmand %vm2332_vm10, %vm2172_vm9  ;;  %v1380_v58 = vsub.s32 %v7337_v35, %v1379_v48  ;;  %v532_v60 = vmul.u32 40, %v531_v30  ;;  %v7439_v35 = vsel %vm7398_vm4, 1.0, %v10034_v42  ;;  %v1413_v27 = vsub.s32 %v7374_v26, %v1412_v15 }
  0x96   : > { %6146 = vmatprep.mubr.msk.f32.mxu0 %vm3775_vm0, %v3668_v49  ;;  %6266 = vmatprep.mubr.msk.f32.mxu1 %vm3775_vm0, %v3748_v2  ;;  %v2812_v2 = vsel %vm2492_vm13, %v2652_v55, %v500_v44  ;;  %v521_v41 = vmul.u32 40, %v520_v28  ;;  %v7498_v44 = vadd.s32 96, %v6884_v50  ;;  %v7510_v54 = vadd.s32 736, %v6884_v50 }
  0x97   : > { %vm2972_vm15 = vcmp.ge.s32.totalorder %v2812_v2, 2  ;;  %vm3132_vm2 = vcmp.lt.s32.totalorder %v2812_v2, 34  ;;  %vm2252_vm3 = vcmp.ne.s32.totalorder %v1380_v58, 0  ;;  %vm2412_vm6 = vcmp.lt.s32.totalorder %v1380_v58, 0  ;;  %v3680_v2 = vld [vmem:[%s6735_s27 + $0x2b0] sm:$0xff] }
  0x98   : > { %vm7443_vm5 = vmand %vm2972_vm15, %vm3132_vm2  ;;  %v2732_v12 = vadd.s32 40, %v1380_v58  ;;  %v533_v14 = vsub.s32 %v7360_v16, %v532_v60  ;;  %v7464_v16 = vadd.s32 720, %v6884_v50  ;;  %vm2255_vm15 = vcmp.ne.s32.totalorder %v1413_v27, 0  ;;  %v3679_v60 = vld [vmem:[%s6735_s27 + $0x2a8] sm:$0xff] }
  0x99   : > { %6147 = vmatmul.mubr.msk.f32.gmra.mrb[64].mxu0 %vm3775_vm0, %v3669_v46  ;;  %6267 = vmatmul.mubr.msk.f32.gmra.mrb[64].mxu1 %vm3775_vm0, %v3749_v17  ;;  %v3675_v46 = vld [vmem:[%s6735_s27 + $0x288] sm:$0xff]  ;;  %vm2572_vm4 = vmand %vm2412_vm6, %vm2252_vm3  ;;  %v7478_v31 = vsel %vm7443_vm5, 1.0, %v10034_v42  ;;  %vm2415_vm3 = vcmp.lt.s32.totalorder %v1413_v27, 0  ;;  %v2735_v24 = vadd.s32 40, %v1413_v27  ;;  %v7539_v15 = vadd.s32 120, %v6884_v50 }
  0x9a   : > { %6149 = vmatprep.mubr.msk.f32.mxu0 %vm3775_vm0, %v3670_v20  ;;  %6269 = vmatprep.mubr.msk.f32.mxu1 %vm3775_vm0, %v3750_v21  ;;  %v3755_v17 = vld [vmem:[%s6735_s27 + $0x508] sm:$0xff]  ;;  %v7455_v20 = vsel %vm7416_vm8, 1.0, %v10034_v42  ;;  %v7460_v21 = vsel %vm7427_vm14, 1.0, %v10034_v42  ;;  %v2892_v25 = vsel %vm2572_vm4, %v2732_v12, %v1380_v58  ;;  %vm2175_vm7 = vcmp.ne.s32.totalorder %v533_v14, 0  ;;  %vm2575_vm5 = vmand %vm2415_vm3, %vm2255_vm15 }
  0x9b   : > { %vm2335_vm8 = vcmp.lt.s32.totalorder %v533_v14, 0  ;;  %v2655_v7 = vadd.s32 40, %v533_v14  ;;  %vm3052_vm9 = vcmp.ge.s32.totalorder %v2892_v25, 2  ;;  %vm3212_vm10 = vcmp.lt.s32.totalorder %v2892_v25, 34  ;;  %v3681_v25 = vld [vmem:[%s6735_s27 + $0x2b8] sm:$0xff] }
  0x9c   : > { %vm2495_vm11 = vmand %vm2335_vm8, %vm2175_vm7  ;;  %v7506_v30 = vmul.u32.u64.low 3435973837, %v7467_v22  ;;  %v7507_v29 = vmul.u32.u64.high 3435973837, %v7467_v22, %v7506_v30 }
  0x9d   : > { %6150 = vmatmul.mubr.msk.f32.gmra.mrb[66].mxu0 %vm3775_vm0, %v3671_v34  ;;  %6270 = vmatmul.mubr.msk.f32.gmra.mrb[66].mxu1 %vm3775_vm0, %v3751_v36  ;;  %vm7480_vm12 = vmand %vm3052_vm9, %vm3212_vm10  ;;  %v2815_v33 = vsel %vm2495_vm11, %v2655_v7, %v533_v14  ;;  %v7485_v26 = vmul.u32.u64.low 3435973837, %v7464_v16  ;;  %v7486_v34 = vmul.u32.u64.high 3435973837, %v7464_v16, %v7485_v26  ;;  %v3677_v36 = vld [vmem:[%s6735_s27 + $0x298] sm:$0xff] }
  0x9e   : > { %6152 = vmatprep.mubr.msk.f32.mxu0 %vm3775_vm0, %v3672_v39  ;;  %6272 = vmatprep.mubr.msk.f32.mxu1 %vm3775_vm0, %v3752_v40  ;;  %vm2975_vm13 = vcmp.ge.s32.totalorder %v2815_v33, 2  ;;  %vm3135_vm14 = vcmp.lt.s32.totalorder %v2815_v33, 34  ;;  %v3678_v39 = vld [vmem:[%s6735_s27 + $0x2a0] sm:$0xff]  ;;  %v7503_v48 = vsel %vm7480_vm12, 1.0, %v10034_v42  ;;  %v553_v11 = vshrl.u32 %v7507_v29, 5  ;;  %v3761_v7 = vld [vmem:[%s6735_s27 + $0x538] sm:$0xff] }
  0x9f   : > { %v3758_v40 = vld [vmem:[%s6735_s27 + $0x520] sm:$0xff]  ;;  %vm3295_vm2 = vmand %vm2975_vm13, %vm3135_vm14  ;;  %v1400_v58 = vshrl.u32 %v7486_v34, 5  ;;  %v7535_v12 = vmul.u32.u64.low 3435973837, %v7498_v44  ;;  %v7536_v14 = vmul.u32.u64.high 3435973837, %v7498_v44, %v7535_v12  ;;  %v3683_v29 = vld [vmem:[%s6735_s27 + $0x2c8] sm:$0xff] }
  0xa0   : > { %v7515_v55 = vsel %vm3295_vm2, 1.0, %v10034_v42  ;;  %v554_v28 = vmul.u32 40, %v553_v11  ;;  %v3682_v33 = vld [vmem:[%s6735_s27 + $0x2c0] sm:$0xff] }
  0xa1   : > { %6153 = vmatmul.mubr.msk.f32.gmra.mrb[68].mxu0 %vm3775_vm0, %v3673_v56  ;;  %6273 = vmatmul.mubr.msk.f32.gmra.mrb[68].mxu1 %vm3775_vm0, %v3753_v57  ;;  %v2895_v56 = vsel %vm2575_vm5, %v2735_v24, %v1413_v27  ;;  %v522_v57 = vsub.s32 %v7410_v51, %v521_v41  ;;  %v1401_v10 = vmul.u32 40, %v1400_v58  ;;  %v3762_v26 = vld [vmem:[%s6735_s27 + $0x540] sm:$0xff] }
  0xa2   : > { %6155 = vmatprep.mubr.msk.f32.mxu0 %vm3775_vm0, %v3674_v63  ;;  %6275 = vmatprep.mubr.msk.f32.mxu1 %vm3775_vm0, %v3754_v1  ;;  %v3759_v63 = vld [vmem:[%s6735_s27 + $0x528] sm:$0xff]  ;;  %vm3055_vm6 = vcmp.ge.s32.totalorder %v2895_v56, 2  ;;  %vm3215_vm4 = vcmp.lt.s32.totalorder %v2895_v56, 34  ;;  %v7524_v1 = vmul.u32.u64.low 3435973837, %v7493_v37  ;;  %v7525_v49 = vmul.u32.u64.high 3435973837, %v7493_v37, %v7524_v1 }
  0xa3   : > { %vm7529_vm7 = vmand %vm3055_vm6, %vm3215_vm4  ;;  %vm2174_vm8 = vcmp.ne.s32.totalorder %v522_v57, 0  ;;  %vm2334_vm9 = vcmp.lt.s32.totalorder %v522_v57, 0  ;;  %v2654_v51 = vadd.s32 40, %v522_v57  ;;  %v7577_v56 = vadd.s32 112, %v6884_v50 }
  0xa4   : > { %vm2494_vm10 = vmand %vm2334_vm9, %vm2174_vm8  ;;  %v7555_v27 = vsel %vm7529_vm7, 1.0, %v10034_v42  ;;  %v1433_v32 = vshrl.u32 %v7525_v49, 5  ;;  %v7569_v41 = vmul.u32.u64.low 3435973837, %v7539_v15  ;;  %v7570_v30 = vmul.u32.u64.high 3435973837, %v7539_v15, %v7569_v41 }
  0xa5   : > { %6156 = vmatmul.mubr.msk.f32.gmra.mrb[70].mxu0 %vm3775_vm0, %v3675_v46  ;;  %6276 = vmatmul.mubr.msk.f32.gmra.mrb[70].mxu1 %vm3775_vm0, %v3755_v17  ;;  %v2814_v46 = vsel %vm2494_vm10, %v2654_v51, %v522_v57  ;;  %v1402_v17 = vsub.s32 %v7464_v16, %v1401_v10  ;;  %v7559_v16 = vadd.s32 760, %v6884_v50 }
  0xa6   : > { %6158 = vmatprep.mubr.msk.f32.mxu0 %vm3775_vm0, %v3676_v23  ;;  %6278 = vmatprep.mubr.msk.f32.mxu1 %vm3775_vm0, %v3756_v3  ;;  %v7545_v23 = vmul.u32.u64.low 3435973837, %v7510_v54  ;;  %v7546_v3 = vmul.u32.u64.high 3435973837, %v7510_v54, %v7545_v23  ;;  %vm2974_vm11 = vcmp.ge.s32.totalorder %v2814_v46, 2  ;;  %vm3134_vm14 = vcmp.lt.s32.totalorder %v2814_v46, 34 }
  0xa7   : > { %vm2254_vm12 = vcmp.ne.s32.totalorder %v1402_v17, 0  ;;  %vm2414_vm13 = vcmp.lt.s32.totalorder %v1402_v17, 0  ;;  %v2734_v34 = vadd.s32 40, %v1402_v17  ;;  %vm3294_vm7 = vmand %vm2974_vm11, %vm3134_vm14  ;;  %v575_v11 = vshrl.u32 %v7570_v30, 5 }
  0xa8   : > { %vm2574_vm15 = vmand %vm2414_vm13, %vm2254_vm12  ;;  %v1422_v24 = vshrl.u32 %v7546_v3, 5  ;;  %v7581_v1 = vmul.u32.u64.low 3435973837, %v7559_v16  ;;  %v7582_v49 = vmul.u32.u64.high 3435973837, %v7559_v16, %v7581_v1  ;;  %v7601_v46 = vsel %vm3294_vm7, 1.0, %v10034_v42 }
  0xa9   : > { %6159 = vmatmul.mubr.msk.f32.gmra.mrb[72].mxu0 %vm3775_vm0, %v3677_v36  ;;  %6279 = vmatmul.mubr.msk.f32.gmra.mrb[72].mxu1 %vm3775_vm0, %v3757_v13  ;;  %v555_v36 = vsub.s32 %v7467_v22, %v554_v28  ;;  %v1434_v13 = vmul.u32 40, %v1433_v32  ;;  %v3763_v22 = vld [vmem:[%s6735_s27 + $0x548] sm:$0xff]  ;;  %v576_v23 = vmul.u32 40, %v575_v11 }
  0xaa   : > { %6161 = vmatprep.mubr.msk.f32.mxu0 %vm3775_vm0, %v3678_v39  ;;  %6281 = vmatprep.mubr.msk.f32.mxu1 %vm3775_vm0, %v3758_v40  ;;  %v542_v39 = vshrl.u32 %v7536_v14, 5  ;;  %v2894_v40 = vsel %vm2574_vm15, %v2734_v34, %v1402_v17  ;;  %v7597_v12 = vmul.u32.u64.low 3435973837, %v7577_v56  ;;  %v7598_v14 = vmul.u32.u64.high 3435973837, %v7577_v56, %v7597_v12 }
  0xab   : > { %vm3054_vm2 = vcmp.ge.s32.totalorder %v2894_v40, 2  ;;  %vm2177_vm3 = vcmp.ne.s32.totalorder %v555_v36, 0  ;;  %vm2337_vm5 = vcmp.lt.s32.totalorder %v555_v36, 0  ;;  %v2657_v57 = vadd.s32 40, %v555_v36 }
  0xac   : > { %v1435_v58 = vsub.s32 %v7493_v37, %v1434_v13  ;;  %vm3214_vm6 = vcmp.lt.s32.totalorder %v2894_v40, 34  ;;  %vm2497_vm4 = vmand %vm2337_vm5, %vm2177_vm3  ;;  %v1455_v3 = vshrl.u32 %v7582_v49, 5  ;;  %v577_v34 = vsub.s32 %v7539_v15, %v576_v23 }
  0xad   : > { %6162 = vmatmul.mubr.msk.f32.gmra.mrb[74].mxu0 %vm3775_vm0, %v3679_v60  ;;  %6282 = vmatmul.mubr.msk.f32.gmra.mrb[74].mxu1 %vm3775_vm0, %v3759_v63  ;;  %v543_v60 = vmul.u32 40, %v542_v39  ;;  %v1423_v63 = vmul.u32 40, %v1422_v24  ;;  %vm3374_vm15 = vmand %vm3054_vm2, %vm3214_vm6 }
  0xae   : > { %6164 = vmatprep.mubr.msk.f32.mxu0 %vm3775_vm0, %v3680_v2  ;;  %6284 = vmatprep.mubr.msk.f32.mxu1 %vm3775_vm0, %v3760_v6  ;;  %v7585_v2 = vadd.s32 752, %v6884_v50  ;;  %v2817_v6 = vsel %vm2497_vm4, %v2657_v57, %v555_v36  ;;  %vm2257_vm8 = vcmp.ne.s32.totalorder %v1435_v58, 0  ;;  %vm2417_vm9 = vcmp.lt.s32.totalorder %v1435_v58, 0 }
  0xaf   : > { %v2737_v37 = vadd.s32 40, %v1435_v58  ;;  %vm2977_vm10 = vcmp.ge.s32.totalorder %v2817_v6, 2  ;;  %vm3137_vm12 = vcmp.lt.s32.totalorder %v2817_v6, 34  ;;  %vm2577_vm13 = vmand %vm2417_vm9, %vm2257_vm8  ;;  %v544_v52 = vsub.s32 %v7498_v44, %v543_v60 }
  0xb0   : > { %v1424_v51 = vsub.s32 %v7510_v54, %v1423_v63  ;;  %vm3297_vm3 = vmand %vm2977_vm10, %vm3137_vm12  ;;  %v7604_v54 = vsel %vm3374_vm15, 1.0, %v10034_v42  ;;  %v7609_v28 = vmul.u32.u64.low 3435973837, %v7585_v2  ;;  %v7610_v32 = vmul.u32.u64.high 3435973837, %v7585_v2, %v7609_v28 }
  0xb1   : > { %6165 = vmatmul.mubr.msk.f32.gmra.mrb[76].mxu0 %vm3775_vm0, %v3681_v25  ;;  %6285 = vmatmul.mubr.msk.f32.gmra.mrb[76].mxu1 %vm3775_vm0, %v3761_v7  ;;  %v2897_v10 = vsel %vm2577_vm13, %v2737_v37, %v1435_v58  ;;  %vm2176_vm14 = vcmp.ne.s32.totalorder %v544_v52, 0  ;;  %vm2336_vm5 = vcmp.lt.s32.totalorder %v544_v52, 0  ;;  %v2656_v44 = vadd.s32 40, %v544_v52 }
  0xb2   : > { %6167 = vmatprep.mubr.msk.f32.mxu0 %vm3775_vm0, %v3682_v33  ;;  %6287 = vmatprep.mubr.msk.f32.mxu1 %vm3775_vm0, %v3762_v26  ;;  %vm3217_vm11 = vcmp.lt.s32.totalorder %v2897_v10, 34  ;;  %vm2256_vm4 = vcmp.ne.s32.totalorder %v1424_v51, 0  ;;  %vm2416_vm8 = vcmp.lt.s32.totalorder %v1424_v51, 0  ;;  %vm2496_vm2 = vmand %vm2336_vm5, %vm2176_vm14  ;;  %v2736_v17 = vadd.s32 40, %v1424_v51 }
  0xb3   : > { %v2816_v25 = vsel %vm2496_vm2, %v2656_v44, %v544_v52  ;;  %vm2576_vm6 = vmand %vm2416_vm8, %vm2256_vm4  ;;  %v564_v7 = vshrl.u32 %v7598_v14, 5  ;;  %v7613_v33 = vsel %vm3297_vm3, 1.0, %v10034_v42  ;;  %v1456_v36 = vmul.u32 40, %v1455_v3 }
  0xb4   : > { %vm2976_vm9 = vcmp.ge.s32.totalorder %v2816_v25, 2  ;;  %v2896_v26 = vsel %vm2576_vm6, %v2736_v17, %v1424_v51  ;;  %vm3136_vm10 = vcmp.lt.s32.totalorder %v2816_v25, 34  ;;  %vm2179_vm15 = vcmp.ne.s32.totalorder %v577_v34, 0 }
  0xb5   : > { %6168 = vmatmul.mubr.msk.f32.gmra.mrb[78].mxu0 %vm3775_vm0, %v3683_v29  ;;  %6288 = vmatmul.mubr.msk.f32.gmra.mrb[78].mxu1 %vm3775_vm0, %v3763_v22  ;;  %vm3057_vm0 = vcmp.ge.s32.totalorder %v2897_v10, 2  ;;  %vm3056_vm12 = vcmp.ge.s32.totalorder %v2896_v26, 2  ;;  %v565_v13 = vmul.u32 40, %v564_v7  ;;  %vm3216_vm13 = vcmp.lt.s32.totalorder %v2896_v26, 34 }
  0xb6   : > { %vm3377_vm7 = vmand %vm3057_vm0, %vm3217_vm11  ;;  %vm2339_vm14 = vcmp.lt.s32.totalorder %v577_v34, 0  ;;  %v2659_v39 = vadd.s32 40, %v577_v34  ;;  %v1457_v24 = vsub.s32 %v7559_v16, %v1456_v36  ;;  %v1444_v30 = vshrl.u32 %v7610_v32, 5 }
  0xb7   : > { %v7619_v40 = vsel %vm3377_vm7, 1.0, %v10034_v42  ;;  %vm2499_vm3 = vmand %vm2339_vm14, %vm2179_vm15  ;;  %v566_v41 = vsub.s32 %v7577_v56, %v565_v13  ;;  %v261_v29 = vadd.s32 136, %v6884_v50  ;;  %v341_v22 = vadd.s32 776, %v6884_v50 }
  0xb8   : > { %vm3296_vm0 = vmand %vm2976_vm9, %vm3136_vm10  ;;  %v2819_v15 = vsel %vm2499_vm3, %v2659_v39, %v577_v34  ;;  %v7628_v57 = vadd.s32 128, %v6884_v50  ;;  %vm2259_vm8 = vcmp.ne.s32.totalorder %v1457_v24, 0  ;;  %vm2419_vm2 = vcmp.lt.s32.totalorder %v1457_v24, 0 }
  0xb9   : > { %vm7631_vm11 = vmand %vm3056_vm12, %vm3216_vm13  ;;  %vm2979_vm5 = vcmp.ge.s32.totalorder %v2819_v15, 2  ;;  %vm3139_vm4 = vcmp.lt.s32.totalorder %v2819_v15, 34  ;;  %v2739_v56 = vadd.s32 40, %v1457_v24  ;;  %vm2178_vm7 = vcmp.ne.s32.totalorder %v566_v41, 0 }
  0xba   : > { %vm7635_vm6 = vmand %vm2979_vm5, %vm3139_vm4  ;;  %vm2338_vm9 = vcmp.lt.s32.totalorder %v566_v41, 0  ;;  %v2658_v60 = vadd.s32 40, %v566_v41  ;;  %v7640_v63 = vsel %vm3296_vm0, 1.0, %v10034_v42  ;;  %v1445_v1 = vmul.u32 40, %v1444_v30 }
  0xbb   : > { %vm2579_vm10 = vmand %vm2419_vm2, %vm2259_vm8  ;;  %v7642_v49 = vmul.u32.u64.low 3435973837, %v261_v29  ;;  %v7643_v6 = vmul.u32.u64.high 3435973837, %v261_v29, %v7642_v49  ;;  %v7645_v52 = vmul.u32.u64.low 3435973837, %v341_v22  ;;  %v7646_v51 = vmul.u32.u64.high 3435973837, %v341_v22, %v7645_v52 }
  0xbc   : > { %v2899_v37 = vsel %vm2579_vm10, %v2739_v56, %v1457_v24  ;;  %vm2498_vm12 = vmand %vm2338_vm9, %vm2178_vm7  ;;  %v7649_v10 = vadd.s32 768, %v6884_v50  ;;  %v1446_v12 = vsub.s32 %v7585_v2, %v1445_v1  ;;  %v7655_v14 = vsel %vm7631_vm11, 1.0, %v10034_v42 }
  0xbd   : > { %vm3059_vm13 = vcmp.ge.s32.totalorder %v2899_v37, 2  ;;  %vm3219_vm15 = vcmp.lt.s32.totalorder %v2899_v37, 34  ;;  %v2818_v11 = vsel %vm2498_vm12, %v2658_v60, %v566_v41  ;;  %v7660_v44 = vsel %vm7635_vm6, 1.0, %v10034_v42 }
  0xbe   : > { %v7663_v17 = vmul.u32.u64.low 3435973837, %v7628_v57  ;;  %v7664_v23 = vmul.u32.u64.high 3435973837, %v7628_v57, %v7663_v17  ;;  %vm3379_vm14 = vmand %vm3059_vm13, %vm3219_vm15  ;;  %vm2978_vm3 = vcmp.ge.s32.totalorder %v2818_v11, 2  ;;  %vm2258_vm0 = vcmp.ne.s32.totalorder %v1446_v12, 0 }
  0xbf   : > { %vm2418_vm5 = vcmp.lt.s32.totalorder %v1446_v12, 0  ;;  %v2738_v3 = vadd.s32 40, %v1446_v12  ;;  %vm3138_vm4 = vcmp.lt.s32.totalorder %v2818_v11, 34  ;;  %v597_v2 = vshrl.u32 %v7643_v6, 5 }
  0xc0   : > { %vm2578_vm8 = vmand %vm2418_vm5, %vm2258_vm0  ;;  %v1477_v25 = vshrl.u32 %v7646_v51, 5  ;;  %v263_v7 = vadd.s32 152, %v6884_v50  ;;  %v7670_v32 = vmul.u32.u64.low 3435973837, %v7649_v10  ;;  %v7671_v26 = vmul.u32.u64.high 3435973837, %v7649_v10, %v7670_v32 }
  0xc1   : > { %v2898_v28 = vsel %vm2578_vm8, %v2738_v3, %v1446_v12  ;;  %v7674_v34 = vadd.s32 792, %v6884_v50  ;;  %v7677_v36 = vsel %vm3379_vm14, 1.0, %v10034_v42  ;;  %v598_v13 = vmul.u32 40, %v597_v2  ;;  %vm7696_vm6 = vmand %vm2978_vm3, %vm3138_vm4 }
  0xc2   : > { %vm3058_vm11 = vcmp.ge.s32.totalorder %v2898_v28, 2  ;;  %v1478_v39 = vmul.u32 40, %v1477_v25  ;;  %vm3218_vm2 = vcmp.lt.s32.totalorder %v2898_v28, 34  ;;  %v586_v24 = vshrl.u32 %v7664_v23, 5 }
  0xc3   : > { %v7680_v41 = vmul.u32.u64.low 3435973837, %v263_v7  ;;  %v7681_v30 = vmul.u32.u64.high 3435973837, %v263_v7, %v7680_v41  ;;  %v599_v15 = vsub.s32 %v261_v29, %v598_v13  ;;  %v7684_v16 = vadd.s32 144, %v6884_v50  ;;  %vm3378_vm14 = vmand %vm3058_vm11, %vm3218_vm2 }
  0xc4   : > { %v1479_v58 = vsub.s32 %v341_v22, %v1478_v39  ;;  %v7687_v56 = vadd.s32 784, %v6884_v50  ;;  %v587_v60 = vmul.u32 40, %v586_v24  ;;  %v1466_v1 = vshrl.u32 %v7671_v26, 5 }
  0xc5   : > { %v7691_v49 = vmul.u32.u64.low 3435973837, %v7674_v34  ;;  %v7692_v6 = vmul.u32.u64.high 3435973837, %v7674_v34, %v7691_v49  ;;  %vm2181_vm7 = vcmp.ne.s32.totalorder %v599_v15, 0  ;;  %vm2341_vm9 = vcmp.lt.s32.totalorder %v599_v15, 0 }
  0xc6   : > { %v2661_v29 = vadd.s32 40, %v599_v15  ;;  %vm2261_vm10 = vcmp.ne.s32.totalorder %v1479_v58, 0  ;;  %vm2501_vm12 = vmand %vm2341_vm9, %vm2181_vm7  ;;  %vm2421_vm13 = vcmp.lt.s32.totalorder %v1479_v58, 0  ;;  %v2741_v22 = vadd.s32 40, %v1479_v58 }
  0xc7   : > { %v588_v52 = vsub.s32 %v7628_v57, %v587_v60  ;;  %v1467_v51 = vmul.u32 40, %v1466_v1  ;;  %vm2581_vm15 = vmand %vm2421_vm13, %vm2261_vm10  ;;  %v619_v17 = vshrl.u32 %v7681_v30, 5  ;;  %v7711_v2 = vsel %vm7696_vm6, 1.0, %v10034_v42 }
  0xc8   : > { %v2821_v12 = vsel %vm2501_vm12, %v2661_v29, %v599_v15  ;;  %v7703_v11 = vmul.u32.u64.low 3435973837, %v7684_v16  ;;  %v7704_v23 = vmul.u32.u64.high 3435973837, %v7684_v16, %v7703_v11  ;;  %v2901_v3 = vsel %vm2581_vm15, %v2741_v22, %v1479_v58 }
  0xc9   : > { %vm2981_vm3 = vcmp.ge.s32.totalorder %v2821_v12, 2  ;;  %vm3141_vm0 = vcmp.lt.s32.totalorder %v2821_v12, 34  ;;  %vm2180_vm5 = vcmp.ne.s32.totalorder %v588_v52, 0  ;;  %vm3061_vm4 = vcmp.ge.s32.totalorder %v2901_v3, 2 }
  0xca   : > { %vm3221_vm8 = vcmp.lt.s32.totalorder %v2901_v3, 34  ;;  %vm2340_vm7 = vcmp.lt.s32.totalorder %v588_v52, 0  ;;  %v2660_v57 = vadd.s32 40, %v588_v52  ;;  %vm7713_vm9 = vmand %vm2981_vm3, %vm3141_vm0  ;;  %v1468_v28 = vsub.s32 %v7649_v10, %v1467_v51 }
  0xcb   : > { %v620_v32 = vmul.u32 40, %v619_v17  ;;  %v1499_v26 = vshrl.u32 %v7692_v6, 5  ;;  %v7720_v13 = vsel %vm3378_vm14, 1.0, %v10034_v42  ;;  %vm2500_vm11 = vmand %vm2340_vm7, %vm2180_vm5  ;;  %v608_v39 = vshrl.u32 %v7704_v23, 5 }
  0xcc   : > { %v7724_v24 = vmul.u32.u64.low 3435973837, %v7687_v56  ;;  %v7725_v41 = vmul.u32.u64.high 3435973837, %v7687_v56, %v7724_v24  ;;  %vm3381_vm2 = vmand %vm3061_vm4, %vm3221_vm8  ;;  %v2820_v30 = vsel %vm2500_vm11, %v2660_v57, %v588_v52  ;;  %vm2260_vm6 = vcmp.ne.s32.totalorder %v1468_v28, 0 }
  0xcd   : > { %vm2420_vm10 = vcmp.lt.s32.totalorder %v1468_v28, 0  ;;  %v2740_v15 = vadd.s32 40, %v1468_v28  ;;  %vm2980_vm12 = vcmp.ge.s32.totalorder %v2820_v30, 2  ;;  %vm3140_vm13 = vcmp.lt.s32.totalorder %v2820_v30, 34 }
  0xce   : > { %vm2580_vm15 = vmand %vm2420_vm10, %vm2260_vm6  ;;  %v621_v10 = vsub.s32 %v263_v7, %v620_v32  ;;  %v1500_v58 = vmul.u32 40, %v1499_v26  ;;  %v7730_v60 = vsel %vm7713_vm9, 1.0, %v10034_v42  ;;  %v609_v49 = vmul.u32 40, %v608_v39 }
  0xcf   : > { %v2900_v1 = vsel %vm2580_vm15, %v2740_v15, %v1468_v28  ;;  %v265_v6 = vadd.s32 168, %v6884_v50  ;;  %v7734_v37 = vsel %vm3381_vm2, 1.0, %v10034_v42  ;;  %v7737_v29 = vadd.s32 808, %v6884_v50  ;;  %vm7739_vm0 = vmand %vm2980_vm12, %vm3140_vm13 }
  0xd0   : > { %vm3060_vm14 = vcmp.ge.s32.totalorder %v2900_v1, 2  ;;  %vm2183_vm3 = vcmp.ne.s32.totalorder %v621_v10, 0  ;;  %vm2343_vm5 = vcmp.lt.s32.totalorder %v621_v10, 0  ;;  %v2663_v22 = vadd.s32 40, %v621_v10 }
  0xd1   : > { %v1501_v52 = vsub.s32 %v7674_v34, %v1500_v58  ;;  %v610_v51 = vsub.s32 %v7684_v16, %v609_v49  ;;  %vm3220_vm4 = vcmp.lt.s32.totalorder %v2900_v1, 34  ;;  %vm2503_vm8 = vmand %vm2343_vm5, %vm2183_vm3  ;;  %v1488_v12 = vshrl.u32 %v7725_v41, 5 }
  0xd2   : > { %v7746_v17 = vmul.u32.u64.low 3435973837, %v265_v6  ;;  %v7747_v11 = vmul.u32.u64.high 3435973837, %v265_v6, %v7746_v17  ;;  %v2823_v23 = vsel %vm2503_vm8, %v2663_v22, %v621_v10  ;;  %v7752_v34 = vsel %vm7739_vm0, 1.0, %v10034_v42  ;;  %vm3380_vm13 = vmand %vm3060_vm14, %vm3220_vm4 }
  0xd3   : > { %vm2263_vm7 = vcmp.ne.s32.totalorder %v1501_v52, 0  ;;  %vm2423_vm9 = vcmp.lt.s32.totalorder %v1501_v52, 0  ;;  %v2743_v3 = vadd.s32 40, %v1501_v52  ;;  %vm2983_vm11 = vcmp.ge.s32.totalorder %v2823_v23, 2 }
  0xd4   : > { %vm3143_vm2 = vcmp.lt.s32.totalorder %v2823_v23, 34  ;;  %vm2583_vm6 = vmand %vm2423_vm9, %vm2263_vm7  ;;  %vm2182_vm10 = vcmp.ne.s32.totalorder %v610_v51, 0  ;;  %vm2342_vm12 = vcmp.lt.s32.totalorder %v610_v51, 0  ;;  %v2662_v57 = vadd.s32 40, %v610_v51 }
  0xd5   : > { %v2903_v16 = vsel %vm2583_vm6, %v2743_v3, %v1501_v52  ;;  %v1489_v25 = vmul.u32 40, %v1488_v12  ;;  %vm2502_vm5 = vmand %vm2342_vm12, %vm2182_vm10  ;;  %v641_v28 = vshrl.u32 %v7747_v11, 5  ;;  %v264_v32 = vadd.s32 160, %v6884_v50 }
  0xd6   : > { %vm3063_vm15 = vcmp.ge.s32.totalorder %v2903_v16, 2  ;;  %vm3223_vm3 = vcmp.lt.s32.totalorder %v2903_v16, 34  ;;  %vm3303_vm8 = vmand %vm2983_vm11, %vm3143_vm2  ;;  %v2822_v26 = vsel %vm2502_vm5, %v2662_v57, %v610_v51  ;;  %v7766_v30 = vsel %vm3380_vm13, 1.0, %v10034_v42 }
  0xd7   : > { %v1490_v39 = vsub.s32 %v7687_v56, %v1489_v25  ;;  %v7762_v24 = vmul.u32.u64.low 3435973837, %v7737_v29  ;;  %v7763_v41 = vmul.u32.u64.high 3435973837, %v7737_v29, %v7762_v24  ;;  %vm7768_vm14 = vmand %vm3063_vm15, %vm3223_vm3  ;;  %vm2982_vm0 = vcmp.ge.s32.totalorder %v2822_v26, 2 }
  0xd8   : > { %vm3142_vm4 = vcmp.lt.s32.totalorder %v2822_v26, 34  ;;  %v642_v10 = vmul.u32 40, %v641_v28  ;;  %v344_v1 = vadd.s32 800, %v6884_v50  ;;  %v7778_v49 = vsel %vm3303_vm8, 1.0, %v10034_v42 }
  0xd9   : > { %vm7772_vm7 = vmand %vm2982_vm0, %vm3142_vm4  ;;  %vm2262_vm9 = vcmp.ne.s32.totalorder %v1490_v39, 0  ;;  %vm2422_vm11 = vcmp.lt.s32.totalorder %v1490_v39, 0  ;;  %v2742_v56 = vadd.s32 40, %v1490_v39  ;;  %v1521_v12 = vshrl.u32 %v7763_v41, 5 }
  0xda   : > { %vm2582_vm2 = vmand %vm2422_vm11, %vm2262_vm9  ;;  %v643_v7 = vsub.s32 %v265_v6, %v642_v10  ;;  %v7780_v22 = vmul.u32.u64.low 3435973837, %v264_v32  ;;  %v7781_v52 = vmul.u32.u64.high 3435973837, %v264_v32, %v7780_v22  ;;  %v7790_v23 = vsel %vm7768_vm14, 1.0, %v10034_v42 }
  0xdb   : > { %v2902_v51 = vsel %vm2582_vm2, %v2742_v56, %v1490_v39  ;;  %v7784_v17 = vmul.u32.u64.low 3435973837, %v344_v1  ;;  %v7785_v11 = vmul.u32.u64.high 3435973837, %v344_v1, %v7784_v17  ;;  %10093 = vst [vmem:[#allocation2_spill] sm:$0xff] %v7790_v23  ;;  %v7795_v6 = vsel %vm7772_vm7, 1.0, %v10034_v42 }
  0xdc   : > { %vm3062_vm6 = vcmp.ge.s32.totalorder %v2902_v51, 2  ;;  %vm3222_vm10 = vcmp.lt.s32.totalorder %v2902_v51, 34  ;;  %vm2185_vm12 = vcmp.ne.s32.totalorder %v643_v7, 0  ;;  %vm2345_vm13 = vcmp.lt.s32.totalorder %v643_v7, 0  ;;  %10094 = vst [vmem:[#allocation3_spill] sm:$0xff] %v7795_v6 }
  0xdd   : > { %vm3382_vm15 = vmand %vm3062_vm6, %vm3222_vm10  ;;  %v2665_v3 = vadd.s32 40, %v643_v7  ;;  %v1522_v16 = vmul.u32 40, %v1521_v12  ;;  %v630_v25 = vshrl.u32 %v7781_v52, 5  ;;  %v7802_v28 = vadd.s32 184, %v6884_v50 }
  0xde   : > { %v7798_v57 = vsel %vm3382_vm15, 1.0, %v10034_v42  ;;  %vm2505_vm3 = vmand %vm2345_vm13, %vm2185_vm12  ;;  %v7805_v26 = vadd.s32 824, %v6884_v50  ;;  %v1510_v41 = vshrl.u32 %v7785_v11, 5  ;;  %v7810_v15 = vadd.s32 176, %v6884_v50 }
  0xdf   : > { %10095 = vst [vmem:[#allocation4_spill] sm:$0xff] %v7798_v57  ;;  %v2825_v39 = vsel %vm2505_vm3, %v2665_v3, %v643_v7  ;;  %v1523_v24 = vsub.s32 %v7737_v29, %v1522_v16  ;;  %v631_v10 = vmul.u32 40, %v630_v25  ;;  %v7813_v58 = vadd.s32 816, %v6884_v50  ;;  %v7821_v29 = vld [vmem:[%s10032_s2] ss:$0 sm:$0xff] }
  0xe0   : > { %vm2985_vm5 = vcmp.ge.s32.totalorder %v2825_v39, 2  ;;  %v7816_v56 = vadd.s32 200, %v6884_v50  ;;  %v1511_v52 = vmul.u32 40, %v1510_v41  ;;  %vm3145_vm0 = vcmp.lt.s32.totalorder %v2825_v39, 34 }
  0xe1   : > { %10096 = vst [vmem:[#allocation5_spill] sm:$0xff] %v7813_v58  ;;  %vm2265_vm8 = vcmp.ne.s32.totalorder %v1523_v24, 0  ;;  %vm2425_vm14 = vcmp.lt.s32.totalorder %v1523_v24, 0  ;;  %v2745_v22 = vadd.s32 40, %v1523_v24  ;;  %v632_v7 = vsub.s32 %v264_v32, %v631_v10  ;;  %vm7835_vm6 = vmand %vm2985_vm5, %vm3145_vm0 }
  0xe2   : > { %10097 = vst [vmem:[#allocation6_spill] sm:$0xff] %v7816_v56  ;;  %vm2585_vm4 = vmand %vm2425_vm14, %vm2265_vm8  ;;  %v7824_v51 = vmul.u32.u64.low 3435973837, %v7802_v28  ;;  %v7825_v12 = vmul.u32.u64.high 3435973837, %v7802_v28, %v7824_v51  ;;  %v1512_v11 = vsub.s32 %v344_v1, %v1511_v52 }
  0xe3   : > { %v2905_v17 = vsel %vm2585_vm4, %v2745_v22, %v1523_v24  ;;  %v7828_v3 = vmul.u32.u64.low 3435973837, %v7805_v26  ;;  %v7829_v16 = vmul.u32.u64.high 3435973837, %v7805_v26, %v7828_v3  ;;  %vm2184_vm11 = vcmp.ne.s32.totalorder %v632_v7, 0 }
  0xe4   : > { %vm3065_vm7 = vcmp.ge.s32.totalorder %v2905_v17, 2  ;;  %vm3225_vm9 = vcmp.lt.s32.totalorder %v2905_v17, 34  ;;  %vm2344_vm2 = vcmp.lt.s32.totalorder %v632_v7, 0  ;;  %v2664_v24 = vadd.s32 40, %v632_v7 }
  0xe5   : > { %vm2264_vm10 = vcmp.ne.s32.totalorder %v1512_v11, 0  ;;  %vm2504_vm12 = vmand %vm2344_vm2, %vm2184_vm11  ;;  %vm2424_vm13 = vcmp.lt.s32.totalorder %v1512_v11, 0  ;;  %v7842_v51 = vadd.s32 840, %v6884_v50  ;;  %v2744_v58 = vadd.s32 40, %v1512_v11 }
  0xe6   : > { %vm7846_vm15 = vmand %vm3065_vm7, %vm3225_vm9 }
  0xe7   : > { %10100 = vst [vmem:[#allocation7_spill] sm:$0xff] %v7842_v51  ;;  %vm7851_vm8 = vmand %vm2424_vm13, %vm2264_vm10 }
  0xe8   : > { %v2904_v39 = vsel %vm7851_vm8, %v2744_v58, %v1512_v11  ;;  %v663_v11 = vshrl.u32 %v7825_v12, 5 }
  0xe9   : > { %vm3064_vm0 = vcmp.ge.s32.totalorder %v2904_v39, 2  ;;  %vm3224_vm4 = vcmp.lt.s32.totalorder %v2904_v39, 34 }
  0xea   : > { %vm7928_vm7 = vmand %vm3064_vm0, %vm3224_vm4 }
  0xec   : > { %v6052_v25 = vpop.f32.mrb[0].mxu0  ;;  %v6172_v41 = vpop.f32.mrb[0].mxu1 }
  0xed   : > { %v4328_v42 = vadd.f32 %v6052_v25, %v7821_v29  ;;  %v4728_v32 = vadd.f32 %v6172_v41, %v7821_v29  ;;  %v4322_v10 = vpop.f32.mrb[1].mxu0  ;;  %v4722_v56 = vpop.f32.mrb[1].mxu1  ;;  %v2824_v41 = vsel %vm2504_vm12, %v2664_v24, %v632_v7 }
  0xee   : > { %v4323_v22 = vadd.f32 %v7821_v29, %v4322_v10  ;;  %v4723_v52 = vadd.f32 %v7821_v29, %v4722_v56  ;;  %vm2984_vm3 = vcmp.ge.s32.totalorder %v2824_v41, 2  ;;  %vm3144_vm5 = vcmp.lt.s32.totalorder %v2824_v41, 34 }
  0xef   : > { %v5122_v3 = vmax.f32 %v4328_v42, 0.0  ;;  %v5202_v25 = vmax.f32 %v4728_v32, 0.0  ;;  %vm7859_vm14 = vmand %vm2984_vm3, %vm3144_vm5 }
  0xf0   : > { %v5121_v57 = vmax.f32 %v4323_v22, 0.0  ;;  %v5201_v6 = vmax.f32 %v4723_v52, 0.0  ;;  %v6055_v10 = vpop.f32.mrb[2].mxu0  ;;  %v6175_v56 = vpop.f32.mrb[2].mxu1 }
  0xf1   : > { %v5282_v17 = vmul.f32 %v5122_v3, %v7024_v0  ;;  %v5362_v32 = vmul.f32 %v5202_v25, %v7081_v38  ;;  %v4338_v7 = vadd.f32 %v6055_v10, %v7821_v29  ;;  %v4738_v24 = vadd.f32 %v6175_v56, %v7821_v29  ;;  %v4332_v22 = vpop.f32.mrb[3].mxu0  ;;  %v4732_v52 = vpop.f32.mrb[3].mxu1 }
  0xf2   : > { %v5281_v41 = vmul.f32 %v5121_v57, %v7102_v53  ;;  %v5361_v23 = vmul.f32 %v5201_v6, %v7115_v59  ;;  %v4333_v0 = vadd.f32 %v7821_v29, %v4332_v22  ;;  %v4733_v38 = vadd.f32 %v7821_v29, %v4732_v52 }
  0xf3   : > { %5442 = vst.msk [vmem:[%s6806_s30 + $0x58] sm:$0xff] %vm222_vm1, %v5282_v17  ;;  %5522 = vst.msk [vmem:[%s6806_s30 + $0x2d8] sm:$0xff] %vm222_vm1, %v5362_v32  ;;  %v5124_v3 = vmax.f32 %v4338_v7, 0.0  ;;  %v5204_v25 = vmax.f32 %v4738_v24, 0.0  ;;  %v10107_v10 = vmov 0.0  }
  0xf4   : > { %v7874_v56 = vsel %vm7835_vm6, 1.0, %v10107_v10  ;;  %v7879_v53 = vsel %vm7846_vm15, 1.0, %v10107_v10  ;;  %5441 = vst.msk [vmem:[%s6806_s30 + $0x50] sm:$0xff] %vm222_vm1, %v5281_v41  ;;  %5521 = vst.msk [vmem:[%s6806_s30 + $0x2d0] sm:$0xff] %vm222_vm1, %v5361_v23  ;;  %v5123_v59 = vmax.f32 %v4333_v0, 0.0  ;;  %v5203_v6 = vmax.f32 %v4733_v38, 0.0 }
  0xf5   : > { %v6058_v57 = vpop.f32.mrb[4].mxu0  ;;  %v6178_v17 = vpop.f32.mrb[4].mxu1  ;;  %v7888_v1 = vsel %vm7859_vm14, 1.0, %v10107_v10  ;;  %v5284_v32 = vmul.f32 %v5124_v3, %v7155_v18  ;;  %v5364_v7 = vmul.f32 %v5204_v25, %v7160_v19  ;;  %v1543_v3 = vshrl.u32 %v7829_v16, 5 }
  0xf6   : > { %v4348_v23 = vadd.f32 %v6058_v57, %v7821_v29  ;;  %v4748_v24 = vadd.f32 %v6178_v17, %v7821_v29  ;;  %v4342_v22 = vpop.f32.mrb[5].mxu0  ;;  %v4742_v52 = vpop.f32.mrb[5].mxu1  ;;  %v5283_v41 = vmul.f32 %v5123_v59, %v7206_v47  ;;  %v5363_v51 = vmul.f32 %v5203_v6, %v7231_v61 }
  0xf7   : > { %v4343_v0 = vadd.f32 %v7821_v29, %v4342_v22  ;;  %v4743_v58 = vadd.f32 %v7821_v29, %v4742_v52  ;;  %5444 = vst.msk [vmem:[%s6806_s30 + $0x68] sm:$0xff] %vm222_vm1, %v5284_v32  ;;  %5524 = vst.msk [vmem:[%s6806_s30 + $0x2e8] sm:$0xff] %vm222_vm1, %v5364_v7  ;;  %v1544_v22 = vmul.u32 40, %v1543_v3 }
  0xf8   : > { %v5126_v18 = vmax.f32 %v4348_v23, 0.0  ;;  %v5206_v19 = vmax.f32 %v4748_v24, 0.0  ;;  %5443 = vst.msk [vmem:[%s6806_s30 + $0x60] sm:$0xff] %vm222_vm1, %v5283_v41  ;;  %5523 = vst.msk [vmem:[%s6806_s30 + $0x2e0] sm:$0xff] %vm222_vm1, %v5363_v51  ;;  %v6061_v42 = vpop.f32.mrb[6].mxu0  ;;  %v6181_v38 = vpop.f32.mrb[6].mxu1 }
  0xf9   : > { %v5125_v47 = vmax.f32 %v4343_v0, 0.0  ;;  %v5205_v61 = vmax.f32 %v4743_v58, 0.0  ;;  %v4358_v12 = vadd.f32 %v6061_v42, %v7821_v29  ;;  %v4758_v6 = vadd.f32 %v6181_v38, %v7821_v29  ;;  %v4352_v57 = vpop.f32.mrb[7].mxu0  ;;  %v4752_v17 = vpop.f32.mrb[7].mxu1 }
  0xfa   : > { %v5286_v25 = vmul.f32 %v5126_v18, %v7244_v4  ;;  %v5366_v59 = vmul.f32 %v5206_v19, %v7247_v5  ;;  %v4353_v23 = vadd.f32 %v7821_v29, %v4352_v57  ;;  %v4753_v16 = vadd.f32 %v7821_v29, %v4752_v17 }
  0xfb   : > { %v5285_v32 = vmul.f32 %v5125_v47, %v7310_v43  ;;  %v5365_v7 = vmul.f32 %v5205_v61, %v7330_v62  ;;  %v5128_v4 = vmax.f32 %v4358_v12, 0.0  ;;  %v5208_v5 = vmax.f32 %v4758_v6, 0.0 }
  0xfc   : > { %5446 = vst.msk [vmem:[%s6806_s30 + $0x78] sm:$0xff] %vm222_vm1, %v5286_v25  ;;  %5526 = vst.msk [vmem:[%s6806_s30 + $0x2f8] sm:$0xff] %vm222_vm1, %v5366_v59  ;;  %v664_v24 = vmul.u32 40, %v663_v11  ;;  %v5127_v52 = vmax.f32 %v4353_v23, 0.0  ;;  %v5207_v43 = vmax.f32 %v4753_v16, 0.0  ;;  %v6064_v62 = vpop.f32.mrb[8].mxu0  ;;  %v7959_v17 = vsub.s32 %v7805_v26, %v1544_v22 }
  0xfd   : > { %5445 = vst.msk [vmem:[%s6806_s30 + $0x70] sm:$0xff] %vm222_vm1, %v5285_v32  ;;  %5525 = vst.msk [vmem:[%s6806_s30 + $0x2f0] sm:$0xff] %vm222_vm1, %v5365_v7  ;;  %v6184_v41 = vpop.f32.mrb[8].mxu1  ;;  %v7933_v0 = vmul.u32.u64.low 3435973837, %v7810_v15  ;;  %v7934_v58 = vmul.u32.u64.high 3435973837, %v7810_v15, %v7933_v0  ;;  %v5288_v18 = vmul.f32 %v5128_v4, %v7344_v8  ;;  %v5368_v19 = vmul.f32 %v5208_v5, %v7349_v9  ;;  %v4362_v61 = vpop.f32.mrb[9].mxu0 }
  0xfe   : > { %v4368_v11 = vadd.f32 %v6064_v62, %v7821_v29  ;;  %v4768_v47 = vadd.f32 %v6184_v41, %v7821_v29  ;;  %v4762_v39 = vpop.f32.mrb[9].mxu1  ;;  %v5287_v42 = vmul.f32 %v5127_v52, %v7406_v45  ;;  %v5367_v38 = vmul.f32 %v5207_v43, %v7439_v35 }
  0xff   : > { %v4363_v3 = vadd.f32 %v7821_v29, %v4362_v61  ;;  %v4763_v25 = vadd.f32 %v7821_v29, %v4762_v39  ;;  %5448 = vst.msk [vmem:[%s6806_s30 + $0x88] sm:$0xff] %vm222_vm1, %v5288_v18  ;;  %5528 = vst.msk [vmem:[%s6806_s30 + $0x308] sm:$0xff] %vm222_vm1, %v5368_v19  ;;  %v7951_v59 = vsel %vm7928_vm7, 1.0, %v10107_v10  ;;  %v665_v12 = vsub.s32 %v7802_v28, %v664_v24 }
 0x100   : > { %v5130_v8 = vmax.f32 %v4368_v11, 0.0  ;;  %v5210_v9 = vmax.f32 %v4768_v47, 0.0  ;;  %5447 = vst.msk [vmem:[%s6806_s30 + $0x80] sm:$0xff] %vm222_vm1, %v5287_v42  ;;  %5527 = vst.msk [vmem:[%s6806_s30 + $0x300] sm:$0xff] %vm222_vm1, %v5367_v38  ;;  %v6067_v6 = vpop.f32.mrb[10].mxu0  ;;  %v6187_v57 = vpop.f32.mrb[10].mxu1 }
 0x101   : > { %v5129_v45 = vmax.f32 %v4363_v3, 0.0  ;;  %v5209_v35 = vmax.f32 %v4763_v25, 0.0  ;;  %v7962_v32 = vadd.s32 192, %v6884_v50  ;;  %v4378_v23 = vadd.f32 %v6067_v6, %v7821_v29  ;;  %v4372_v4 = vpop.f32.mrb[11].mxu0  ;;  %v4772_v5 = vpop.f32.mrb[11].mxu1 }
 0x102   : > { %v5290_v7 = vmul.f32 %v5130_v8, %v7455_v20  ;;  %v5370_v28 = vmul.f32 %v5210_v9, %v7460_v21  ;;  %v4778_v16 = vadd.f32 %v6187_v57, %v7821_v29  ;;  %v4373_v22 = vadd.f32 %v7821_v29, %v4372_v4 }
 0x103   : > { %v5289_v24 = vmul.f32 %v5129_v45, %v7478_v31  ;;  %v5369_v26 = vmul.f32 %v5209_v35, %v7503_v48  ;;  %v4773_v52 = vadd.f32 %v7821_v29, %v4772_v5  ;;  %v5132_v20 = vmax.f32 %v4378_v23, 0.0 }
 0x104   : > { %5450 = vst.msk [vmem:[%s6806_s30 + $0x98] sm:$0xff] %vm222_vm1, %v5290_v7  ;;  %5530 = vst.msk [vmem:[%s6806_s30 + $0x318] sm:$0xff] %vm222_vm1, %v5370_v28  ;;  %v5212_v21 = vmax.f32 %v4778_v16, 0.0  ;;  %vm2187_vm9 = vcmp.ne.s32.totalorder %v665_v12, 0  ;;  %vm2347_vm11 = vcmp.lt.s32.totalorder %v665_v12, 0  ;;  %v5131_v43 = vmax.f32 %v4373_v22, 0.0 }
 0x105   : > { %5449 = vst.msk [vmem:[%s6806_s30 + $0x90] sm:$0xff] %vm222_vm1, %v5289_v24  ;;  %5529 = vst.msk [vmem:[%s6806_s30 + $0x310] sm:$0xff] %vm222_vm1, %v5369_v26  ;;  %v5211_v31 = vmax.f32 %v4773_v52, 0.0  ;;  %v6070_v48 = vpop.f32.mrb[12].mxu0  ;;  %v6190_v62 = vpop.f32.mrb[12].mxu1  ;;  %v2667_v41 = vadd.s32 40, %v665_v12  ;;  %v5292_v0 = vmul.f32 %v5132_v20, %v7515_v55 }
 0x106   : > { %v652_v51 = vshrl.u32 %v7934_v58, 5  ;;  %v5372_v18 = vmul.f32 %v5212_v21, %v7555_v27  ;;  %v4388_v19 = vadd.f32 %v6070_v48, %v7821_v29  ;;  %v4788_v11 = vadd.f32 %v6190_v62, %v7821_v29  ;;  %v4382_v47 = vpop.f32.mrb[13].mxu0  ;;  %v4782_v61 = vpop.f32.mrb[13].mxu1  ;;  %vm7987_vm2 = vmand %vm2347_vm11, %vm2187_vm9 }
 0x107   : > { %v5291_v58 = vmul.f32 %v5131_v43, %v7601_v46  ;;  %v5371_v55 = vmul.f32 %v5211_v31, %v7604_v54  ;;  %v4383_v27 = vadd.f32 %v7821_v29, %v4382_v47  ;;  %v4783_v42 = vadd.f32 %v7821_v29, %v4782_v61  ;;  %5452 = vst.msk [vmem:[%s6806_s30 + $0xa8] sm:$0xff] %vm222_vm1, %v5292_v0 }
 0x108   : > { %5532 = vst.msk [vmem:[%s6806_s30 + $0x328] sm:$0xff] %vm222_vm1, %v5372_v18  ;;  %v5134_v38 = vmax.f32 %v4388_v19, 0.0  ;;  %v5214_v3 = vmax.f32 %v4788_v11, 0.0  ;;  %vm2267_vm6 = vcmp.ne.s32.totalorder %v7959_v17, 0  ;;  %v8001_v25 = vadd.s32 832, %v6884_v50  ;;  %v6073_v8 = vpop.f32.mrb[14].mxu0 }
 0x109   : > { %5451 = vst.msk [vmem:[%s6806_s30 + $0xa0] sm:$0xff] %vm222_vm1, %v5291_v58  ;;  %5531 = vst.msk [vmem:[%s6806_s30 + $0x320] sm:$0xff] %vm222_vm1, %v5371_v55  ;;  %v5133_v46 = vmax.f32 %v4383_v27, 0.0  ;;  %v5213_v54 = vmax.f32 %v4783_v42, 0.0  ;;  %v6193_v9 = vpop.f32.mrb[14].mxu1  ;;  %v2827_v45 = vsel %vm7987_vm2, %v2667_v41, %v665_v12  ;;  %vm2427_vm10 = vcmp.lt.s32.totalorder %v7959_v17, 0 }
 0x10a   : > { %v5294_v35 = vmul.f32 %v5134_v38, %v7613_v33  ;;  %v5374_v6 = vmul.f32 %v5214_v3, %v7619_v40  ;;  %v4398_v57 = vadd.f32 %v6073_v8, %v7821_v29  ;;  %v4798_v7 = vadd.f32 %v6193_v9, %v7821_v29  ;;  %v4392_v28 = vpop.f32.mrb[15].mxu0  ;;  %v4792_v23 = vpop.f32.mrb[15].mxu1  ;;  %vm8031_vm15 = vmand %vm2427_vm10, %vm2267_vm6 }
 0x10b   : > { %v5293_v16 = vmul.f32 %v5133_v46, %v7640_v63  ;;  %v5373_v4 = vmul.f32 %v5213_v54, %v7655_v14  ;;  %v4393_v12 = vadd.f32 %v7821_v29, %v4392_v28  ;;  %v4793_v5 = vadd.f32 %v7821_v29, %v4792_v23  ;;  %v10118_v28 = vld [vmem:[#allocation2_spill] sm:$0xff] }
 0x10c   : > { %5454 = vst.msk [vmem:[%s6806_s30 + $0xb8] sm:$0xff] %vm222_vm1, %v5294_v35  ;;  %5534 = vst.msk [vmem:[%s6806_s30 + $0x338] sm:$0xff] %vm222_vm1, %v5374_v6  ;;  %v5136_v33 = vmax.f32 %v4398_v57, 0.0  ;;  %v5216_v40 = vmax.f32 %v4798_v7, 0.0  ;;  %vm2987_vm12 = vcmp.ge.s32.totalorder %v2827_v45, 2  ;;  %v2747_v24 = vadd.s32 40, %v7959_v17 }
 0x10d   : > { %5453 = vst.msk [vmem:[%s6806_s30 + $0xb0] sm:$0xff] %vm222_vm1, %v5293_v16  ;;  %5533 = vst.msk [vmem:[%s6806_s30 + $0x330] sm:$0xff] %vm222_vm1, %v5373_v4  ;;  %v5135_v63 = vmax.f32 %v4393_v12, 0.0  ;;  %v5215_v26 = vmax.f32 %v4793_v5, 0.0  ;;  %v6076_v14 = vpop.f32.mrb[16].mxu0  ;;  %v6196_v22 = vpop.f32.mrb[16].mxu1 }
 0x10e   : > { %vm3147_vm13 = vcmp.lt.s32.totalorder %v2827_v45, 34  ;;  %v653_v20 = vmul.u32 40, %v652_v51  ;;  %v5296_v21 = vmul.f32 %v5136_v33, %v7660_v44  ;;  %v5376_v43 = vmul.f32 %v5216_v40, %v7677_v36  ;;  %v4402_v62 = vpop.f32.mrb[17].mxu0  ;;  %v4802_v41 = vpop.f32.mrb[17].mxu1  ;;  %v10119_v33 = vld [vmem:[#allocation3_spill] sm:$0xff] }
 0x10f   : > { %v4408_v31 = vadd.f32 %v6076_v14, %v7821_v29  ;;  %v4808_v48 = vadd.f32 %v6196_v22, %v7821_v29  ;;  %v5295_v0 = vmul.f32 %v5135_v63, %v7711_v2  ;;  %v5375_v18 = vmul.f32 %v5215_v26, %v7720_v13  ;;  %vm8057_vm3 = vmand %vm2987_vm12, %vm3147_vm13 }
 0x110   : > { %v4403_v19 = vadd.f32 %v7821_v29, %v4402_v62  ;;  %v4803_v51 = vadd.f32 %v7821_v29, %v4802_v41  ;;  %5456 = vst.msk [vmem:[%s6806_s30 + $0xc8] sm:$0xff] %vm222_vm1, %v5296_v21  ;;  %5536 = vst.msk [vmem:[%s6806_s30 + $0x348] sm:$0xff] %vm222_vm1, %v5376_v43  ;;  %v2907_v11 = vsel %vm8031_vm15, %v2747_v24, %v7959_v17  ;;  %v6079_v61 = vpop.f32.mrb[18].mxu0  ;;  %v6199_v39 = vpop.f32.mrb[18].mxu1  ;;  %v3467_v9 = vsel %vm8057_vm3, 1.0, %v10107_v10  ;;  %v10120_v24 = vld [vmem:[#allocation4_spill] sm:$0xff] }
 0x111   : > { %v5138_v44 = vmax.f32 %v4408_v31, 0.0  ;;  %v5218_v36 = vmax.f32 %v4808_v48, 0.0  ;;  %v654_v47 = vsub.s32 %v7810_v15, %v653_v20  ;;  %5455 = vst.msk [vmem:[%s6806_s30 + $0xc0] sm:$0xff] %vm222_vm1, %v5295_v0  ;;  %5535 = vst.msk [vmem:[%s6806_s30 + $0x340] sm:$0xff] %vm222_vm1, %v5375_v18  ;;  %vm3067_vm5 = vcmp.ge.s32.totalorder %v2907_v11, 2  ;;  %v4412_v42 = vpop.f32.mrb[19].mxu0 }
 0x112   : > { %v5137_v2 = vmax.f32 %v4403_v19, 0.0  ;;  %v5217_v13 = vmax.f32 %v4803_v51, 0.0  ;;  %vm3227_vm8 = vcmp.lt.s32.totalorder %v2907_v11, 34  ;;  %v4418_v55 = vadd.f32 %v6079_v61, %v7821_v29  ;;  %v4812_v38 = vpop.f32.mrb[19].mxu1 }
 0x113   : > { %v5298_v15 = vmul.f32 %v5138_v44, %v7730_v60  ;;  %v5378_v17 = vmul.f32 %v5218_v36, %v7734_v37  ;;  %v4818_v27 = vadd.f32 %v6199_v39, %v7821_v29  ;;  %v4413_v54 = vadd.f32 %v7821_v29, %v4412_v42  ;;  %vm8082_vm0 = vmand %vm3067_vm5, %vm3227_vm8  ;;  %v10122_v39 = vld [vmem:[#allocation6_spill] sm:$0xff] }
 0x114   : > { %v5297_v3 = vmul.f32 %v5137_v2, %v7752_v34  ;;  %v5377_v46 = vmul.f32 %v5217_v13, %v7766_v30  ;;  %v4813_v8 = vadd.f32 %v7821_v29, %v4812_v38  ;;  %v5140_v60 = vmax.f32 %v4418_v55, 0.0  ;;  %v6082_v45 = vpop.f32.mrb[20].mxu0  ;;  %v6202_v35 = vpop.f32.mrb[20].mxu1  ;;  %v10121_v2 = vld [vmem:[#allocation5_spill] sm:$0xff] }
 0x115   : > { %5458 = vst.msk [vmem:[%s6806_s30 + $0xd8] sm:$0xff] %vm222_vm1, %v5298_v15  ;;  %5538 = vst.msk [vmem:[%s6806_s30 + $0x358] sm:$0xff] %vm222_vm1, %v5378_v17  ;;  %v5220_v37 = vmax.f32 %v4818_v27, 0.0  ;;  %vm2186_vm14 = vcmp.ne.s32.totalorder %v654_v47, 0  ;;  %v5139_v34 = vmax.f32 %v4413_v54, 0.0  ;;  %vm2346_vm4 = vcmp.lt.s32.totalorder %v654_v47, 0 }
 0x116   : > { %5457 = vst.msk [vmem:[%s6806_s30 + $0xd0] sm:$0xff] %vm222_vm1, %v5297_v3  ;;  %5537 = vst.msk [vmem:[%s6806_s30 + $0x350] sm:$0xff] %vm222_vm1, %v5377_v46  ;;  %v5219_v30 = vmax.f32 %v4813_v8, 0.0  ;;  %v2666_v57 = vadd.s32 40, %v654_v47  ;;  %v5300_v7 = vmul.f32 %v5140_v60, %v7778_v49  ;;  %v4428_v16 = vadd.f32 %v6082_v45, %v7821_v29  ;;  %v4422_v12 = vpop.f32.mrb[21].mxu0  ;;  %v4822_v5 = vpop.f32.mrb[21].mxu1 }
 0x117   : > { %v5380_v23 = vmul.f32 %v5220_v37, %v10118_v28  ;;  %v4828_v4 = vadd.f32 %v6202_v35, %v7821_v29  ;;  %vm2506_vm7 = vmand %vm2346_vm4, %vm2186_vm14  ;;  %v5299_v40 = vmul.f32 %v5139_v34, %v10119_v33  ;;  %v4423_v26 = vadd.f32 %v7821_v29, %v4422_v12  ;;  %v10123_v60 = vld [vmem:[#allocation7_spill] sm:$0xff] }
 0x118   : > { %v5379_v63 = vmul.f32 %v5219_v30, %v10120_v24  ;;  %v4823_v49 = vadd.f32 %v7821_v29, %v4822_v5  ;;  %5460 = vst.msk [vmem:[%s6806_s30 + $0xe8] sm:$0xff] %vm222_vm1, %v5300_v7  ;;  %v5142_v14 = vmax.f32 %v4428_v16, 0.0  ;;  %v3547_v52 = vsel %vm8082_vm0, 1.0, %v10107_v10  ;;  %v6085_v31 = vpop.f32.mrb[22].mxu0  ;;  %v6205_v48 = vpop.f32.mrb[22].mxu1 }
 0x119   : > { %5540 = vst.msk [vmem:[%s6806_s30 + $0x368] sm:$0xff] %vm222_vm1, %v5380_v23  ;;  %v5222_v22 = vmax.f32 %v4828_v4, 0.0  ;;  %v2826_v20 = vsel %vm2506_vm7, %v2666_v57, %v654_v47  ;;  %5459 = vst.msk [vmem:[%s6806_s30 + $0xe0] sm:$0xff] %vm222_vm1, %v5299_v40  ;;  %v5141_v21 = vmax.f32 %v4423_v26, 0.0  ;;  %v4438_v0 = vadd.f32 %v6085_v31, %v7821_v29  ;;  %v4432_v19 = vpop.f32.mrb[23].mxu0  ;;  %v4832_v51 = vpop.f32.mrb[23].mxu1 }
 0x11a   : > { %5539 = vst.msk [vmem:[%s6806_s30 + $0x360] sm:$0xff] %vm222_vm1, %v5379_v63  ;;  %v5221_v43 = vmax.f32 %v4823_v49, 0.0  ;;  %vm2986_vm9 = vcmp.ge.s32.totalorder %v2826_v20, 2  ;;  %vm3146_vm11 = vcmp.lt.s32.totalorder %v2826_v20, 34  ;;  %v5302_v62 = vmul.f32 %v5142_v14, %v7874_v56 }
 0x11b   : > { %v5382_v41 = vmul.f32 %v5222_v22, %v7879_v53  ;;  %v4838_v18 = vadd.f32 %v6205_v48, %v7821_v29  ;;  %vm3306_vm2 = vmand %vm2986_vm9, %vm3146_vm11  ;;  %v5301_v44 = vmul.f32 %v5141_v21, %v7888_v1  ;;  %v4433_v47 = vadd.f32 %v7821_v29, %v4432_v19 }
 0x11c   : > { %v5381_v36 = vmul.f32 %v5221_v43, %v7951_v59  ;;  %v3466_v11 = vsel %vm3306_vm2, 1.0, %v10107_v10  ;;  %5462 = vst.msk [vmem:[%s6806_s30 + $0xf8] sm:$0xff] %vm222_vm1, %v5302_v62  ;;  %v5144_v56 = vmax.f32 %v4438_v0, 0.0  ;;  %v8127_v59 = vadd.f32 %v7821_v29, %v4832_v51  ;;  %v6088_v17 = vpop.f32.mrb[24].mxu0  ;;  %v6208_v55 = vpop.f32.mrb[24].mxu1 }
 0x11d   : > { %5542 = vst.msk [vmem:[%s6806_s30 + $0x378] sm:$0xff] %vm222_vm1, %v5382_v41  ;;  %v5224_v53 = vmax.f32 %v4838_v18, 0.0  ;;  %v8119_v13 = vmul.u32.u64.low 3435973837, %v10121_v2  ;;  %v8120_v61 = vmul.u32.u64.high 3435973837, %v10121_v2, %v8119_v13  ;;  %5461 = vst.msk [vmem:[%s6806_s30 + $0xf0] sm:$0xff] %vm222_vm1, %v5301_v44  ;;  %v5143_v1 = vmax.f32 %v4433_v47, 0.0 }
 0x11e   : > { %5541 = vst.msk [vmem:[%s6806_s30 + $0x370] sm:$0xff] %vm222_vm1, %v5381_v36  ;;  %v8130_v58 = vmul.u32.u64.low 3435973837, %v10122_v39  ;;  %v8131_v15 = vmul.u32.u64.high 3435973837, %v10122_v39, %v8130_v58  ;;  %v5304_v27 = vmul.f32 %v5144_v56, %v3467_v9  ;;  %v8134_v38 = vadd.f32 %v6088_v17, %v7821_v29  ;;  %v4442_v3 = vpop.f32.mrb[25].mxu0  ;;  %v4842_v46 = vpop.f32.mrb[25].mxu1 }
 0x11f   : > { %v5384_v42 = vmul.f32 %v5224_v53, %v3547_v52  ;;  %v8137_v54 = vadd.s32 216, %v6884_v50  ;;  %v5303_v8 = vmul.f32 %v5143_v1, %v3466_v11  ;;  %v8144_v30 = vadd.f32 %v6208_v55, %v7821_v29 }
 0x120   : > { %v8140_v37 = vmul.u32.u64.low 3435973837, %v10123_v60  ;;  %v8141_v34 = vmul.u32.u64.high 3435973837, %v10123_v60, %v8140_v37  ;;  %5464 = vst.msk [vmem:[%s6806_s30 + $0x108] sm:$0xff] %vm222_vm1, %v5304_v27  ;;  %v1532_v9 = vshrl.u32 %v8120_v61, 5  ;;  %v5223_v45 = vmax.f32 %v8127_v59, 0.0  ;;  %v6091_v16 = vpop.f32.mrb[26].mxu0 }
 0x121   : > { %5544 = vst.msk [vmem:[%s6806_s30 + $0x388] sm:$0xff] %vm222_vm1, %v5384_v42  ;;  %v8153_v35 = vadd.f32 %v7821_v29, %v4442_v3  ;;  %v8156_v6 = vadd.s32 856, %v6884_v50  ;;  %5463 = vst.msk [vmem:[%s6806_s30 + $0x100] sm:$0xff] %vm222_vm1, %v5303_v8  ;;  %v685_v57 = vshrl.u32 %v8131_v15, 5  ;;  %v8166_v23 = vadd.f32 %v7821_v29, %v4842_v46  ;;  %v8168_v4 = vpop.f32.mrb[26].mxu1  ;;  %v8175_v24 = vpop.f32.mrb[27].mxu0 }
 0x122   : > { %v8162_v7 = vmul.u32.u64.low 3435973837, %v7962_v32  ;;  %v8163_v28 = vmul.u32.u64.high 3435973837, %v7962_v32, %v8162_v7  ;;  %v1533_v12 = vmul.u32 40, %v1532_v9  ;;  %v5146_v5 = vmax.f32 %v8134_v38, 0.0  ;;  %v8177_v63 = vpop.f32.mrb[27].mxu1 }
 0x123   : > { %v8172_v33 = vmul.u32.u64.low 3435973837, %v8001_v25  ;;  %v8173_v40 = vmul.u32.u64.high 3435973837, %v8001_v25, %v8172_v33  ;;  %v686_v26 = vmul.u32 40, %v685_v57  ;;  %v1565_v49 = vshrl.u32 %v8141_v34, 5 }
 0x124   : > { %v5226_v14 = vmax.f32 %v8144_v30, 0.0  ;;  %v5145_v22 = vmax.f32 %v8153_v35, 0.0  ;;  %v1534_v52 = vsub.s32 %v10121_v2, %v1533_v12  ;;  %v5225_v20 = vmax.f32 %v8166_v23, 0.0  ;;  %v8193_v0 = vpop.f32.mrb[28].mxu0  ;;  %v8195_v18 = vpop.f32.mrb[28].mxu1 }
 0x125   : > { %v8185_v21 = vmul.u32.u64.low 3435973837, %v8137_v54  ;;  %v8186_v43 = vmul.u32.u64.high 3435973837, %v8137_v54, %v8185_v21  ;;  %v687_v31 = vsub.s32 %v10122_v39, %v686_v26  ;;  %v1566_v48 = vmul.u32 40, %v1565_v49  ;;  %v8198_v44 = vpop.f32.mrb[29].mxu0  ;;  %v8200_v36 = vpop.f32.mrb[29].mxu1 }
 0x126   : > { %v674_v62 = vshrl.u32 %v8163_v28, 5  ;;  %v8191_v41 = vadd.f32 %v6091_v16, %v7821_v29  ;;  %vm2266_vm6 = vcmp.ne.s32.totalorder %v1534_v52, 0  ;;  %vm2426_vm10 = vcmp.lt.s32.totalorder %v1534_v52, 0 }
 0x127   : > { %v2746_v19 = vadd.s32 40, %v1534_v52  ;;  %v1554_v51 = vshrl.u32 %v8173_v40, 5  ;;  %vm2586_vm12 = vmand %vm2426_vm10, %vm2266_vm6  ;;  %vm2189_vm13 = vcmp.ne.s32.totalorder %v687_v31, 0  ;;  %vm2349_vm15 = vcmp.lt.s32.totalorder %v687_v31, 0 }
 0x128   : > { %v2669_v11 = vadd.s32 40, %v687_v31  ;;  %v1567_v47 = vsub.s32 %v10123_v60, %v1566_v48  ;;  %vm2509_vm3 = vmand %vm2349_vm15, %vm2189_vm13  ;;  %v675_v53 = vmul.u32 40, %v674_v62  ;;  %v707_v13 = vshrl.u32 %v8186_v43, 5  ;;  %v8204_v1 = vpop.f32.mrb[30].mxu0  ;;  %v8206_v39 = vpop.f32.mrb[30].mxu1 }
 0x129   : > { %v2906_v56 = vsel %vm2586_vm12, %v2746_v19, %v1534_v52  ;;  %v1555_v2 = vmul.u32 40, %v1554_v51  ;;  %v8208_v15 = vpop.f32.mrb[31].mxu0  ;;  %v8210_v17 = vpop.f32.mrb[31].mxu1  ;;  %v8220_v8 = vmul.u32.u64.low 3435973837, %v8156_v6  ;;  %v8221_v60 = vmul.u32.u64.high 3435973837, %v8156_v6, %v8220_v8 }
 0x12a   : > { %vm3066_vm5 = vcmp.ge.s32.totalorder %v2906_v56, 2  ;;  %vm3226_vm8 = vcmp.lt.s32.totalorder %v2906_v56, 34  ;;  %v2829_v61 = vsel %vm2509_vm3, %v2669_v11, %v687_v31  ;;  %vm2269_vm14 = vcmp.ne.s32.totalorder %v1567_v47, 0 }
 0x12b   : > { %vm3386_vm0 = vmand %vm3066_vm5, %vm3226_vm8  ;;  %vm2989_vm4 = vcmp.ge.s32.totalorder %v2829_v61, 2  ;;  %vm3149_vm7 = vcmp.lt.s32.totalorder %v2829_v61, 34  ;;  %vm2429_vm9 = vcmp.lt.s32.totalorder %v1567_v47, 0  ;;  %v2749_v58 = vadd.s32 40, %v1567_v47 }
 0x12c   : > { %v3546_v55 = vsel %vm3386_vm0, 1.0, %v10107_v10  ;;  %vm3309_vm11 = vmand %vm2989_vm4, %vm3149_vm7  ;;  %v676_v27 = vsub.s32 %v7962_v32, %v675_v53  ;;  %v1556_v42 = vsub.s32 %v8001_v25, %v1555_v2  ;;  %v708_v38 = vmul.u32 40, %v707_v13  ;;  %v8223_v32 = vpop.f32.mrb[32].mxu0  ;;  %v8225_v25 = vpop.f32.mrb[32].mxu1 }
 0x12d   : > { %v5383_v3 = vmul.f32 %v5223_v45, %v3546_v55  ;;  %v3469_v46 = vsel %vm3309_vm11, 1.0, %v10107_v10  ;;  %vm2589_vm2 = vmand %vm2429_vm9, %vm2269_vm14  ;;  %v8229_v9 = vpop.f32.mrb[33].mxu0  ;;  %v8231_v45 = vpop.f32.mrb[33].mxu1  ;;  %v8238_v28 = vadd.f32 %v8168_v4, %v7821_v29  ;;  %v8243_v33 = vadd.s32 208, %v6884_v50 }
 0x12e   : > { %v5306_v37 = vmul.f32 %v5146_v5, %v3469_v46  ;;  %v2909_v34 = vsel %vm2589_vm2, %v2749_v58, %v1567_v47  ;;  %vm2188_vm6 = vcmp.ne.s32.totalorder %v676_v27, 0  ;;  %vm2348_vm10 = vcmp.lt.s32.totalorder %v676_v27, 0 }
 0x12f   : > { %5543 = vst.msk [vmem:[%s6806_s30 + $0x380] sm:$0xff] %vm222_vm1, %v5383_v3  ;;  %vm3069_vm12 = vcmp.ge.s32.totalorder %v2909_v34, 2  ;;  %vm3229_vm13 = vcmp.lt.s32.totalorder %v2909_v34, 34  ;;  %vm2508_vm15 = vmand %vm2348_vm10, %vm2188_vm6  ;;  %v2668_v59 = vadd.s32 40, %v676_v27  ;;  %vm2268_vm3 = vcmp.ne.s32.totalorder %v1556_v42, 0 }
 0x130   : > { %5466 = vst.msk [vmem:[%s6806_s30 + $0x118] sm:$0xff] %vm222_vm1, %v5306_v37  ;;  %vm3389_vm5 = vmand %vm3069_vm12, %vm3229_vm13  ;;  %vm2428_vm8 = vcmp.lt.s32.totalorder %v1556_v42, 0  ;;  %v2748_v57 = vadd.s32 40, %v1556_v42  ;;  %v709_v7 = vsub.s32 %v8137_v54, %v708_v38  ;;  %v1587_v5 = vshrl.u32 %v8221_v60, 5  ;;  %v8247_v26 = vpop.f32.mrb[34].mxu0  ;;  %v8249_v4 = vpop.f32.mrb[34].mxu1 }
 0x131   : > { %v3549_v16 = vsel %vm3389_vm5, 1.0, %v10107_v10  ;;  %v2828_v12 = vsel %vm2508_vm15, %v2668_v59, %v676_v27  ;;  %vm2588_vm14 = vmand %vm2428_vm8, %vm2268_vm3  ;;  %v8251_v49 = vpop.f32.mrb[35].mxu0  ;;  %v8253_v52 = vpop.f32.mrb[35].mxu1  ;;  %v5148_v21 = vmax.f32 %v8191_v41, 0.0  ;;  %v8271_v41 = vadd.f32 %v7821_v29, %v8175_v24 }
 0x132   : > { %v5386_v40 = vmul.f32 %v5226_v14, %v3549_v16  ;;  %vm2988_vm0 = vcmp.ge.s32.totalorder %v2828_v12, 2  ;;  %vm3148_vm4 = vcmp.lt.s32.totalorder %v2828_v12, 34  ;;  %v2908_v54 = vsel %vm2588_vm14, %v2748_v57, %v1556_v42 }
 0x133   : > { %vm3308_vm7 = vmand %vm2988_vm0, %vm3148_vm4  ;;  %vm3068_vm9 = vcmp.ge.s32.totalorder %v2908_v54, 2  ;;  %vm3228_vm11 = vcmp.lt.s32.totalorder %v2908_v54, 34  ;;  %vm2191_vm2 = vcmp.ne.s32.totalorder %v709_v7, 0  ;;  %vm2351_vm6 = vcmp.lt.s32.totalorder %v709_v7, 0 }
 0x134   : > { %5546 = vst.msk [vmem:[%s6806_s30 + $0x398] sm:$0xff] %vm222_vm1, %v5386_v40  ;;  %v3468_v30 = vsel %vm3308_vm7, 1.0, %v10107_v10  ;;  %vm3388_vm10 = vmand %vm3068_vm9, %vm3228_vm11  ;;  %v2671_v14 = vadd.s32 40, %v709_v7  ;;  %v1588_v43 = vmul.u32 40, %v1587_v5  ;;  %v8273_v35 = vpop.f32.mrb[36].mxu0  ;;  %v5228_v56 = vmax.f32 %v8238_v28, 0.0 }
 0x135   : > { %v5305_v31 = vmul.f32 %v5145_v22, %v3468_v30  ;;  %v3548_v48 = vsel %vm3388_vm10, 1.0, %v10107_v10  ;;  %vm2511_vm12 = vmand %vm2351_vm6, %vm2191_vm2  ;;  %v8263_v62 = vmul.u32.u64.low 3435973837, %v8243_v33  ;;  %v8264_v19 = vmul.u32.u64.high 3435973837, %v8243_v33, %v8263_v62  ;;  %v8275_v22 = vpop.f32.mrb[36].mxu1 }
 0x136   : > { %v5385_v51 = vmul.f32 %v5225_v20, %v3548_v48  ;;  %v2831_v11 = vsel %vm2511_vm12, %v2671_v14, %v709_v7  ;;  %v1589_v47 = vsub.s32 %v8156_v6, %v1588_v43  ;;  %v350_v23 = vadd.s32 848, %v6884_v50  ;;  %v8281_v20 = vpop.f32.mrb[37].mxu0  ;;  %v8283_v53 = vpop.f32.mrb[37].mxu1 }
 0x137   : > { %5465 = vst.msk [vmem:[%s6806_s30 + $0x110] sm:$0xff] %vm222_vm1, %v5305_v31  ;;  %vm2991_vm13 = vcmp.ge.s32.totalorder %v2831_v11, 2  ;;  %vm3151_vm15 = vcmp.lt.s32.totalorder %v2831_v11, 34  ;;  %v8288_v24 = vadd.s32 232, %v6884_v50  ;;  %v696_v13 = vshrl.u32 %v8264_v19, 5 }
 0x138   : > { %5545 = vst.msk [vmem:[%s6806_s30 + $0x390] sm:$0xff] %vm222_vm1, %v5385_v51  ;;  %vm3311_vm3 = vmand %vm2991_vm13, %vm3151_vm15  ;;  %vm2271_vm5 = vcmp.ne.s32.totalorder %v1589_v47, 0  ;;  %vm2431_vm8 = vcmp.lt.s32.totalorder %v1589_v47, 0  ;;  %v2751_v6 = vadd.s32 40, %v1589_v47  ;;  %v5147_v42 = vmax.f32 %v8271_v41, 0.0  ;;  %v8300_v3 = vpop.f32.mrb[38].mxu0 }
 0x139   : > { %v3471_v2 = vsel %vm3311_vm3, 1.0, %v10107_v10  ;;  %vm2591_vm14 = vmand %vm2431_vm8, %vm2271_vm5  ;;  %v8292_v61 = vmul.u32.u64.low 3435973837, %v350_v23  ;;  %v8293_v58 = vmul.u32.u64.high 3435973837, %v350_v23, %v8292_v61  ;;  %v8298_v38 = vadd.f32 %v7821_v29, %v8177_v63  ;;  %v8302_v46 = vpop.f32.mrb[38].mxu1  ;;  %v8307_v37 = vpop.f32.mrb[39].mxu0 }
 0x13a   : > { %v5308_v55 = vmul.f32 %v5148_v21, %v3471_v2  ;;  %v2911_v27 = vsel %vm2591_vm14, %v2751_v6, %v1589_v47  ;;  %v697_v8 = vmul.u32 40, %v696_v13  ;;  %v8305_v60 = vadd.s32 872, %v6884_v50  ;;  %v8309_v34 = vpop.f32.mrb[39].mxu1 }
 0x13b   : > { %vm3071_vm0 = vcmp.ge.s32.totalorder %v2911_v27, 2  ;;  %vm3231_vm4 = vcmp.lt.s32.totalorder %v2911_v27, 34  ;;  %v8314_v63 = vmul.u32.u64.low 3435973837, %v8288_v24  ;;  %v8315_v59 = vmul.u32.u64.high 3435973837, %v8288_v24, %v8314_v63 }
 0x13c   : > { %5468 = vst.msk [vmem:[%s6806_s30 + $0x128] sm:$0xff] %vm222_vm1, %v5308_v55  ;;  %vm3391_vm7 = vmand %vm3071_vm0, %vm3231_vm4  ;;  %v8319_v57 = vadd.f32 %v8193_v0, %v7821_v29  ;;  %v8323_v7 = vadd.f32 %v8195_v18, %v7821_v29  ;;  %v698_v16 = vsub.s32 %v8243_v33, %v697_v8  ;;  %v1576_v12 = vshrl.u32 %v8293_v58, 5  ;;  %v8336_v14 = vpop.f32.mrb[40].mxu0  ;;  %v8338_v29 = vpop.f32.mrb[40].mxu1 }
 0x13d   : > { %v3551_v28 = vsel %vm3391_vm7, 1.0, %v10107_v10  ;;  %v8329_v5 = vadd.s32 224, %v6884_v50  ;;  %v5227_v54 = vmax.f32 %v8298_v38, 0.0  ;;  %v8340_v21 = vpop.f32.mrb[41].mxu0  ;;  %v8342_v43 = vpop.f32.mrb[41].mxu1  ;;  %v729_v31 = vshrl.u32 %v8315_v59, 5 }
 0x13e   : > { %v5388_v40 = vmul.f32 %v5228_v56, %v3551_v28  ;;  %v8333_v0 = vmul.u32.u64.low 3435973837, %v8305_v60  ;;  %v8334_v30 = vmul.u32.u64.high 3435973837, %v8305_v60, %v8333_v0  ;;  %vm2190_vm9 = vcmp.ne.s32.totalorder %v698_v16, 0 }
 0x13f   : > { %vm2350_vm11 = vcmp.lt.s32.totalorder %v698_v16, 0  ;;  %v2670_v18 = vadd.s32 40, %v698_v16  ;;  %v1577_v33 = vmul.u32 40, %v1576_v12  ;;  %v5150_v48 = vmax.f32 %v8319_v57, 0.0 }
 0x140   : > { %5548 = vst.msk [vmem:[%s6806_s30 + $0x3a8] sm:$0xff] %vm222_vm1, %v5388_v40  ;;  %vm2510_vm2 = vmand %vm2350_vm11, %vm2190_vm9  ;;  %v8349_v62 = vmul.u32.u64.low 3435973837, %v8329_v5  ;;  %v8350_v19 = vmul.u32.u64.high 3435973837, %v8329_v5, %v8349_v62  ;;  %v5230_v47 = vmax.f32 %v8323_v7, 0.0  ;;  %v8354_v41 = vadd.s32 864, %v6884_v50  ;;  %v8357_v2 = vpop.f32.mrb[42].mxu0 }
 0x141   : > { %v2830_v51 = vsel %vm2510_vm2, %v2670_v18, %v698_v16  ;;  %v1578_v11 = vsub.s32 %v350_v23, %v1577_v33  ;;  %v730_v56 = vmul.u32 40, %v729_v31  ;;  %v1609_v6 = vshrl.u32 %v8334_v30, 5  ;;  %v8359_v13 = vpop.f32.mrb[42].mxu1  ;;  %v8364_v23 = vld [vmem:[%s10032_s2] ss:$0 sm:$0xff]  ;;  %v8370_v55 = vpop.f32.mrb[43].mxu0 }
 0x142   : > { %vm2990_vm6 = vcmp.ge.s32.totalorder %v2830_v51, 2  ;;  %vm3150_vm10 = vcmp.lt.s32.totalorder %v2830_v51, 34  ;;  %v8368_v58 = vadd.f32 %v8364_v23, %v8198_v44  ;;  %v8372_v27 = vpop.f32.mrb[43].mxu1  ;;  %v718_v59 = vshrl.u32 %v8350_v19, 5 }
 0x143   : > { %vm3310_vm12 = vmand %vm2990_vm6, %vm3150_vm10  ;;  %vm2270_vm13 = vcmp.ne.s32.totalorder %v1578_v11, 0  ;;  %vm2430_vm15 = vcmp.lt.s32.totalorder %v1578_v11, 0  ;;  %v2750_v61 = vadd.s32 40, %v1578_v11  ;;  %v731_v8 = vsub.s32 %v8288_v24, %v730_v56 }
 0x144   : > { %v3470_v38 = vsel %vm3310_vm12, 1.0, %v10107_v10  ;;  %vm2590_vm3 = vmand %vm2430_vm15, %vm2270_vm13  ;;  %v1610_v63 = vmul.u32 40, %v1609_v6  ;;  %v8378_v12 = vmul.u32.u64.low 3435973837, %v8354_v41  ;;  %v8379_v40 = vmul.u32.u64.high 3435973837, %v8354_v41, %v8378_v12  ;;  %v8396_v19 = vpop.f32.mrb[44].mxu1 }
 0x145   : > { %v5307_v28 = vmul.f32 %v5147_v42, %v3470_v38  ;;  %v2910_v16 = vsel %vm2590_vm3, %v2750_v61, %v1578_v11  ;;  %vm2193_vm14 = vcmp.ne.s32.totalorder %v731_v8, 0  ;;  %vm2353_vm0 = vcmp.lt.s32.totalorder %v731_v8, 0  ;;  %v8388_v42 = vpop.f32.mrb[44].mxu0 }
 0x146   : > { %vm3070_vm5 = vcmp.ge.s32.totalorder %v2910_v16, 2  ;;  %vm3230_vm8 = vcmp.lt.s32.totalorder %v2910_v16, 34  ;;  %v2673_v44 = vadd.s32 40, %v731_v8  ;;  %v1611_v0 = vsub.s32 %v8305_v60, %v1610_v63  ;;  %vm2513_vm7 = vmand %vm2353_vm0, %vm2193_vm14 }
 0x147   : > { %5467 = vst.msk [vmem:[%s6806_s30 + $0x120] sm:$0xff] %vm222_vm1, %v5307_v28  ;;  %vm3390_vm4 = vmand %vm3070_vm5, %vm3230_vm8  ;;  %v719_v24 = vmul.u32 40, %v718_v59  ;;  %v8386_v30 = vadd.f32 %v8364_v23, %v8200_v36  ;;  %v5149_v33 = vmax.f32 %v8368_v58, 0.0  ;;  %v275_v31 = vadd.s32 248, %v6884_v50 }
 0x148   : > { %v3550_v18 = vsel %vm3390_vm4, 1.0, %v10107_v10  ;;  %v8394_v62 = vadd.s32 888, %v6884_v50  ;;  %v2833_v51 = vsel %vm2513_vm7, %v2673_v44, %v731_v8  ;;  %vm2273_vm9 = vcmp.ne.s32.totalorder %v1611_v0, 0 }
 0x149   : > { %v5387_v60 = vmul.f32 %v5227_v54, %v3550_v18  ;;  %vm2433_vm11 = vcmp.lt.s32.totalorder %v1611_v0, 0  ;;  %vm2993_vm2 = vcmp.ge.s32.totalorder %v2833_v51, 2  ;;  %vm3153_vm6 = vcmp.lt.s32.totalorder %v2833_v51, 34 }
 0x14a   : > { %vm2593_vm10 = vmand %vm2433_vm11, %vm2273_vm9  ;;  %v2753_v36 = vadd.s32 40, %v1611_v0  ;;  %v720_v11 = vsub.s32 %v8329_v5, %v719_v24  ;;  %v1598_v56 = vshrl.u32 %v8379_v40, 5  ;;  %v8407_v54 = vadd.f32 %v8364_v23, %v8204_v1  ;;  %v8425_v40 = vpop.f32.mrb[45].mxu0 }
 0x14b   : > { %5547 = vst.msk [vmem:[%s6806_s30 + $0x3a0] sm:$0xff] %vm222_vm1, %v5387_v60  ;;  %vm3313_vm12 = vmand %vm2993_vm2, %vm3153_vm6  ;;  %v8402_v6 = vmul.u32.u64.low 3435973837, %v275_v31  ;;  %v8403_v61 = vmul.u32.u64.high 3435973837, %v275_v31, %v8402_v6  ;;  %v8413_v59 = vmul.u32.u64.low 3435973837, %v8394_v62  ;;  %v8414_v28 = vmul.u32.u64.high 3435973837, %v8394_v62, %v8413_v59 }
 0x14c   : > { %v3473_v58 = vsel %vm3313_vm12, 1.0, %v10107_v10  ;;  %v2913_v38 = vsel %vm2593_vm10, %v2753_v36, %v1611_v0  ;;  %vm2192_vm13 = vcmp.ne.s32.totalorder %v720_v11, 0  ;;  %vm2352_vm15 = vcmp.lt.s32.totalorder %v720_v11, 0 }
 0x14d   : > { %v5310_v5 = vmul.f32 %v5150_v48, %v3473_v58  ;;  %vm3073_vm3 = vcmp.ge.s32.totalorder %v2913_v38, 2  ;;  %vm3233_vm5 = vcmp.lt.s32.totalorder %v2913_v38, 34  ;;  %vm2512_vm8 = vmand %vm2352_vm15, %vm2192_vm13  ;;  %v2672_v8 = vadd.s32 40, %v720_v11  ;;  %v8451_v38 = vpop.f32.mrb[45].mxu1 }
 0x14e   : > { %vm3393_vm14 = vmand %vm3073_vm3, %vm3233_vm5  ;;  %v1599_v63 = vmul.u32 40, %v1598_v56  ;;  %v8418_v1 = vadd.f32 %v8364_v23, %v8206_v39  ;;  %v751_v16 = vshrl.u32 %v8403_v61, 5  ;;  %v274_v12 = vadd.s32 240, %v6884_v50 }
 0x14f   : > { %5470 = vst.msk [vmem:[%s6806_s30 + $0x138] sm:$0xff] %vm222_vm1, %v5310_v5  ;;  %v3553_v57 = vsel %vm3393_vm14, 1.0, %v10107_v10  ;;  %v2832_v48 = vsel %vm2512_vm8, %v2672_v8, %v720_v11  ;;  %v5229_v39 = vmax.f32 %v8386_v30, 0.0  ;;  %v1631_v11 = vshrl.u32 %v8414_v28, 5 }
 0x150   : > { %v5390_v44 = vmul.f32 %v5230_v47, %v3553_v57  ;;  %vm2992_vm0 = vcmp.ge.s32.totalorder %v2832_v48, 2  ;;  %vm3152_vm4 = vcmp.lt.s32.totalorder %v2832_v48, 34  ;;  %v1600_v0 = vsub.s32 %v8354_v41, %v1599_v63 }
 0x151   : > { %vm3312_vm7 = vmand %vm2992_vm0, %vm3152_vm4  ;;  %v752_v24 = vmul.u32 40, %v751_v16  ;;  %v8431_v18 = vmul.u32.u64.low 3435973837, %v274_v12  ;;  %v8432_v60 = vmul.u32.u64.high 3435973837, %v274_v12, %v8431_v18  ;;  %v5152_v41 = vmax.f32 %v8407_v54, 0.0 }
 0x152   : > { %5550 = vst.msk [vmem:[%s6806_s30 + $0x3b8] sm:$0xff] %vm222_vm1, %v5390_v44  ;;  %v3472_v51 = vsel %vm3312_vm7, 1.0, %v10107_v10  ;;  %vm2272_vm9 = vcmp.ne.s32.totalorder %v1600_v0, 0  ;;  %vm2432_vm11 = vcmp.lt.s32.totalorder %v1600_v0, 0  ;;  %v2752_v7 = vadd.s32 40, %v1600_v0  ;;  %v8466_v44 = vpop.f32.mrb[46].mxu0 }
 0x153   : > { %v5309_v47 = vmul.f32 %v5149_v33, %v3472_v51  ;;  %vm2592_vm2 = vmand %vm2432_vm11, %vm2272_vm9  ;;  %v753_v36 = vsub.s32 %v275_v31, %v752_v24  ;;  %v5232_v56 = vmax.f32 %v8418_v1, 0.0  ;;  %v354_v6 = vadd.s32 880, %v6884_v50 }
 0x154   : > { %v2912_v30 = vsel %vm2592_vm2, %v2752_v7, %v1600_v0  ;;  %v8442_v61 = vadd.s32 264, %v6884_v50  ;;  %v1632_v31 = vmul.u32 40, %v1631_v11  ;;  %v740_v54 = vshrl.u32 %v8432_v60, 5  ;;  %v8477_v7 = vpop.f32.mrb[46].mxu1 }
 0x155   : > { %5469 = vst.msk [vmem:[%s6806_s30 + $0x130] sm:$0xff] %vm222_vm1, %v5309_v47  ;;  %vm3072_vm6 = vcmp.ge.s32.totalorder %v2912_v30, 2  ;;  %vm3232_vm10 = vcmp.lt.s32.totalorder %v2912_v30, 34  ;;  %vm2195_vm12 = vcmp.ne.s32.totalorder %v753_v36, 0  ;;  %vm2355_vm13 = vcmp.lt.s32.totalorder %v753_v36, 0 }
 0x156   : > { %vm3392_vm15 = vmand %vm3072_vm6, %vm3232_vm10  ;;  %v2675_v33 = vadd.s32 40, %v753_v36  ;;  %v8449_v58 = vadd.f32 %v8364_v23, %v8208_v15  ;;  %v8454_v8 = vmul.u32.u64.low 3435973837, %v354_v6  ;;  %v8455_v63 = vmul.u32.u64.high 3435973837, %v354_v6, %v8454_v8 }
 0x157   : > { %v3552_v5 = vsel %vm3392_vm15, 1.0, %v10107_v10  ;;  %vm2515_vm3 = vmand %vm2355_vm13, %vm2195_vm12  ;;  %v8459_v59 = vadd.f32 %v8364_v23, %v8210_v17  ;;  %v1633_v57 = vsub.s32 %v8394_v62, %v1632_v31  ;;  %v741_v48 = vmul.u32 40, %v740_v54 }
 0x158   : > { %v5389_v28 = vmul.f32 %v5229_v39, %v3552_v5  ;;  %v2835_v1 = vsel %vm2515_vm3, %v2675_v33, %v753_v36  ;;  %v8463_v15 = vmul.u32.u64.low 3435973837, %v8442_v61  ;;  %v8464_v16 = vmul.u32.u64.high 3435973837, %v8442_v61, %v8463_v15  ;;  %v8479_v36 = vpop.f32.mrb[47].mxu0 }
 0x159   : > { %vm2995_vm5 = vcmp.ge.s32.totalorder %v2835_v1, 2  ;;  %vm3155_vm8 = vcmp.lt.s32.totalorder %v2835_v1, 34  ;;  %vm2275_vm0 = vcmp.ne.s32.totalorder %v1633_v57, 0  ;;  %vm2435_vm4 = vcmp.lt.s32.totalorder %v1633_v57, 0  ;;  %v8491_v1 = vpop.f32.mrb[47].mxu1 }
 0x15a   : > { %5549 = vst.msk [vmem:[%s6806_s30 + $0x3b0] sm:$0xff] %vm222_vm1, %v5389_v28  ;;  %vm3315_vm14 = vmand %vm2995_vm5, %vm3155_vm8  ;;  %v2755_v17 = vadd.s32 40, %v1633_v57  ;;  %v742_v0 = vsub.s32 %v274_v12, %v741_v48  ;;  %v1620_v62 = vshrl.u32 %v8455_v63, 5  ;;  %v8474_v24 = vadd.f32 %v8364_v23, %v8223_v32 }
 0x15b   : > { %v3475_v39 = vsel %vm3315_vm14, 1.0, %v10107_v10  ;;  %vm2595_vm7 = vmand %vm2435_vm4, %vm2275_vm0  ;;  %v357_v18 = vadd.s32 904, %v6884_v50  ;;  %v5151_v32 = vmax.f32 %v8449_v58, 0.0  ;;  %v773_v11 = vshrl.u32 %v8464_v16, 5 }
 0x15c   : > { %v5312_v60 = vmul.f32 %v5152_v41, %v3475_v39  ;;  %v2915_v51 = vsel %vm2595_vm7, %v2755_v17, %v1633_v57  ;;  %vm2194_vm9 = vcmp.ne.s32.totalorder %v742_v0, 0  ;;  %vm2354_vm11 = vcmp.lt.s32.totalorder %v742_v0, 0 }
 0x15d   : > { %vm3075_vm2 = vcmp.ge.s32.totalorder %v2915_v51, 2  ;;  %vm3235_vm6 = vcmp.lt.s32.totalorder %v2915_v51, 34  ;;  %vm2514_vm10 = vmand %vm2354_vm11, %vm2194_vm9  ;;  %v2674_v12 = vadd.s32 40, %v742_v0  ;;  %v1621_v47 = vmul.u32 40, %v1620_v62 }
 0x15e   : > { %5472 = vst.msk [vmem:[%s6806_s30 + $0x148] sm:$0xff] %vm222_vm1, %v5312_v60  ;;  %vm3395_vm12 = vmand %vm3075_vm2, %vm3235_vm6  ;;  %v8485_v41 = vmul.u32.u64.low 3435973837, %v357_v18  ;;  %v8486_v30 = vmul.u32.u64.high 3435973837, %v357_v18, %v8485_v41  ;;  %v5231_v5 = vmax.f32 %v8459_v59, 0.0  ;;  %v774_v63 = vmul.u32 40, %v773_v11 }
 0x15f   : > { %v3555_v33 = vsel %vm3395_vm12, 1.0, %v10107_v10  ;;  %v2834_v31 = vsel %vm2514_vm10, %v2674_v12, %v742_v0  ;;  %v1622_v54 = vsub.s32 %v354_v6, %v1621_v47  ;;  %v5154_v28 = vmax.f32 %v8474_v24, 0.0  ;;  %v8507_v24 = vpop.f32.mrb[48].mxu0 }
 0x160   : > { %v5392_v8 = vmul.f32 %v5232_v56, %v3555_v33  ;;  %vm2994_vm13 = vcmp.ge.s32.totalorder %v2834_v31, 2  ;;  %vm3154_vm15 = vcmp.lt.s32.totalorder %v2834_v31, 34  ;;  %v775_v6 = vsub.s32 %v8442_v61, %v774_v63 }
 0x161   : > { %vm3314_vm3 = vmand %vm2994_vm13, %vm3154_vm15  ;;  %vm2274_vm5 = vcmp.ne.s32.totalorder %v1622_v54, 0  ;;  %vm2434_vm8 = vcmp.lt.s32.totalorder %v1622_v54, 0  ;;  %v2754_v58 = vadd.s32 40, %v1622_v54  ;;  %v1653_v56 = vshrl.u32 %v8486_v30, 5 }
 0x162   : > { %5552 = vst.msk [vmem:[%s6806_s30 + $0x3c8] sm:$0xff] %vm222_vm1, %v5392_v8  ;;  %v3474_v57 = vsel %vm3314_vm3, 1.0, %v10107_v10  ;;  %vm2594_vm14 = vmand %vm2434_vm8, %vm2274_vm5  ;;  %v276_v59 = vadd.s32 256, %v6884_v50  ;;  %v4888_v16 = vadd.f32 %v8364_v23, %v8225_v25  ;;  %v356_v17 = vadd.s32 896, %v6884_v50 }
 0x163   : > { %v5311_v48 = vmul.f32 %v5151_v32, %v3474_v57  ;;  %v2914_v15 = vsel %vm2594_vm14, %v2754_v58, %v1622_v54  ;;  %vm2197_vm7 = vcmp.ne.s32.totalorder %v775_v6, 0  ;;  %vm2357_vm9 = vcmp.lt.s32.totalorder %v775_v6, 0 }
 0x164   : > { %vm3074_vm0 = vcmp.ge.s32.totalorder %v2914_v15, 2  ;;  %vm3234_vm4 = vcmp.lt.s32.totalorder %v2914_v15, 34  ;;  %v2677_v0 = vadd.s32 40, %v775_v6  ;;  %v1654_v61 = vmul.u32 40, %v1653_v56  ;;  %vm2517_vm2 = vmand %vm2357_vm9, %vm2197_vm7 }
 0x165   : > { %5471 = vst.msk [vmem:[%s6806_s30 + $0x140] sm:$0xff] %vm222_vm1, %v5311_v48  ;;  %vm3394_vm11 = vmand %vm3074_vm0, %vm3234_vm4  ;;  %v8504_v39 = vmul.u32.u64.low 3435973837, %v276_v59  ;;  %v8505_v62 = vmul.u32.u64.high 3435973837, %v276_v59, %v8504_v39  ;;  %v8512_v25 = vadd.f32 %v8364_v23, %v8229_v9  ;;  %v5234_v41 = vmax.f32 %v4888_v16, 0.0 }
 0x166   : > { %v3554_v60 = vsel %vm3394_vm11, 1.0, %v10107_v10  ;;  %v8514_v51 = vmul.u32.u64.low 3435973837, %v356_v17  ;;  %v8515_v12 = vmul.u32.u64.high 3435973837, %v356_v17, %v8514_v51  ;;  %v2837_v32 = vsel %vm2517_vm2, %v2677_v0, %v775_v6 }
 0x167   : > { %v5391_v47 = vmul.f32 %v5231_v5, %v3554_v60  ;;  %v1655_v11 = vsub.s32 %v357_v18, %v1654_v61  ;;  %vm2997_vm6 = vcmp.ge.s32.totalorder %v2837_v32, 2  ;;  %vm3157_vm10 = vcmp.lt.s32.totalorder %v2837_v32, 34 }
 0x168   : > { %v8519_v30 = vadd.f32 %v8364_v23, %v8231_v45  ;;  %v8522_v33 = vadd.s32 280, %v6884_v50  ;;  %vm3317_vm12 = vmand %vm2997_vm6, %vm3157_vm10  ;;  %v762_v31 = vshrl.u32 %v8505_v62, 5  ;;  %v5153_v54 = vmax.f32 %v8512_v25, 0.0  ;;  %v8547_v62 = vpop.f32.mrb[48].mxu1 }
 0x169   : > { %5551 = vst.msk [vmem:[%s6806_s30 + $0x3c0] sm:$0xff] %vm222_vm1, %v5391_v47  ;;  %vm2277_vm13 = vcmp.ne.s32.totalorder %v1655_v11, 0  ;;  %vm2437_vm15 = vcmp.lt.s32.totalorder %v1655_v11, 0  ;;  %v2757_v9 = vadd.s32 40, %v1655_v11  ;;  %v3477_v18 = vsel %vm3317_vm12, 1.0, %v10107_v10 }
 0x16a   : > { %vm2597_vm3 = vmand %vm2437_vm15, %vm2277_vm13  ;;  %v1642_v45 = vshrl.u32 %v8515_v12, 5  ;;  %v8532_v5 = vadd.f32 %v8364_v23, %v8247_v26  ;;  %v5314_v8 = vmul.f32 %v5154_v28, %v3477_v18  ;;  %v763_v58 = vmul.u32 40, %v762_v31  ;;  %v8553_v12 = vpop.f32.mrb[49].mxu0 }
 0x16b   : > { %v2917_v63 = vsel %vm2597_vm3, %v2757_v9, %v1655_v11  ;;  %v359_v57 = vadd.s32 920, %v6884_v50  ;;  %v5233_v56 = vmax.f32 %v8519_v30, 0.0  ;;  %v278_v26 = vadd.s32 272, %v6884_v50 }
 0x16c   : > { %vm3077_vm5 = vcmp.ge.s32.totalorder %v2917_v63, 2  ;;  %vm3237_vm8 = vcmp.lt.s32.totalorder %v2917_v63, 34  ;;  %v1643_v6 = vmul.u32 40, %v1642_v45  ;;  %5474 = vst.msk [vmem:[%s6806_s30 + $0x158] sm:$0xff] %vm222_vm1, %v5314_v8  ;;  %v764_v48 = vsub.s32 %v276_v59, %v763_v58  ;;  %v8568_v63 = vpop.f32.mrb[49].mxu1 }
 0x16d   : > { %vm3397_vm14 = vmand %vm3077_vm5, %vm3237_vm8  ;;  %v8539_v15 = vmul.u32.u64.low 3435973837, %v8522_v33  ;;  %v8540_v16 = vmul.u32.u64.high 3435973837, %v8522_v33, %v8539_v15  ;;  %v8544_v61 = vmul.u32.u64.low 3435973837, %v359_v57  ;;  %v8545_v39 = vmul.u32.u64.high 3435973837, %v359_v57, %v8544_v61 }
 0x16e   : > { %v3557_v28 = vsel %vm3397_vm14, 1.0, %v10107_v10  ;;  %v1644_v0 = vsub.s32 %v356_v17, %v1643_v6  ;;  %vm2196_vm0 = vcmp.ne.s32.totalorder %v764_v48, 0  ;;  %vm2356_vm4 = vcmp.lt.s32.totalorder %v764_v48, 0 }
 0x16f   : > { %v5394_v60 = vmul.f32 %v5234_v41, %v3557_v28  ;;  %v2676_v25 = vadd.s32 40, %v764_v48  ;;  %vm2516_vm7 = vmand %vm2356_vm4, %vm2196_vm0  ;;  %v8551_v51 = vadd.f32 %v8364_v23, %v8249_v4  ;;  %v795_v47 = vshrl.u32 %v8540_v16, 5 }
 0x170   : > { %vm2276_vm9 = vcmp.ne.s32.totalorder %v1644_v0, 0  ;;  %vm2436_vm11 = vcmp.lt.s32.totalorder %v1644_v0, 0  ;;  %v2756_v59 = vadd.s32 40, %v1644_v0  ;;  %v1675_v30 = vshrl.u32 %v8545_v39, 5  ;;  %v8581_v39 = vpop.f32.mrb[50].mxu0 }
 0x171   : > { %5554 = vst.msk [vmem:[%s6806_s30 + $0x3d8] sm:$0xff] %vm222_vm1, %v5394_v60  ;;  %v2836_v17 = vsel %vm2516_vm7, %v2676_v25, %v764_v48  ;;  %vm2596_vm2 = vmand %vm2436_vm11, %vm2276_vm9  ;;  %v8558_v32 = vmul.u32.u64.low 3435973837, %v278_v26  ;;  %v8559_v11 = vmul.u32.u64.high 3435973837, %v278_v26, %v8558_v32  ;;  %v796_v4 = vmul.u32 40, %v795_v47 }
 0x172   : > { %vm2996_vm6 = vcmp.ge.s32.totalorder %v2836_v17, 2  ;;  %vm3156_vm10 = vcmp.lt.s32.totalorder %v2836_v17, 34  ;;  %v2916_v41 = vsel %vm2596_vm2, %v2756_v59, %v1644_v0  ;;  %v5156_v9 = vmax.f32 %v8532_v5, 0.0 }
 0x173   : > { %vm3316_vm12 = vmand %vm2996_vm6, %vm3156_vm10  ;;  %vm3076_vm13 = vcmp.ge.s32.totalorder %v2916_v41, 2  ;;  %vm3236_vm15 = vcmp.lt.s32.totalorder %v2916_v41, 34  ;;  %v1676_v18 = vmul.u32 40, %v1675_v30  ;;  %v5236_v45 = vmax.f32 %v8551_v51, 0.0  ;;  %v8590_v51 = vpop.f32.mrb[50].mxu1 }
 0x174   : > { %v3476_v31 = vsel %vm3316_vm12, 1.0, %v10107_v10  ;;  %vm3396_vm3 = vmand %vm3076_vm13, %vm3236_vm15  ;;  %v8566_v8 = vadd.s32 912, %v6884_v50  ;;  %v797_v48 = vsub.s32 %v8522_v33, %v796_v4  ;;  %v784_v15 = vshrl.u32 %v8559_v11, 5 }
 0x175   : > { %v5313_v58 = vmul.f32 %v5153_v54, %v3476_v31  ;;  %v3556_v6 = vsel %vm3396_vm3, 1.0, %v10107_v10  ;;  %v1677_v16 = vsub.s32 %v359_v57, %v1676_v18  ;;  %v4493_v28 = vadd.f32 %v8364_v23, %v8251_v49 }
 0x176   : > { %v5393_v5 = vmul.f32 %v5233_v56, %v3556_v6  ;;  %v8577_v0 = vadd.f32 %v8364_v23, %v8253_v52  ;;  %vm2199_vm5 = vcmp.ne.s32.totalorder %v797_v48, 0  ;;  %vm2359_vm8 = vcmp.lt.s32.totalorder %v797_v48, 0 }
 0x177   : > { %5473 = vst.msk [vmem:[%s6806_s30 + $0x150] sm:$0xff] %vm222_vm1, %v5313_v58  ;;  %v2679_v54 = vadd.s32 40, %v797_v48  ;;  %v785_v61 = vmul.u32 40, %v784_v15  ;;  %vm2519_vm14 = vmand %vm2359_vm8, %vm2199_vm5  ;;  %vm2279_vm0 = vcmp.ne.s32.totalorder %v1677_v16, 0  ;;  %vm2439_vm4 = vcmp.lt.s32.totalorder %v1677_v16, 0 }
 0x178   : > { %5553 = vst.msk [vmem:[%s6806_s30 + $0x3d0] sm:$0xff] %vm222_vm1, %v5393_v5  ;;  %v2759_v33 = vadd.s32 40, %v1677_v16  ;;  %v281_v49 = vadd.s32 296, %v6884_v50  ;;  %vm2599_vm7 = vmand %vm2439_vm4, %vm2279_vm0  ;;  %v8587_v56 = vmul.u32.u64.low 3435973837, %v8566_v8  ;;  %v8588_v60 = vmul.u32.u64.high 3435973837, %v8566_v8, %v8587_v56 }
 0x179   : > { %v2839_v57 = vsel %vm2519_vm14, %v2679_v54, %v797_v48  ;;  %v786_v52 = vsub.s32 %v278_v26, %v785_v61  ;;  %v5155_v59 = vmax.f32 %v4493_v28, 0.0  ;;  %v8600_v4 = vadd.f32 %v8364_v23, %v8273_v35  ;;  %v8607_v48 = vpop.f32.mrb[51].mxu0 }
 0x17a   : > { %vm2999_vm9 = vcmp.ge.s32.totalorder %v2839_v57, 2  ;;  %vm3159_vm11 = vcmp.lt.s32.totalorder %v2839_v57, 34  ;;  %v2919_v25 = vsel %vm2599_vm7, %v2759_v33, %v1677_v16  ;;  %v1664_v30 = vshrl.u32 %v8588_v60, 5  ;;  %v8626_v60 = vpop.f32.mrb[51].mxu1 }
 0x17b   : > { %vm3319_vm2 = vmand %vm2999_vm9, %vm3159_vm11  ;;  %vm3079_vm6 = vcmp.ge.s32.totalorder %v2919_v25, 2  ;;  %vm3239_vm10 = vcmp.lt.s32.totalorder %v2919_v25, 34  ;;  %vm2198_vm12 = vcmp.ne.s32.totalorder %v786_v52, 0  ;;  %vm2358_vm13 = vcmp.lt.s32.totalorder %v786_v52, 0 }
 0x17c   : > { %v3479_v17 = vsel %vm3319_vm2, 1.0, %v10107_v10  ;;  %vm3399_vm15 = vmand %vm3079_vm6, %vm3239_vm10  ;;  %v2678_v26 = vadd.s32 40, %v786_v52  ;;  %v8593_v47 = vmul.u32.u64.low 3435973837, %v281_v49  ;;  %v8594_v32 = vmul.u32.u64.high 3435973837, %v281_v49, %v8593_v47 }
 0x17d   : > { %v5316_v11 = vmul.f32 %v5156_v9, %v3479_v17  ;;  %v3559_v41 = vsel %vm3399_vm15, 1.0, %v10107_v10  ;;  %vm2518_vm3 = vmand %vm2358_vm13, %vm2198_vm12  ;;  %v361_v58 = vadd.s32 936, %v6884_v50  ;;  %v8605_v6 = vadd.f32 %v8364_v23, %v8275_v22 }
 0x17e   : > { %v5396_v31 = vmul.f32 %v5236_v45, %v3559_v41  ;;  %v2838_v18 = vsel %vm2518_vm3, %v2678_v26, %v786_v52  ;;  %v1665_v9 = vmul.u32 40, %v1664_v30  ;;  %v280_v15 = vadd.s32 288, %v6884_v50 }
 0x17f   : > { %5476 = vst.msk [vmem:[%s6806_s30 + $0x168] sm:$0xff] %vm222_vm1, %v5316_v11  ;;  %vm2998_vm5 = vcmp.ge.s32.totalorder %v2838_v18, 2  ;;  %vm3158_vm8 = vcmp.lt.s32.totalorder %v2838_v18, 34  ;;  %v5235_v35 = vmax.f32 %v8577_v0, 0.0  ;;  %v817_v45 = vshrl.u32 %v8594_v32, 5 }
 0x180   : > { %5556 = vst.msk [vmem:[%s6806_s30 + $0x3e8] sm:$0xff] %vm222_vm1, %v5396_v31  ;;  %vm3318_vm14 = vmand %vm2998_vm5, %vm3158_vm8  ;;  %v8616_v5 = vmul.u32.u64.low 3435973837, %v361_v58  ;;  %v8617_v22 = vmul.u32.u64.high 3435973837, %v361_v58, %v8616_v5  ;;  %v1666_v28 = vsub.s32 %v8566_v8, %v1665_v9  ;;  %v5158_v52 = vmax.f32 %v8600_v4, 0.0 }
 0x181   : > { %v3478_v16 = vsel %vm3318_vm14, 1.0, %v10107_v10  ;;  %v8621_v54 = vmul.u32.u64.low 3435973837, %v280_v15  ;;  %v8622_v61 = vmul.u32.u64.high 3435973837, %v280_v15, %v8621_v54  ;;  %v818_v57 = vmul.u32 40, %v817_v45 }
 0x182   : > { %v5315_v33 = vmul.f32 %v5155_v59, %v3478_v16  ;;  %v360_v56 = vadd.s32 928, %v6884_v50  ;;  %vm2278_vm0 = vcmp.ne.s32.totalorder %v1666_v28, 0  ;;  %vm2438_vm4 = vcmp.lt.s32.totalorder %v1666_v28, 0  ;;  %v8653_v54 = vpop.f32.mrb[52].mxu0 }
 0x183   : > { %v2758_v0 = vadd.s32 40, %v1666_v28  ;;  %v5238_v25 = vmax.f32 %v8605_v6, 0.0  ;;  %vm2598_vm7 = vmand %vm2438_vm4, %vm2278_vm0  ;;  %v819_v8 = vsub.s32 %v281_v49, %v818_v57  ;;  %v1697_v17 = vshrl.u32 %v8617_v22, 5 }
 0x184   : > { %5475 = vst.msk [vmem:[%s6806_s30 + $0x160] sm:$0xff] %vm222_vm1, %v5315_v33  ;;  %v8634_v59 = vadd.f32 %v8364_v23, %v8281_v20  ;;  %v8637_v26 = vadd.s32 312, %v6884_v50  ;;  %v806_v32 = vshrl.u32 %v8622_v61, 5  ;;  %v8645_v20 = vadd.f32 %v8364_v23, %v8283_v53 }
 0x185   : > { %v2918_v47 = vsel %vm2598_vm7, %v2758_v0, %v1666_v28  ;;  %v8640_v11 = vmul.u32.u64.low 3435973837, %v360_v56  ;;  %v8641_v41 = vmul.u32.u64.high 3435973837, %v360_v56, %v8640_v11  ;;  %vm2201_vm2 = vcmp.ne.s32.totalorder %v819_v8, 0 }
 0x186   : > { %vm3078_vm9 = vcmp.ge.s32.totalorder %v2918_v47, 2  ;;  %vm3238_vm11 = vcmp.lt.s32.totalorder %v2918_v47, 34  ;;  %vm2361_vm6 = vcmp.lt.s32.totalorder %v819_v8, 0  ;;  %v2681_v49 = vadd.s32 40, %v819_v8 }
 0x187   : > { %vm3398_vm10 = vmand %vm3078_vm9, %vm3238_vm11  ;;  %v1698_v30 = vmul.u32 40, %v1697_v17  ;;  %v807_v4 = vmul.u32 40, %v806_v32  ;;  %v5157_v18 = vmax.f32 %v8634_v59, 0.0  ;;  %v1686_v53 = vshrl.u32 %v8641_v41, 5 }
 0x188   : > { %v3558_v31 = vsel %vm3398_vm10, 1.0, %v10107_v10  ;;  %vm2521_vm12 = vmand %vm2361_vm6, %vm2201_vm2  ;;  %v8650_v9 = vmul.u32.u64.low 3435973837, %v8637_v26  ;;  %v8651_v45 = vmul.u32.u64.high 3435973837, %v8637_v26, %v8650_v9  ;;  %v8658_v61 = vadd.f32 %v8364_v23, %v8300_v3 }
 0x189   : > { %v5395_v5 = vmul.f32 %v5235_v35, %v3558_v31  ;;  %v2841_v22 = vsel %vm2521_vm12, %v2681_v49, %v819_v8  ;;  %v1699_v16 = vsub.s32 %v361_v58, %v1698_v30  ;;  %v808_v28 = vsub.s32 %v280_v15, %v807_v4  ;;  %v8662_v58 = vpop.f32.mrb[52].mxu1 }
 0x18a   : > { %vm3001_vm13 = vcmp.ge.s32.totalorder %v2841_v22, 2  ;;  %vm3161_vm15 = vcmp.lt.s32.totalorder %v2841_v22, 34  ;;  %v1687_v57 = vmul.u32 40, %v1686_v53  ;;  %v839_v3 = vshrl.u32 %v8651_v45, 5  ;;  %v8681_v22 = vpop.f32.mrb[53].mxu1 }
 0x18b   : > { %5555 = vst.msk [vmem:[%s6806_s30 + $0x3e0] sm:$0xff] %vm222_vm1, %v5395_v5  ;;  %vm3321_vm3 = vmand %vm3001_vm13, %vm3161_vm15  ;;  %vm2281_vm5 = vcmp.ne.s32.totalorder %v1699_v16, 0  ;;  %vm2441_vm8 = vcmp.lt.s32.totalorder %v1699_v16, 0  ;;  %v2761_v33 = vadd.s32 40, %v1699_v16  ;;  %vm2200_vm14 = vcmp.ne.s32.totalorder %v808_v28, 0 }
 0x18c   : > { %v3481_v15 = vsel %vm3321_vm3, 1.0, %v10107_v10  ;;  %vm2601_vm0 = vmand %vm2441_vm8, %vm2281_vm5  ;;  %vm2360_vm4 = vcmp.lt.s32.totalorder %v808_v28, 0  ;;  %v2680_v35 = vadd.s32 40, %v808_v28  ;;  %v363_v17 = vadd.s32 952, %v6884_v50 }
 0x18d   : > { %v5318_v0 = vmul.f32 %v5158_v52, %v3481_v15  ;;  %v2921_v8 = vsel %vm2601_vm0, %v2761_v33, %v1699_v16  ;;  %vm2520_vm7 = vmand %vm2360_vm4, %vm2200_vm14  ;;  %v1688_v47 = vsub.s32 %v360_v56, %v1687_v57  ;;  %v5237_v32 = vmax.f32 %v8645_v20, 0.0  ;;  %v8670_v52 = vpop.f32.mrb[53].mxu0 }
 0x18e   : > { %vm3081_vm9 = vcmp.ge.s32.totalorder %v2921_v8, 2  ;;  %vm3241_vm11 = vcmp.lt.s32.totalorder %v2921_v8, 34  ;;  %v2840_v59 = vsel %vm2520_vm7, %v2680_v35, %v808_v28  ;;  %v840_v11 = vmul.u32 40, %v839_v3 }
 0x18f   : > { %5478 = vst.msk [vmem:[%s6806_s30 + $0x178] sm:$0xff] %vm222_vm1, %v5318_v0  ;;  %vm3401_vm2 = vmand %vm3081_vm9, %vm3241_vm11  ;;  %vm3000_vm6 = vcmp.ge.s32.totalorder %v2840_v59, 2  ;;  %vm3160_vm10 = vcmp.lt.s32.totalorder %v2840_v59, 34  ;;  %vm2280_vm13 = vcmp.ne.s32.totalorder %v1688_v47, 0  ;;  %vm2440_vm15 = vcmp.lt.s32.totalorder %v1688_v47, 0 }
 0x190   : > { %v3561_v41 = vsel %vm3401_vm2, 1.0, %v10107_v10  ;;  %vm3320_vm12 = vmand %vm3000_vm6, %vm3160_vm10  ;;  %v2760_v49 = vadd.s32 40, %v1688_v47  ;;  %v841_v4 = vsub.s32 %v8637_v26, %v840_v11  ;;  %v5160_v20 = vmax.f32 %v8658_v61, 0.0 }
 0x191   : > { %v5398_v56 = vmul.f32 %v5238_v25, %v3561_v41  ;;  %v3480_v30 = vsel %vm3320_vm12, 1.0, %v10107_v10  ;;  %vm2600_vm3 = vmand %vm2440_vm15, %vm2280_vm13  ;;  %v8678_v45 = vmul.u32.u64.low 3435973837, %v363_v17  ;;  %v8679_v5 = vmul.u32.u64.high 3435973837, %v363_v17, %v8678_v45 }
 0x192   : > { %v5317_v31 = vmul.f32 %v5157_v18, %v3480_v30  ;;  %v2920_v9 = vsel %vm2600_vm3, %v2760_v49, %v1688_v47  ;;  %vm2203_vm14 = vcmp.ne.s32.totalorder %v841_v4, 0  ;;  %vm2363_vm0 = vcmp.lt.s32.totalorder %v841_v4, 0 }
 0x193   : > { %5558 = vst.msk [vmem:[%s6806_s30 + $0x3f8] sm:$0xff] %vm222_vm1, %v5398_v56  ;;  %vm3080_vm5 = vcmp.ge.s32.totalorder %v2920_v9, 2  ;;  %vm3240_vm8 = vcmp.lt.s32.totalorder %v2920_v9, 34  ;;  %v2683_v6 = vadd.s32 40, %v841_v4  ;;  %v8689_v25 = vadd.f32 %v8364_v23, %v8302_v46  ;;  %vm2523_vm7 = vmand %vm2363_vm0, %vm2203_vm14  ;;  %v8705_v46 = vpop.f32.mrb[54].mxu0 }
 0x194   : > { %5477 = vst.msk [vmem:[%s6806_s30 + $0x170] sm:$0xff] %vm222_vm1, %v5317_v31  ;;  %vm3400_vm4 = vmand %vm3080_vm5, %vm3240_vm8  ;;  %v282_v26 = vadd.s32 304, %v6884_v50  ;;  %v362_v18 = vadd.s32 944, %v6884_v50  ;;  %v8696_v28 = vadd.f32 %v8364_v23, %v8307_v37  ;;  %v8700_v53 = vadd.f32 %v8364_v23, %v8309_v34 }
 0x195   : > { %v3560_v16 = vsel %vm3400_vm4, 1.0, %v10107_v10  ;;  %v8703_v61 = vadd.s32 328, %v6884_v50  ;;  %v2843_v15 = vsel %vm2523_vm7, %v2683_v6, %v841_v4  ;;  %v1719_v35 = vshrl.u32 %v8679_v5, 5  ;;  %v8743_v5 = vpop.f32.mrb[54].mxu1 }
 0x196   : > { %v5397_v33 = vmul.f32 %v5237_v32, %v3560_v16  ;;  %v8710_v57 = vadd.f32 %v8364_v23, %v8336_v14  ;;  %vm3003_vm9 = vcmp.ge.s32.totalorder %v2843_v15, 2  ;;  %vm3163_vm11 = vcmp.lt.s32.totalorder %v2843_v15, 34 }
 0x197   : > { %v8712_v37 = vmul.u32.u64.low 3435973837, %v282_v26  ;;  %v8713_v0 = vmul.u32.u64.high 3435973837, %v282_v26, %v8712_v37  ;;  %vm3323_vm2 = vmand %vm3003_vm9, %vm3163_vm11  ;;  %v1720_v34 = vmul.u32 40, %v1719_v35  ;;  %v5240_v8 = vmax.f32 %v8689_v25, 0.0 }
 0x198   : > { %5557 = vst.msk [vmem:[%s6806_s30 + $0x3f0] sm:$0xff] %vm222_vm1, %v5397_v33  ;;  %v8718_v3 = vmul.u32.u64.low 3435973837, %v362_v18  ;;  %v8719_v59 = vmul.u32.u64.high 3435973837, %v362_v18, %v8718_v3  ;;  %v3483_v47 = vsel %vm3323_vm2, 1.0, %v10107_v10  ;;  %v5159_v14 = vmax.f32 %v8696_v28, 0.0 }
 0x199   : > { %v8724_v32 = vmul.u32.u64.low 3435973837, %v8703_v61  ;;  %v8725_v11 = vmul.u32.u64.high 3435973837, %v8703_v61, %v8724_v32  ;;  %v5320_v41 = vmul.f32 %v5160_v20, %v3483_v47  ;;  %v1721_v49 = vsub.s32 %v363_v17, %v1720_v34 }
 0x19a   : > { %v5239_v56 = vmax.f32 %v8700_v53, 0.0  ;;  %v8729_v30 = vadd.s32 968, %v6884_v50  ;;  %v828_v4 = vshrl.u32 %v8713_v0, 5  ;;  %v5162_v31 = vmax.f32 %v8710_v57, 0.0 }
 0x19b   : > { %v8735_v9 = vadd.f32 %v8364_v23, %v8338_v29  ;;  %v8738_v45 = vadd.s32 320, %v6884_v50  ;;  %5480 = vst.msk [vmem:[%s6806_s30 + $0x188] sm:$0xff] %vm222_vm1, %v5320_v41  ;;  %vm2283_vm6 = vcmp.ne.s32.totalorder %v1721_v49, 0  ;;  %vm2443_vm10 = vcmp.lt.s32.totalorder %v1721_v49, 0 }
 0x19c   : > { %v2763_v17 = vadd.s32 40, %v1721_v49  ;;  %v1708_v20 = vshrl.u32 %v8719_v59, 5  ;;  %vm2603_vm12 = vmand %vm2443_vm10, %vm2283_vm6  ;;  %v829_v6 = vmul.u32 40, %v828_v4  ;;  %v861_v25 = vshrl.u32 %v8725_v11, 5  ;;  %v8762_v11 = vpop.f32.mrb[55].mxu0 }
 0x19d   : > { %v8747_v16 = vmul.u32.u64.low 3435973837, %v8729_v30  ;;  %v8748_v29 = vmul.u32.u64.high 3435973837, %v8729_v30, %v8747_v16  ;;  %v8752_v35 = vadd.f32 %v8364_v23, %v8340_v21  ;;  %v8755_v37 = vadd.s32 960, %v6884_v50 }
 0x19e   : > { %v2923_v33 = vsel %vm2603_vm12, %v2763_v17, %v1721_v49  ;;  %v1709_v15 = vmul.u32 40, %v1708_v20  ;;  %v830_v0 = vsub.s32 %v282_v26, %v829_v6  ;;  %v862_v34 = vmul.u32 40, %v861_v25  ;;  %v8765_v49 = vpop.f32.mrb[55].mxu1 }
 0x19f   : > { %vm3083_vm13 = vcmp.ge.s32.totalorder %v2923_v33, 2  ;;  %vm3243_vm15 = vcmp.lt.s32.totalorder %v2923_v33, 34  ;;  %v5242_v59 = vmax.f32 %v8735_v9, 0.0  ;;  %v1741_v20 = vshrl.u32 %v8748_v29, 5 }
 0x1a0   : > { %vm3403_vm3 = vmand %vm3083_vm13, %vm3243_vm15  ;;  %v1710_v3 = vsub.s32 %v362_v18, %v1709_v15  ;;  %v8759_v47 = vmul.u32.u64.low 3435973837, %v8738_v45  ;;  %v8760_v32 = vmul.u32.u64.high 3435973837, %v8738_v45, %v8759_v47  ;;  %vm2202_vm5 = vcmp.ne.s32.totalorder %v830_v0, 0 }
 0x1a1   : > { %v3563_v21 = vsel %vm3403_vm3, 1.0, %v10107_v10  ;;  %vm2362_vm8 = vcmp.lt.s32.totalorder %v830_v0, 0  ;;  %v2682_v41 = vadd.s32 40, %v830_v0  ;;  %v863_v17 = vsub.s32 %v8703_v61, %v862_v34 }
 0x1a2   : > { %v5400_v26 = vmul.f32 %v5240_v8, %v3563_v21  ;;  %vm2522_vm14 = vmand %vm2362_vm8, %vm2202_vm5  ;;  %vm2282_vm0 = vcmp.ne.s32.totalorder %v1710_v3, 0  ;;  %vm2442_vm4 = vcmp.lt.s32.totalorder %v1710_v3, 0  ;;  %v2762_v18 = vadd.s32 40, %v1710_v3 }
 0x1a3   : > { %v2842_v4 = vsel %vm2522_vm14, %v2682_v41, %v830_v0  ;;  %vm2602_vm7 = vmand %vm2442_vm4, %vm2282_vm0  ;;  %v5161_v6 = vmax.f32 %v8752_v35, 0.0  ;;  %v850_v16 = vshrl.u32 %v8760_v32, 5  ;;  %vm2205_vm12 = vcmp.ne.s32.totalorder %v863_v17, 0 }
 0x1a4   : > { %5560 = vst.msk [vmem:[%s6806_s30 + $0x408] sm:$0xff] %vm222_vm1, %v5400_v26  ;;  %vm3002_vm9 = vcmp.ge.s32.totalorder %v2842_v4, 2  ;;  %vm3162_vm11 = vcmp.lt.s32.totalorder %v2842_v4, 34  ;;  %v2922_v25 = vsel %vm2602_vm7, %v2762_v18, %v1710_v3  ;;  %vm2365_vm13 = vcmp.lt.s32.totalorder %v863_v17, 0  ;;  %v8785_v26 = vpop.f32.mrb[56].mxu0  ;;  %v8794_v18 = vpop.f32.mrb[56].mxu1 }
 0x1a5   : > { %vm3322_vm2 = vmand %vm3002_vm9, %vm3162_vm11  ;;  %vm3082_vm6 = vcmp.ge.s32.totalorder %v2922_v25, 2  ;;  %vm3242_vm10 = vcmp.lt.s32.totalorder %v2922_v25, 34  ;;  %v2685_v61 = vadd.s32 40, %v863_v17  ;;  %v1742_v29 = vmul.u32 40, %v1741_v20 }
 0x1a6   : > { %v3482_v8 = vsel %vm3322_vm2, 1.0, %v10107_v10  ;;  %vm3402_vm15 = vmand %vm3082_vm6, %vm3242_vm10  ;;  %v851_v33 = vmul.u32 40, %v850_v16  ;;  %v8778_v34 = vmul.u32.u64.low 3435973837, %v8755_v37  ;;  %v8779_v3 = vmul.u32.u64.high 3435973837, %v8755_v37, %v8778_v34  ;;  %v8810_v16 = vld [vmem:[%s10032_s2] ss:$0 sm:$0xff] }
 0x1a7   : > { %v5319_v15 = vmul.f32 %v5159_v14, %v3482_v8  ;;  %v3562_v0 = vsel %vm3402_vm15, 1.0, %v10107_v10  ;;  %vm2525_vm3 = vmand %vm2365_vm13, %vm2205_vm12  ;;  %v1743_v21 = vsub.s32 %v8729_v30, %v1742_v29  ;;  %v8791_v28 = vadd.f32 %v8364_v23, %v8342_v43 }
 0x1a8   : > { %v5399_v47 = vmul.f32 %v5239_v56, %v3562_v0  ;;  %v2845_v32 = vsel %vm2525_vm3, %v2685_v61, %v863_v17  ;;  %v852_v41 = vsub.s32 %v8738_v45, %v851_v33  ;;  %v287_v14 = vadd.s32 344, %v6884_v50 }
 0x1a9   : > { %5479 = vst.msk [vmem:[%s6806_s30 + $0x180] sm:$0xff] %vm222_vm1, %v5319_v15  ;;  %vm3005_vm5 = vcmp.ge.s32.totalorder %v2845_v32, 2  ;;  %vm3165_vm8 = vcmp.lt.s32.totalorder %v2845_v32, 34  ;;  %vm2285_vm0 = vcmp.ne.s32.totalorder %v1743_v21, 0  ;;  %vm2445_vm4 = vcmp.lt.s32.totalorder %v1743_v21, 0  ;;  %v8824_v15 = vpop.f32.mrb[57].mxu0 }
 0x1aa   : > { %5559 = vst.msk [vmem:[%s6806_s30 + $0x400] sm:$0xff] %vm222_vm1, %v5399_v47  ;;  %vm3325_vm14 = vmand %vm3005_vm5, %vm3165_vm8  ;;  %v2765_v53 = vadd.s32 40, %v1743_v21  ;;  %vm2204_vm7 = vcmp.ne.s32.totalorder %v852_v41, 0  ;;  %vm2364_vm11 = vcmp.lt.s32.totalorder %v852_v41, 0  ;;  %v2684_v30 = vadd.s32 40, %v852_v41 }
 0x1ab   : > { %v3485_v56 = vsel %vm3325_vm14, 1.0, %v10107_v10  ;;  %vm2605_vm9 = vmand %vm2445_vm4, %vm2285_vm0  ;;  %v1730_v43 = vshrl.u32 %v8779_v3, 5  ;;  %v8802_v4 = vmul.u32.u64.low 3435973837, %v287_v14  ;;  %v8803_v17 = vmul.u32.u64.high 3435973837, %v287_v14, %v8802_v4 }
 0x1ac   : > { %v5322_v23 = vmul.f32 %v5162_v31, %v3485_v56  ;;  %v2925_v45 = vsel %vm2605_vm9, %v2765_v53, %v1743_v21  ;;  %vm2524_vm2 = vmand %vm2364_vm11, %vm2204_vm7  ;;  %v8814_v57 = vadd.f32 %v8810_v16, %v8357_v2  ;;  %v367_v31 = vadd.s32 984, %v6884_v50 }
 0x1ad   : > { %vm3085_vm6 = vcmp.ge.s32.totalorder %v2925_v45, 2  ;;  %vm3245_vm10 = vcmp.lt.s32.totalorder %v2925_v45, 34  ;;  %v2844_v20 = vsel %vm2524_vm2, %v2684_v30, %v852_v41  ;;  %v1731_v25 = vmul.u32 40, %v1730_v43 }
 0x1ae   : > { %5482 = vst.msk [vmem:[%s6806_s30 + $0x198] sm:$0xff] %vm222_vm1, %v5322_v23  ;;  %vm3405_vm12 = vmand %vm3085_vm6, %vm3245_vm10  ;;  %vm3004_vm13 = vcmp.ge.s32.totalorder %v2844_v20, 2  ;;  %vm3164_vm15 = vcmp.lt.s32.totalorder %v2844_v20, 34  ;;  %v8821_v29 = vadd.f32 %v8810_v16, %v8359_v13  ;;  %v286_v33 = vadd.s32 336, %v6884_v50 }
 0x1af   : > { %v3565_v8 = vsel %vm3405_vm12, 1.0, %v10107_v10  ;;  %vm3324_vm3 = vmand %vm3004_vm13, %vm3164_vm15  ;;  %v1732_v61 = vsub.s32 %v8755_v37, %v1731_v25  ;;  %v883_v34 = vshrl.u32 %v8803_v17, 5  ;;  %v8832_v3 = vadd.f32 %v8810_v16, %v8370_v55 }
 0x1b0   : > { %v5402_v2 = vmul.f32 %v5242_v59, %v3565_v8  ;;  %v3484_v0 = vsel %vm3324_vm3, 1.0, %v10107_v10  ;;  %v5241_v9 = vmax.f32 %v8791_v28, 0.0  ;;  %v5164_v55 = vmax.f32 %v8814_v57, 0.0  ;;  %v8866_v57 = vpop.f32.mrb[58].mxu0 }
 0x1b1   : > { %v5321_v13 = vmul.f32 %v5161_v6, %v3484_v0  ;;  %vm2284_vm5 = vcmp.ne.s32.totalorder %v1732_v61, 0  ;;  %vm2444_vm8 = vcmp.lt.s32.totalorder %v1732_v61, 0  ;;  %v2764_v37 = vadd.s32 40, %v1732_v61  ;;  %v8848_v6 = vpop.f32.mrb[57].mxu1 }
 0x1b2   : > { %5562 = vst.msk [vmem:[%s6806_s30 + $0x418] sm:$0xff] %vm222_vm1, %v5402_v2  ;;  %vm2604_vm14 = vmand %vm2444_vm8, %vm2284_vm5  ;;  %v884_v59 = vmul.u32 40, %v883_v34  ;;  %v8839_v47 = vmul.u32.u64.low 3435973837, %v367_v31  ;;  %v8840_v32 = vmul.u32.u64.high 3435973837, %v367_v31, %v8839_v47  ;;  %v366_v56 = vadd.s32 976, %v6884_v50 }
 0x1b3   : > { %5481 = vst.msk [vmem:[%s6806_s30 + $0x190] sm:$0xff] %vm222_vm1, %v5321_v13  ;;  %v2924_v21 = vsel %vm2604_vm14, %v2764_v37, %v1732_v61  ;;  %v8845_v41 = vmul.u32.u64.low 3435973837, %v286_v33  ;;  %v8846_v35 = vmul.u32.u64.high 3435973837, %v286_v33, %v8845_v41  ;;  %v5244_v28 = vmax.f32 %v8821_v29, 0.0 }
 0x1b4   : > { %vm3084_vm0 = vcmp.ge.s32.totalorder %v2924_v21, 2  ;;  %vm3244_vm4 = vcmp.lt.s32.totalorder %v2924_v21, 34  ;;  %v885_v53 = vsub.s32 %v287_v14, %v884_v59  ;;  %v5163_v30 = vmax.f32 %v8832_v3, 0.0  ;;  %v8887_v41 = vpop.f32.mrb[58].mxu1 }
 0x1b5   : > { %vm3404_vm7 = vmand %vm3084_vm0, %vm3244_vm4  ;;  %v8854_v43 = vadd.s32 360, %v6884_v50  ;;  %v8857_v23 = vadd.s32 1000, %v6884_v50  ;;  %v1763_v17 = vshrl.u32 %v8840_v32, 5  ;;  %v872_v20 = vshrl.u32 %v8846_v35, 5 }
 0x1b6   : > { %v3564_v45 = vsel %vm3404_vm7, 1.0, %v10107_v10  ;;  %vm2207_vm9 = vcmp.ne.s32.totalorder %v885_v53, 0  ;;  %vm2367_vm11 = vcmp.lt.s32.totalorder %v885_v53, 0  ;;  %v2687_v4 = vadd.s32 40, %v885_v53 }
 0x1b7   : > { %v5401_v14 = vmul.f32 %v5241_v9, %v3564_v45  ;;  %vm2527_vm2 = vmand %vm2367_vm11, %vm2207_vm9  ;;  %v8864_v25 = vadd.f32 %v8810_v16, %v8372_v27  ;;  %v8868_v61 = vmul.u32.u64.low 3435973837, %v366_v56  ;;  %v8869_v2 = vmul.u32.u64.high 3435973837, %v366_v56, %v8868_v61 }
 0x1b8   : > { %v2847_v8 = vsel %vm2527_vm2, %v2687_v4, %v885_v53  ;;  %v8873_v0 = vadd.f32 %v8810_v16, %v8388_v42  ;;  %v1764_v34 = vmul.u32 40, %v1763_v17  ;;  %v873_v13 = vmul.u32 40, %v872_v20  ;;  %v8898_v17 = vpop.f32.mrb[59].mxu0 }
 0x1b9   : > { %5561 = vst.msk [vmem:[%s6806_s30 + $0x410] sm:$0xff] %vm222_vm1, %v5401_v14  ;;  %vm3007_vm6 = vcmp.ge.s32.totalorder %v2847_v8, 2  ;;  %vm3167_vm10 = vcmp.lt.s32.totalorder %v2847_v8, 34  ;;  %v8878_v27 = vmul.u32.u64.low 3435973837, %v8854_v43  ;;  %v8879_v37 = vmul.u32.u64.high 3435973837, %v8854_v43, %v8878_v27  ;;  %v8926_v3 = vpop.f32.mrb[60].mxu0 }
 0x1ba   : > { %vm3327_vm12 = vmand %vm3007_vm6, %vm3167_vm10  ;;  %v8882_v9 = vmul.u32.u64.low 3435973837, %v8857_v23  ;;  %v8883_v59 = vmul.u32.u64.high 3435973837, %v8857_v23, %v8882_v9  ;;  %v1765_v42 = vsub.s32 %v367_v31, %v1764_v34  ;;  %v874_v32 = vsub.s32 %v286_v33, %v873_v13 }
 0x1bb   : > { %v3487_v47 = vsel %vm3327_vm12, 1.0, %v10107_v10  ;;  %v5243_v21 = vmax.f32 %v8864_v25, 0.0  ;;  %v1752_v53 = vshrl.u32 %v8869_v2, 5  ;;  %v5166_v45 = vmax.f32 %v8873_v0, 0.0 }
 0x1bc   : > { %v5324_v35 = vmul.f32 %v5164_v55, %v3487_v47  ;;  %v8893_v4 = vadd.f32 %v8810_v16, %v8396_v19  ;;  %vm2287_vm13 = vcmp.ne.s32.totalorder %v1765_v42, 0  ;;  %vm2447_vm15 = vcmp.lt.s32.totalorder %v1765_v42, 0 }
 0x1bd   : > { %v2767_v14 = vadd.s32 40, %v1765_v42  ;;  %vm2206_vm3 = vcmp.ne.s32.totalorder %v874_v32, 0  ;;  %vm2607_vm5 = vmand %vm2447_vm15, %vm2287_vm13  ;;  %vm2366_vm8 = vcmp.lt.s32.totalorder %v874_v32, 0  ;;  %v2686_v31 = vadd.s32 40, %v874_v32 }
 0x1be   : > { %5484 = vst.msk [vmem:[%s6806_s30 + $0x1a8] sm:$0xff] %vm222_vm1, %v5324_v35  ;;  %v1753_v33 = vmul.u32 40, %v1752_v53  ;;  %v905_v55 = vshrl.u32 %v8879_v37, 5  ;;  %vm2526_vm14 = vmand %vm2366_vm8, %vm2206_vm3  ;;  %v1785_v8 = vshrl.u32 %v8883_v59, 5  ;;  %v8902_v19 = vadd.s32 352, %v6884_v50  ;;  %v8909_v59 = vpop.f32.mrb[59].mxu1 }
 0x1bf   : > { %v2927_v20 = vsel %vm2607_vm5, %v2767_v14, %v1765_v42  ;;  %v8906_v61 = vadd.f32 %v8810_v16, %v8425_v40  ;;  %v2846_v2 = vsel %vm2526_vm14, %v2686_v31, %v874_v32  ;;  %v368_v31 = vadd.s32 992, %v6884_v50 }
 0x1c0   : > { %vm3087_vm0 = vcmp.ge.s32.totalorder %v2927_v20, 2  ;;  %vm3247_vm4 = vcmp.lt.s32.totalorder %v2927_v20, 34  ;;  %v1754_v34 = vsub.s32 %v366_v56, %v1753_v33  ;;  %vm3006_vm9 = vcmp.ge.s32.totalorder %v2846_v2, 2 }
 0x1c1   : > { %vm3407_vm7 = vmand %vm3087_vm0, %vm3247_vm4  ;;  %vm3166_vm11 = vcmp.lt.s32.totalorder %v2846_v2, 34  ;;  %v906_v13 = vmul.u32 40, %v905_v55  ;;  %v1786_v27 = vmul.u32 40, %v1785_v8  ;;  %v8937_v8 = vadd.f32 %v8810_v16, %v8451_v38 }
 0x1c2   : > { %v3567_v37 = vsel %vm3407_vm7, 1.0, %v10107_v10  ;;  %vm3326_vm2 = vmand %vm3006_vm9, %vm3166_vm11  ;;  %vm2286_vm6 = vcmp.ne.s32.totalorder %v1754_v34, 0  ;;  %vm2446_vm10 = vcmp.lt.s32.totalorder %v1754_v34, 0  ;;  %v2766_v9 = vadd.s32 40, %v1754_v34 }
 0x1c3   : > { %v5404_v40 = vmul.f32 %v5244_v28, %v3567_v37  ;;  %v3486_v56 = vsel %vm3326_vm2, 1.0, %v10107_v10  ;;  %vm2606_vm12 = vmand %vm2446_vm10, %vm2286_vm6  ;;  %v907_v47 = vsub.s32 %v8854_v43, %v906_v13  ;;  %v1787_v42 = vsub.s32 %v8857_v23, %v1786_v27 }
 0x1c4   : > { %v5323_v32 = vmul.f32 %v5163_v30, %v3486_v56  ;;  %v2926_v35 = vsel %vm2606_vm12, %v2766_v9, %v1754_v34  ;;  %v8919_v53 = vmul.u32.u64.low 3435973837, %v8902_v19  ;;  %v8920_v14 = vmul.u32.u64.high 3435973837, %v8902_v19, %v8919_v53 }
 0x1c5   : > { %5564 = vst.msk [vmem:[%s6806_s30 + $0x428] sm:$0xff] %vm222_vm1, %v5404_v40  ;;  %vm3086_vm13 = vcmp.ge.s32.totalorder %v2926_v35, 2  ;;  %vm3246_vm15 = vcmp.lt.s32.totalorder %v2926_v35, 34  ;;  %vm2209_vm3 = vcmp.ne.s32.totalorder %v907_v47, 0  ;;  %vm2369_vm5 = vcmp.lt.s32.totalorder %v907_v47, 0 }
 0x1c6   : > { %5483 = vst.msk [vmem:[%s6806_s30 + $0x1a0] sm:$0xff] %vm222_vm1, %v5323_v32  ;;  %vm3406_vm8 = vmand %vm3086_vm13, %vm3246_vm15  ;;  %v2689_v29 = vadd.s32 40, %v907_v47  ;;  %vm2289_vm14 = vcmp.ne.s32.totalorder %v1787_v42, 0  ;;  %vm2449_vm0 = vcmp.lt.s32.totalorder %v1787_v42, 0  ;;  %v2769_v28 = vadd.s32 40, %v1787_v42 }
 0x1c7   : > { %v3566_v30 = vsel %vm3406_vm8, 1.0, %v10107_v10  ;;  %vm2529_vm4 = vmand %vm2369_vm5, %vm2209_vm3  ;;  %v5246_v43 = vmax.f32 %v8893_v4, 0.0  ;;  %v5165_v23 = vmax.f32 %v8906_v61, 0.0  ;;  %v894_v20 = vshrl.u32 %v8920_v14, 5  ;;  %v8946_v61 = vpop.f32.mrb[60].mxu1 }
 0x1c8   : > { %v5403_v33 = vmul.f32 %v5243_v21, %v3566_v30  ;;  %v2849_v55 = vsel %vm2529_vm4, %v2689_v29, %v907_v47  ;;  %vm2609_vm7 = vmand %vm2449_vm0, %vm2289_vm14  ;;  %v291_v4 = vadd.s32 376, %v6884_v50  ;;  %v8944_v21 = vadd.f32 %v8810_v16, %v8466_v44 }
 0x1c9   : > { %vm3009_vm9 = vcmp.ge.s32.totalorder %v2849_v55, 2  ;;  %vm3169_vm11 = vcmp.lt.s32.totalorder %v2849_v55, 34  ;;  %v2929_v2 = vsel %vm2609_vm7, %v2769_v28, %v1787_v42  ;;  %v895_v25 = vmul.u32 40, %v894_v20  ;;  %v8985_v20 = vpop.f32.mrb[61].mxu1 }
 0x1ca   : > { %5563 = vst.msk [vmem:[%s6806_s30 + $0x420] sm:$0xff] %vm222_vm1, %v5403_v33  ;;  %vm3329_vm2 = vmand %vm3009_vm9, %vm3169_vm11  ;;  %vm3089_vm6 = vcmp.ge.s32.totalorder %v2929_v2, 2  ;;  %vm3249_vm10 = vcmp.lt.s32.totalorder %v2929_v2, 34  ;;  %v8949_v34 = vmul.u32.u64.low 3435973837, %v368_v31  ;;  %v8950_v13 = vmul.u32.u64.high 3435973837, %v368_v31, %v8949_v34 }
 0x1cb   : > { %v3489_v38 = vsel %vm3329_vm2, 1.0, %v10107_v10  ;;  %vm3409_vm12 = vmand %vm3089_vm6, %vm3249_vm10  ;;  %v371_v27 = vadd.s32 1016, %v6884_v50  ;;  %v896_v40 = vsub.s32 %v8902_v19, %v895_v25  ;;  %v5245_v44 = vmax.f32 %v8937_v8, 0.0 }
 0x1cc   : > { %v5326_v37 = vmul.f32 %v5166_v45, %v3489_v38  ;;  %v3569_v9 = vsel %vm3409_vm12, 1.0, %v10107_v10  ;;  %v8958_v47 = vmul.u32.u64.low 3435973837, %v291_v4  ;;  %v8959_v42 = vmul.u32.u64.high 3435973837, %v291_v4, %v8958_v47 }
 0x1cd   : > { %v5406_v56 = vmul.f32 %v5246_v43, %v3569_v9  ;;  %v290_v32 = vadd.s32 368, %v6884_v50  ;;  %vm2208_vm13 = vcmp.ne.s32.totalorder %v896_v40, 0  ;;  %vm2368_vm15 = vcmp.lt.s32.totalorder %v896_v40, 0 }
 0x1ce   : > { %5486 = vst.msk [vmem:[%s6806_s30 + $0x1b8] sm:$0xff] %vm222_vm1, %v5326_v37  ;;  %v2688_v35 = vadd.s32 40, %v896_v40  ;;  %v8966_v0 = vadd.f32 %v8810_v16, %v8477_v7  ;;  %vm2528_vm3 = vmand %vm2368_vm15, %vm2208_vm13  ;;  %v1774_v45 = vshrl.u32 %v8950_v13, 5  ;;  %v8976_v14 = vadd.f32 %v8810_v16, %v8479_v36  ;;  %v8982_v7 = vpop.f32.mrb[61].mxu0 }
 0x1cf   : > { %5566 = vst.msk [vmem:[%s6806_s30 + $0x438] sm:$0xff] %vm222_vm1, %v5406_v56  ;;  %v8971_v19 = vmul.u32.u64.low 3435973837, %v371_v27  ;;  %v8972_v53 = vmul.u32.u64.high 3435973837, %v371_v27, %v8971_v19  ;;  %v8978_v28 = vmul.u32.u64.low 3435973837, %v290_v32  ;;  %v8979_v30 = vmul.u32.u64.high 3435973837, %v290_v32, %v8978_v28 }
 0x1d0   : > { %v2848_v29 = vsel %vm2528_vm3, %v2688_v35, %v896_v40  ;;  %v370_v43 = vadd.s32 1008, %v6884_v50  ;;  %v1775_v33 = vmul.u32 40, %v1774_v45  ;;  %v927_v55 = vshrl.u32 %v8959_v42, 5 }
 0x1d1   : > { %vm3008_vm5 = vcmp.ge.s32.totalorder %v2848_v29, 2  ;;  %vm3168_vm8 = vcmp.lt.s32.totalorder %v2848_v29, 34  ;;  %v5168_v36 = vmax.f32 %v8944_v21, 0.0  ;;  %v5248_v2 = vmax.f32 %v8966_v0, 0.0 }
 0x1d2   : > { %vm3328_vm14 = vmand %vm3008_vm5, %vm3168_vm8  ;;  %v8989_v25 = vmul.u32.u64.low 3435973837, %v370_v43  ;;  %v8990_v38 = vmul.u32.u64.high 3435973837, %v370_v43, %v8989_v25  ;;  %v1776_v13 = vsub.s32 %v368_v31, %v1775_v33  ;;  %v928_v37 = vmul.u32 40, %v927_v55 }
 0x1d3   : > { %v3488_v34 = vsel %vm3328_vm14, 1.0, %v10107_v10  ;;  %v1807_v9 = vshrl.u32 %v8972_v53, 5  ;;  %v916_v56 = vshrl.u32 %v8979_v30, 5  ;;  %v5167_v47 = vmax.f32 %v8976_v14, 0.0  ;;  %v9006_v30 = vpop.f32.mrb[62].mxu0 }
 0x1d4   : > { %v5325_v40 = vmul.f32 %v5165_v23, %v3488_v34  ;;  %v8997_v42 = vadd.s32 392, %v6884_v50  ;;  %vm2288_vm0 = vcmp.ne.s32.totalorder %v1776_v13, 0  ;;  %vm2448_vm4 = vcmp.lt.s32.totalorder %v1776_v13, 0 }
 0x1d5   : > { %v2768_v21 = vadd.s32 40, %v1776_v13  ;;  %v929_v35 = vsub.s32 %v291_v4, %v928_v37  ;;  %vm2608_vm7 = vmand %vm2448_vm4, %vm2288_vm0  ;;  %v1808_v45 = vmul.u32 40, %v1807_v9  ;;  %v917_v31 = vmul.u32 40, %v916_v56 }
 0x1d6   : > { %5485 = vst.msk [vmem:[%s6806_s30 + $0x1b0] sm:$0xff] %vm222_vm1, %v5325_v40  ;;  %v1796_v19 = vshrl.u32 %v8990_v38, 5  ;;  %v9004_v23 = vadd.f32 %v8810_v16, %v8491_v1  ;;  %v9009_v25 = vmul.u32.u64.low 3435973837, %v8997_v42  ;;  %v9010_v38 = vmul.u32.u64.high 3435973837, %v8997_v42, %v9009_v25  ;;  %v9012_v1 = vpop.f32.mrb[62].mxu1 }
 0x1d7   : > { %v2928_v53 = vsel %vm2608_vm7, %v2768_v21, %v1776_v13  ;;  %vm2211_vm9 = vcmp.ne.s32.totalorder %v929_v35, 0  ;;  %vm2371_vm11 = vcmp.lt.s32.totalorder %v929_v35, 0  ;;  %v2691_v29 = vadd.s32 40, %v929_v35 }
 0x1d8   : > { %vm3088_vm2 = vcmp.ge.s32.totalorder %v2928_v53, 2  ;;  %vm3248_vm6 = vcmp.lt.s32.totalorder %v2928_v53, 34  ;;  %vm2531_vm10 = vmand %vm2371_vm11, %vm2211_vm9  ;;  %v1809_v28 = vsub.s32 %v371_v27, %v1808_v45  ;;  %v918_v4 = vsub.s32 %v290_v32, %v917_v31 }
 0x1d9   : > { %vm3408_vm12 = vmand %vm3088_vm2, %vm3248_vm6  ;;  %v2851_v33 = vsel %vm2531_vm10, %v2691_v29, %v929_v35  ;;  %v1797_v55 = vmul.u32 40, %v1796_v19  ;;  %v949_v21 = vshrl.u32 %v9010_v38, 5  ;;  %v4568_v8 = vadd.f32 %v8810_v16, %v8507_v24 }
 0x1da   : > { %v3568_v34 = vsel %vm3408_vm12, 1.0, %v10107_v10  ;;  %vm3011_vm13 = vcmp.ge.s32.totalorder %v2851_v33, 2  ;;  %vm3171_vm15 = vcmp.lt.s32.totalorder %v2851_v33, 34  ;;  %vm2291_vm3 = vcmp.ne.s32.totalorder %v1809_v28, 0 }
 0x1db   : > { %v5405_v27 = vmul.f32 %v5245_v44, %v3568_v34  ;;  %vm3331_vm5 = vmand %vm3011_vm13, %vm3171_vm15  ;;  %vm2451_vm8 = vcmp.lt.s32.totalorder %v1809_v28, 0  ;;  %v2771_v32 = vadd.s32 40, %v1809_v28  ;;  %vm2210_vm14 = vcmp.ne.s32.totalorder %v918_v4, 0  ;;  %v9023_v44 = vpop.f32.mrb[63].mxu0 }
 0x1dc   : > { %v3491_v13 = vsel %vm3331_vm5, 1.0, %v10107_v10  ;;  %vm2611_vm0 = vmand %vm2451_vm8, %vm2291_vm3  ;;  %vm2370_vm4 = vcmp.lt.s32.totalorder %v918_v4, 0  ;;  %v2690_v37 = vadd.s32 40, %v918_v4  ;;  %v1798_v9 = vsub.s32 %v370_v43, %v1797_v55 }
 0x1dd   : > { %5565 = vst.msk [vmem:[%s6806_s30 + $0x430] sm:$0xff] %vm222_vm1, %v5405_v27  ;;  %v5328_v40 = vmul.f32 %v5168_v36, %v3491_v13  ;;  %v2931_v56 = vsel %vm2611_vm0, %v2771_v32, %v1809_v28  ;;  %vm2530_vm7 = vmand %vm2370_vm4, %vm2210_vm14  ;;  %v5247_v45 = vmax.f32 %v9004_v23, 0.0  ;;  %v950_v24 = vmul.u32 40, %v949_v21 }
 0x1de   : > { %vm3091_vm9 = vcmp.ge.s32.totalorder %v2931_v56, 2  ;;  %vm3251_vm11 = vcmp.lt.s32.totalorder %v2931_v56, 34  ;;  %v2850_v35 = vsel %vm2530_vm7, %v2690_v37, %v918_v4  ;;  %vm2290_vm2 = vcmp.ne.s32.totalorder %v1798_v9, 0 }
 0x1df   : > { %5488 = vst.msk [vmem:[%s6806_s30 + $0x1c8] sm:$0xff] %vm222_vm1, %v5328_v40  ;;  %vm3411_vm6 = vmand %vm3091_vm9, %vm3251_vm11  ;;  %vm3010_vm10 = vcmp.ge.s32.totalorder %v2850_v35, 2  ;;  %vm3170_vm12 = vcmp.lt.s32.totalorder %v2850_v35, 34  ;;  %vm2450_vm13 = vcmp.lt.s32.totalorder %v1798_v9, 0  ;;  %v2770_v43 = vadd.s32 40, %v1798_v9 }
 0x1e0   : > { %v3571_v36 = vsel %vm3411_vm6, 1.0, %v10107_v10  ;;  %vm3330_vm15 = vmand %vm3010_vm10, %vm3170_vm12  ;;  %v373_v31 = vadd.s32 1032, %v6884_v50  ;;  %v5170_v29 = vmax.f32 %v4568_v8, 0.0  ;;  %v292_v28 = vadd.s32 384, %v6884_v50  ;;  %v9080_v8 = vpop.f32.mrb[64].mxu0 }
 0x1e1   : > { %v5408_v19 = vmul.f32 %v5248_v2, %v3571_v36  ;;  %v3490_v53 = vsel %vm3330_vm15, 1.0, %v10107_v10  ;;  %vm2610_vm3 = vmand %vm2450_vm13, %vm2290_vm2  ;;  %v951_v55 = vsub.s32 %v8997_v42, %v950_v24  ;;  %v9039_v23 = vadd.f32 %v8810_v16, %v8547_v62  ;;  %v9052_v62 = vpop.f32.mrb[63].mxu1 }
 0x1e2   : > { %v5327_v4 = vmul.f32 %v5167_v47, %v3490_v53  ;;  %v2930_v33 = vsel %vm2610_vm3, %v2770_v43, %v1798_v9  ;;  %v9043_v0 = vmul.u32.u64.low 3435973837, %v373_v31  ;;  %v9044_v2 = vmul.u32.u64.high 3435973837, %v373_v31, %v9043_v0 }
 0x1e3   : > { %5568 = vst.msk [vmem:[%s6806_s30 + $0x448] sm:$0xff] %vm222_vm1, %v5408_v19  ;;  %vm3090_vm5 = vcmp.ge.s32.totalorder %v2930_v33, 2  ;;  %vm3250_vm8 = vcmp.lt.s32.totalorder %v2930_v33, 34  ;;  %vm2213_vm0 = vcmp.ne.s32.totalorder %v951_v55, 0  ;;  %vm2373_vm4 = vcmp.lt.s32.totalorder %v951_v55, 0 }
 0x1e4   : > { %5487 = vst.msk [vmem:[%s6806_s30 + $0x1c0] sm:$0xff] %vm222_vm1, %v5327_v4  ;;  %vm3410_vm14 = vmand %vm3090_vm5, %vm3250_vm8  ;;  %v2693_v14 = vadd.s32 40, %v951_v55  ;;  %v9050_v47 = vadd.f32 %v8810_v16, %v8553_v12  ;;  %v9055_v25 = vmul.u32.u64.low 3435973837, %v292_v28  ;;  %v9056_v38 = vmul.u32.u64.high 3435973837, %v292_v28, %v9055_v25 }
 0x1e5   : > { %v3570_v42 = vsel %vm3410_vm14, 1.0, %v10107_v10  ;;  %vm2533_vm7 = vmand %vm2373_vm4, %vm2213_vm0  ;;  %v372_v34 = vadd.s32 1024, %v6884_v50  ;;  %v9061_v13 = vadd.f32 %v8810_v16, %v8568_v63  ;;  %v9064_v37 = vadd.s32 408, %v6884_v50  ;;  %v9107_v25 = vpop.f32.mrb[65].mxu0 }
 0x1e6   : > { %v5407_v27 = vmul.f32 %v5247_v45, %v3570_v42  ;;  %v2853_v32 = vsel %vm2533_vm7, %v2693_v14, %v951_v55  ;;  %v1829_v12 = vshrl.u32 %v9044_v2, 5  ;;  %v5250_v9 = vmax.f32 %v9039_v23, 0.0 }
 0x1e7   : > { %vm3013_vm9 = vcmp.ge.s32.totalorder %v2853_v32, 2  ;;  %vm3173_vm11 = vcmp.lt.s32.totalorder %v2853_v32, 34  ;;  %v9070_v40 = vmul.u32.u64.low 3435973837, %v372_v34  ;;  %v9071_v56 = vmul.u32.u64.high 3435973837, %v372_v34, %v9070_v40 }
 0x1e8   : > { %5567 = vst.msk [vmem:[%s6806_s30 + $0x440] sm:$0xff] %vm222_vm1, %v5407_v27  ;;  %vm3333_vm2 = vmand %vm3013_vm9, %vm3173_vm11  ;;  %v9075_v63 = vadd.f32 %v8810_v16, %v8581_v39  ;;  %v9078_v21 = vadd.s32 1048, %v6884_v50  ;;  %v1830_v43 = vmul.u32 40, %v1829_v12  ;;  %v938_v36 = vshrl.u32 %v9056_v38, 5 }
 0x1e9   : > { %v3493_v35 = vsel %vm3333_vm2, 1.0, %v10107_v10  ;;  %v5169_v45 = vmax.f32 %v9050_v47, 0.0  ;;  %v5249_v19 = vmax.f32 %v9061_v13, 0.0  ;;  %v1818_v0 = vshrl.u32 %v9071_v56, 5  ;;  %v9105_v47 = vpop.f32.mrb[64].mxu1 }
 0x1ea   : > { %v5330_v24 = vmul.f32 %v5170_v29, %v3493_v35  ;;  %v9087_v53 = vmul.u32.u64.low 3435973837, %v9064_v37  ;;  %v9088_v4 = vmul.u32.u64.high 3435973837, %v9064_v37, %v9087_v53  ;;  %v1831_v39 = vsub.s32 %v373_v31, %v1830_v43 }
 0x1eb   : > { %v939_v33 = vmul.u32 40, %v938_v36  ;;  %v9091_v55 = vmul.u32.u64.low 3435973837, %v9078_v21  ;;  %v9092_v23 = vmul.u32.u64.high 3435973837, %v9078_v21, %v9091_v55  ;;  %v5172_v2 = vmax.f32 %v9075_v63, 0.0  ;;  %v9122_v53 = vpop.f32.mrb[65].mxu1 }
 0x1ec   : > { %5490 = vst.msk [vmem:[%s6806_s30 + $0x1d8] sm:$0xff] %vm222_vm1, %v5330_v24  ;;  %v9100_v29 = vadd.f32 %v8810_v16, %v8590_v51  ;;  %v9103_v14 = vadd.s32 400, %v6884_v50  ;;  %vm2293_vm6 = vcmp.ne.s32.totalorder %v1831_v39, 0  ;;  %vm2453_vm10 = vcmp.lt.s32.totalorder %v1831_v39, 0 }
 0x1ed   : > { %v2773_v31 = vadd.s32 40, %v1831_v39  ;;  %v940_v42 = vsub.s32 %v292_v28, %v939_v33  ;;  %vm2613_vm12 = vmand %vm2453_vm10, %vm2293_vm6  ;;  %v1819_v38 = vmul.u32 40, %v1818_v0  ;;  %v971_v27 = vshrl.u32 %v9088_v4, 5 }
 0x1ee   : > { %v9111_v32 = vmul.u32.u64.low 3435973837, %v9103_v14  ;;  %v9112_v12 = vmul.u32.u64.high 3435973837, %v9103_v14, %v9111_v32  ;;  %v1851_v43 = vshrl.u32 %v9092_v23, 5  ;;  %v9117_v36 = vadd.f32 %v8810_v16, %v8607_v48 }
 0x1ef   : > { %v2933_v51 = vsel %vm2613_vm12, %v2773_v31, %v1831_v39  ;;  %vm2212_vm13 = vcmp.ne.s32.totalorder %v940_v42, 0  ;;  %vm2372_vm15 = vcmp.lt.s32.totalorder %v940_v42, 0  ;;  %v2692_v40 = vadd.s32 40, %v940_v42 }
 0x1f0   : > { %vm3093_vm3 = vcmp.ge.s32.totalorder %v2933_v51, 2  ;;  %vm3253_vm5 = vcmp.lt.s32.totalorder %v2933_v51, 34  ;;  %vm2532_vm8 = vmand %vm2372_vm15, %vm2212_vm13  ;;  %v1820_v56 = vsub.s32 %v372_v34, %v1819_v38  ;;  %v972_v35 = vmul.u32 40, %v971_v27 }
 0x1f1   : > { %vm3413_vm14 = vmand %vm3093_vm3, %vm3253_vm5  ;;  %v2852_v28 = vsel %vm2532_vm8, %v2692_v40, %v940_v42  ;;  %v9120_v24 = vadd.s32 1040, %v6884_v50  ;;  %v1852_v55 = vmul.u32 40, %v1851_v43  ;;  %v960_v23 = vshrl.u32 %v9112_v12, 5  ;;  %v9134_v42 = vpop.f32.mrb[66].mxu0 }
 0x1f2   : > { %v3573_v4 = vsel %vm3413_vm14, 1.0, %v10107_v10  ;;  %vm3012_vm0 = vcmp.ge.s32.totalorder %v2852_v28, 2  ;;  %vm3172_vm4 = vcmp.lt.s32.totalorder %v2852_v28, 34  ;;  %vm2292_vm7 = vcmp.ne.s32.totalorder %v1820_v56, 0 }
 0x1f3   : > { %v5410_v34 = vmul.f32 %v5250_v9, %v3573_v4  ;;  %vm3332_vm9 = vmand %vm3012_vm0, %vm3172_vm4  ;;  %vm2452_vm11 = vcmp.lt.s32.totalorder %v1820_v56, 0  ;;  %v2772_v39 = vadd.s32 40, %v1820_v56  ;;  %v973_v33 = vsub.s32 %v9064_v37, %v972_v35 }
 0x1f4   : > { %v3492_v48 = vsel %vm3332_vm9, 1.0, %v10107_v10  ;;  %vm2612_vm2 = vmand %vm2452_vm11, %vm2292_vm7  ;;  %v9130_v0 = vadd.f32 %v8810_v16, %v8626_v60  ;;  %v1853_v38 = vsub.s32 %v9078_v21, %v1852_v55  ;;  %v5252_v60 = vmax.f32 %v9100_v29, 0.0 }
 0x1f5   : > { %5570 = vst.msk [vmem:[%s6806_s30 + $0x458] sm:$0xff] %vm222_vm1, %v5410_v34  ;;  %v5329_v31 = vmul.f32 %v5169_v45, %v3492_v48  ;;  %v2932_v9 = vsel %vm2612_vm2, %v2772_v39, %v1820_v56  ;;  %vm2215_vm6 = vcmp.ne.s32.totalorder %v973_v33, 0  ;;  %vm2375_vm10 = vcmp.lt.s32.totalorder %v973_v33, 0 }
 0x1f6   : > { %vm3092_vm12 = vcmp.ge.s32.totalorder %v2932_v9, 2  ;;  %vm3252_vm13 = vcmp.lt.s32.totalorder %v2932_v9, 34  ;;  %vm2535_vm15 = vmand %vm2375_vm10, %vm2215_vm6  ;;  %v2695_v37 = vadd.s32 40, %v973_v33  ;;  %v961_v27 = vmul.u32 40, %v960_v23 }
 0x1f7   : > { %5489 = vst.msk [vmem:[%s6806_s30 + $0x1d0] sm:$0xff] %vm222_vm1, %v5329_v31  ;;  %vm3412_vm3 = vmand %vm3092_vm12, %vm3252_vm13  ;;  %v9141_v45 = vmul.u32.u64.low 3435973837, %v9120_v24  ;;  %v9142_v32 = vmul.u32.u64.high 3435973837, %v9120_v24, %v9141_v45  ;;  %vm2295_vm5 = vcmp.ne.s32.totalorder %v1853_v38, 0  ;;  %vm2455_vm8 = vcmp.lt.s32.totalorder %v1853_v38, 0 }
 0x1f8   : > { %v3572_v12 = vsel %vm3412_vm3, 1.0, %v10107_v10  ;;  %v2855_v51 = vsel %vm2535_vm15, %v2695_v37, %v973_v33  ;;  %vm2615_vm4 = vmand %vm2455_vm8, %vm2295_vm5  ;;  %v2775_v21 = vadd.s32 40, %v1853_v38  ;;  %v962_v29 = vsub.s32 %v9103_v14, %v961_v27  ;;  %v9164_v33 = vpop.f32.mrb[66].mxu1 }
 0x1f9   : > { %v5409_v40 = vmul.f32 %v5249_v19, %v3572_v12  ;;  %vm3015_vm14 = vcmp.ge.s32.totalorder %v2855_v51, 2  ;;  %vm3175_vm0 = vcmp.lt.s32.totalorder %v2855_v51, 34  ;;  %v5171_v56 = vmax.f32 %v9117_v36, 0.0 }
 0x1fa   : > { %vm3335_vm7 = vmand %vm3015_vm14, %vm3175_vm0  ;;  %v5251_v35 = vmax.f32 %v9130_v0, 0.0  ;;  %v297_v28 = vadd.s32 424, %v6884_v50  ;;  %v2935_v13 = vsel %vm2615_vm4, %v2775_v21, %v1853_v38  ;;  %v1840_v19 = vshrl.u32 %v9142_v32, 5  ;;  %v9190_v32 = vpop.f32.mrb[67].mxu0 }
 0x1fb   : > { %5569 = vst.msk [vmem:[%s6806_s30 + $0x450] sm:$0xff] %vm222_vm1, %v5409_v40  ;;  %v3495_v43 = vsel %vm3335_vm7, 1.0, %v10107_v10  ;;  %v9156_v4 = vadd.s32 1064, %v6884_v50  ;;  %vm3095_vm9 = vcmp.ge.s32.totalorder %v2935_v13, 2  ;;  %vm3255_vm11 = vcmp.lt.s32.totalorder %v2935_v13, 34 }
 0x1fc   : > { %v5332_v14 = vmul.f32 %v5172_v2, %v3495_v43  ;;  %vm2214_vm2 = vcmp.ne.s32.totalorder %v962_v29, 0  ;;  %vm3415_vm6 = vmand %vm3095_vm9, %vm3255_vm11  ;;  %vm2374_vm10 = vcmp.lt.s32.totalorder %v962_v29, 0  ;;  %v2694_v36 = vadd.s32 40, %v962_v29 }
 0x1fd   : > { %v1841_v34 = vmul.u32 40, %v1840_v19  ;;  %v9162_v39 = vadd.f32 %v8810_v16, %v8653_v54  ;;  %v3575_v48 = vsel %vm3415_vm6, 1.0, %v10107_v10  ;;  %vm2534_vm12 = vmand %vm2374_vm10, %vm2214_vm2  ;;  %v9174_v55 = vadd.f32 %v8810_v16, %v8662_v58 }
 0x1fe   : > { %5492 = vst.msk [vmem:[%s6806_s30 + $0x1e8] sm:$0xff] %vm222_vm1, %v5332_v14  ;;  %v9169_v63 = vmul.u32.u64.low 3435973837, %v297_v28  ;;  %v9170_v2 = vmul.u32.u64.high 3435973837, %v297_v28, %v9169_v63  ;;  %v5412_v23 = vmul.f32 %v5252_v60, %v3575_v48  ;;  %v2854_v0 = vsel %vm2534_vm12, %v2694_v36, %v962_v29  ;;  %v9194_v29 = vpop.f32.mrb[67].mxu1 }
 0x1ff   : > { %v1842_v31 = vsub.s32 %v9120_v24, %v1841_v34  ;;  %v296_v54 = vadd.s32 416, %v6884_v50  ;;  %vm3014_vm13 = vcmp.ge.s32.totalorder %v2854_v0, 2  ;;  %vm3174_vm15 = vcmp.lt.s32.totalorder %v2854_v0, 34 }
 0x200   : > { %v9179_v9 = vmul.u32.u64.low 3435973837, %v9156_v4  ;;  %v9180_v37 = vmul.u32.u64.high 3435973837, %v9156_v4, %v9179_v9  ;;  %5572 = vst.msk [vmem:[%s6806_s30 + $0x468] sm:$0xff] %vm222_vm1, %v5412_v23  ;;  %vm3334_vm3 = vmand %vm3014_vm13, %vm3174_vm15  ;;  %v5174_v58 = vmax.f32 %v9162_v39, 0.0  ;;  %v993_v24 = vshrl.u32 %v9170_v2, 5 }
 0x201   : > { %vm2294_vm5 = vcmp.ne.s32.totalorder %v1842_v31, 0  ;;  %vm2454_vm8 = vcmp.lt.s32.totalorder %v1842_v31, 0  ;;  %v2774_v38 = vadd.s32 40, %v1842_v31  ;;  %v3494_v60 = vsel %vm3334_vm3, 1.0, %v10107_v10 }
 0x202   : > { %vm2614_vm14 = vmand %vm2454_vm8, %vm2294_vm5  ;;  %v9187_v27 = vmul.u32.u64.low 3435973837, %v296_v54  ;;  %v9188_v45 = vmul.u32.u64.high 3435973837, %v296_v54, %v9187_v27  ;;  %v5331_v12 = vmul.f32 %v5171_v56, %v3494_v60  ;;  %v5254_v40 = vmax.f32 %v9174_v55, 0.0 }
 0x203   : > { %v2934_v51 = vsel %vm2614_vm14, %v2774_v38, %v1842_v31  ;;  %v376_v21 = vadd.s32 1056, %v6884_v50  ;;  %v994_v43 = vmul.u32 40, %v993_v24  ;;  %v1873_v13 = vshrl.u32 %v9180_v37, 5 }
 0x204   : > { %vm3094_vm0 = vcmp.ge.s32.totalorder %v2934_v51, 2  ;;  %vm3254_vm4 = vcmp.lt.s32.totalorder %v2934_v51, 34  ;;  %5491 = vst.msk [vmem:[%s6806_s30 + $0x1e0] sm:$0xff] %vm222_vm1, %v5331_v12  ;;  %v9201_v19 = vadd.f32 %v8810_v16, %v8670_v52  ;;  %v299_v36 = vadd.s32 440, %v6884_v50  ;;  %v9216_v52 = vpop.f32.mrb[68].mxu0 }
 0x205   : > { %vm3414_vm7 = vmand %vm3094_vm0, %vm3254_vm4  ;;  %v9203_v56 = vmul.u32.u64.low 3435973837, %v376_v21  ;;  %v9204_v14 = vmul.u32.u64.high 3435973837, %v376_v21, %v9203_v56  ;;  %v995_v39 = vsub.s32 %v297_v28, %v994_v43  ;;  %v1874_v48 = vmul.u32 40, %v1873_v13 }
 0x206   : > { %v3574_v34 = vsel %vm3414_vm7, 1.0, %v10107_v10  ;;  %v982_v63 = vshrl.u32 %v9188_v45, 5  ;;  %v9211_v23 = vadd.f32 %v8810_v16, %v8681_v22  ;;  %v9224_v22 = vadd.s32 1080, %v6884_v50  ;;  %v9226_v45 = vpop.f32.mrb[68].mxu1 }
 0x207   : > { %v5411_v2 = vmul.f32 %v5251_v35, %v3574_v34  ;;  %v9213_v0 = vmul.u32.u64.low 3435973837, %v299_v36  ;;  %v9214_v31 = vmul.u32.u64.high 3435973837, %v299_v36, %v9213_v0  ;;  %vm2217_vm9 = vcmp.ne.s32.totalorder %v995_v39, 0 }
 0x208   : > { %vm2377_vm11 = vcmp.lt.s32.totalorder %v995_v39, 0  ;;  %v2697_v9 = vadd.s32 40, %v995_v39  ;;  %v1875_v37 = vsub.s32 %v9156_v4, %v1874_v48  ;;  %v983_v28 = vmul.u32 40, %v982_v63 }
 0x209   : > { %5571 = vst.msk [vmem:[%s6806_s30 + $0x460] sm:$0xff] %vm222_vm1, %v5411_v2  ;;  %vm2537_vm2 = vmand %vm2377_vm11, %vm2217_vm9  ;;  %v5173_v35 = vmax.f32 %v9201_v19, 0.0  ;;  %v1862_v38 = vshrl.u32 %v9204_v14, 5  ;;  %v5253_v51 = vmax.f32 %v9211_v23, 0.0  ;;  %v1015_v43 = vshrl.u32 %v9214_v31, 5  ;;  %v9234_v19 = vpop.f32.mrb[69].mxu0 }
 0x20a   : > { %v2857_v60 = vsel %vm2537_vm2, %v2697_v9, %v995_v39  ;;  %vm2297_vm6 = vcmp.ne.s32.totalorder %v1875_v37, 0  ;;  %vm2457_vm10 = vcmp.lt.s32.totalorder %v1875_v37, 0  ;;  %v2777_v24 = vadd.s32 40, %v1875_v37  ;;  %v9258_v9 = vpop.f32.mrb[69].mxu1 }
 0x20b   : > { %vm3017_vm12 = vcmp.ge.s32.totalorder %v2857_v60, 2  ;;  %vm3177_vm13 = vcmp.lt.s32.totalorder %v2857_v60, 34  ;;  %vm2617_vm15 = vmand %vm2457_vm10, %vm2297_vm6  ;;  %v984_v27 = vsub.s32 %v296_v54, %v983_v28  ;;  %v1863_v4 = vmul.u32 40, %v1862_v38 }
 0x20c   : > { %vm3337_vm3 = vmand %vm3017_vm12, %vm3177_vm13  ;;  %v2937_v12 = vsel %vm2617_vm15, %v2777_v24, %v1875_v37  ;;  %v9232_v13 = vadd.f32 %v8810_v16, %v8705_v46  ;;  %v1016_v48 = vmul.u32 40, %v1015_v43  ;;  %v9250_v0 = vadd.f32 %v8810_v16, %v8743_v5 }
 0x20d   : > { %v3497_v56 = vsel %vm3337_vm3, 1.0, %v10107_v10  ;;  %vm3097_vm5 = vcmp.ge.s32.totalorder %v2937_v12, 2  ;;  %vm3257_vm8 = vcmp.lt.s32.totalorder %v2937_v12, 34  ;;  %vm2216_vm14 = vcmp.ne.s32.totalorder %v984_v27, 0 }
 0x20e   : > { %v5334_v54 = vmul.f32 %v5174_v58, %v3497_v56  ;;  %vm3417_vm0 = vmand %vm3097_vm5, %vm3257_vm8  ;;  %vm2376_vm4 = vcmp.lt.s32.totalorder %v984_v27, 0  ;;  %v2696_v14 = vadd.s32 40, %v984_v27  ;;  %v1864_v34 = vsub.s32 %v376_v21, %v1863_v4  ;;  %v9272_v56 = vpop.f32.mrb[70].mxu0 }
 0x20f   : > { %v3577_v39 = vsel %vm3417_vm0, 1.0, %v10107_v10  ;;  %vm2536_vm7 = vmand %vm2376_vm4, %vm2216_vm14  ;;  %v9239_v46 = vmul.u32.u64.low 3435973837, %v9224_v22  ;;  %v9240_v63 = vmul.u32.u64.high 3435973837, %v9224_v22, %v9239_v46  ;;  %v1017_v21 = vsub.s32 %v299_v36, %v1016_v48 }
 0x210   : > { %5494 = vst.msk [vmem:[%s6806_s30 + $0x1f8] sm:$0xff] %vm222_vm1, %v5334_v54  ;;  %v5414_v2 = vmul.f32 %v5254_v40, %v3577_v39  ;;  %v2856_v23 = vsel %vm2536_vm7, %v2696_v14, %v984_v27  ;;  %vm2296_vm9 = vcmp.ne.s32.totalorder %v1864_v34, 0  ;;  %vm2456_vm11 = vcmp.lt.s32.totalorder %v1864_v34, 0  ;;  %v9279_v14 = vld [vmem:[%s10032_s2] ss:$0 sm:$0xff] }
 0x211   : > { %vm3016_vm2 = vcmp.ge.s32.totalorder %v2856_v23, 2  ;;  %vm3176_vm6 = vcmp.lt.s32.totalorder %v2856_v23, 34  ;;  %vm2616_vm10 = vmand %vm2456_vm11, %vm2296_vm9  ;;  %v2776_v58 = vadd.s32 40, %v1864_v34  ;;  %v298_v31 = vadd.s32 432, %v6884_v50 }
 0x212   : > { %5574 = vst.msk [vmem:[%s6806_s30 + $0x478] sm:$0xff] %vm222_vm1, %v5414_v2  ;;  %vm3336_vm12 = vmand %vm3016_vm2, %vm3176_vm6  ;;  %v9255_v55 = vadd.f32 %v8810_v16, %v8762_v11  ;;  %v378_v40 = vadd.s32 1072, %v6884_v50  ;;  %vm2219_vm13 = vcmp.ne.s32.totalorder %v1017_v21, 0  ;;  %vm2379_vm15 = vcmp.lt.s32.totalorder %v1017_v21, 0 }
 0x213   : > { %v3496_v36 = vsel %vm3336_vm12, 1.0, %v10107_v10  ;;  %v2936_v37 = vsel %vm2616_vm10, %v2776_v58, %v1864_v34  ;;  %vm2539_vm8 = vmand %vm2379_vm15, %vm2219_vm13  ;;  %v2699_v5 = vadd.s32 40, %v1017_v21  ;;  %v5176_v38 = vmax.f32 %v9232_v13, 0.0 }
 0x214   : > { %v5333_v28 = vmul.f32 %v5173_v35, %v3496_v36  ;;  %vm3096_vm3 = vcmp.ge.s32.totalorder %v2936_v37, 2  ;;  %vm3256_vm5 = vcmp.lt.s32.totalorder %v2936_v37, 34  ;;  %v1895_v11 = vshrl.u32 %v9240_v63, 5 }
 0x215   : > { %vm3416_vm14 = vmand %vm3096_vm3, %vm3256_vm5  ;;  %v9263_v16 = vmul.u32.u64.low 3435973837, %v298_v31  ;;  %v9264_v60 = vmul.u32.u64.high 3435973837, %v298_v31, %v9263_v16  ;;  %v2859_v27 = vsel %vm2539_vm8, %v2699_v5, %v1017_v21  ;;  %v5256_v13 = vmax.f32 %v9250_v0, 0.0 }
 0x216   : > { %5493 = vst.msk [vmem:[%s6806_s30 + $0x1f0] sm:$0xff] %vm222_vm1, %v5333_v28  ;;  %v3576_v24 = vsel %vm3416_vm14, 1.0, %v10107_v10  ;;  %v9269_v4 = vmul.u32.u64.low 3435973837, %v378_v40  ;;  %v9270_v35 = vmul.u32.u64.high 3435973837, %v378_v40, %v9269_v4  ;;  %vm3019_vm0 = vcmp.ge.s32.totalorder %v2859_v27, 2 }
 0x217   : > { %v5413_v12 = vmul.f32 %v5253_v51, %v3576_v24  ;;  %vm3179_vm4 = vcmp.lt.s32.totalorder %v2859_v27, 34  ;;  %v1896_v43 = vmul.u32 40, %v1895_v11  ;;  %v5175_v54 = vmax.f32 %v9255_v55, 0.0  ;;  %v9316_v4 = vpop.f32.mrb[71].mxu0 }
 0x218   : > { %vm3339_vm7 = vmand %vm3019_vm0, %vm3179_vm4  ;;  %v9283_v34 = vadd.f32 %v9279_v14, %v8765_v49  ;;  %v301_v51 = vadd.s32 456, %v6884_v50  ;;  %v1004_v46 = vshrl.u32 %v9264_v60, 5  ;;  %v381_v63 = vadd.s32 1096, %v6884_v50  ;;  %v9311_v60 = vpop.f32.mrb[70].mxu1 }
 0x219   : > { %5573 = vst.msk [vmem:[%s6806_s30 + $0x470] sm:$0xff] %vm222_vm1, %v5413_v12  ;;  %v3499_v39 = vsel %vm3339_vm7, 1.0, %v10107_v10  ;;  %v1897_v48 = vsub.s32 %v9224_v22, %v1896_v43  ;;  %v1884_v23 = vshrl.u32 %v9270_v35, 5  ;;  %v9295_v58 = vadd.f32 %v9279_v14, %v8785_v26 }
 0x21a   : > { %v5336_v2 = vmul.f32 %v5176_v38, %v3499_v39  ;;  %v9299_v49 = vadd.f32 %v9279_v14, %v8794_v18  ;;  %v1005_v0 = vmul.u32 40, %v1004_v46  ;;  %v5255_v36 = vmax.f32 %v9283_v34, 0.0 }
 0x21b   : > { %vm2299_vm9 = vcmp.ne.s32.totalorder %v1897_v48, 0  ;;  %vm2459_vm11 = vcmp.lt.s32.totalorder %v1897_v48, 0  ;;  %v2779_v21 = vadd.s32 40, %v1897_v48  ;;  %v1885_v22 = vmul.u32 40, %v1884_v23 }
 0x21c   : > { %5496 = vst.msk [vmem:[%s6806_s30 + $0x208] sm:$0xff] %vm222_vm1, %v5336_v2  ;;  %vm2619_vm2 = vmand %vm2459_vm11, %vm2299_vm9  ;;  %v9304_v37 = vmul.u32.u64.low 3435973837, %v301_v51  ;;  %v9305_v28 = vmul.u32.u64.high 3435973837, %v301_v51, %v9304_v37  ;;  %v1006_v26 = vsub.s32 %v298_v31, %v1005_v0  ;;  %v5178_v16 = vmax.f32 %v9295_v58, 0.0  ;;  %v9327_v2 = vpop.f32.mrb[71].mxu1 }
 0x21d   : > { %v2939_v5 = vsel %vm2619_vm2, %v2779_v21, %v1897_v48  ;;  %v9307_v38 = vmul.u32.u64.low 3435973837, %v381_v63  ;;  %v9308_v11 = vmul.u32.u64.high 3435973837, %v381_v63, %v9307_v38  ;;  %v1886_v18 = vsub.s32 %v378_v40, %v1885_v22 }
 0x21e   : > { %vm3099_vm6 = vcmp.ge.s32.totalorder %v2939_v5, 2  ;;  %vm3259_vm10 = vcmp.lt.s32.totalorder %v2939_v5, 34  ;;  %vm2218_vm13 = vcmp.ne.s32.totalorder %v1006_v26, 0  ;;  %vm2378_vm15 = vcmp.lt.s32.totalorder %v1006_v26, 0 }
 0x21f   : > { %vm3419_vm12 = vmand %vm3099_vm6, %vm3259_vm10  ;;  %v2698_v24 = vadd.s32 40, %v1006_v26  ;;  %v9314_v27 = vadd.s32 448, %v6884_v50  ;;  %vm2298_vm5 = vcmp.ne.s32.totalorder %v1886_v18, 0  ;;  %vm2458_vm8 = vcmp.lt.s32.totalorder %v1886_v18, 0 }
 0x220   : > { %v3579_v31 = vsel %vm3419_vm12, 1.0, %v10107_v10  ;;  %vm2538_vm3 = vmand %vm2378_vm15, %vm2218_vm13  ;;  %v2778_v40 = vadd.s32 40, %v1886_v18  ;;  %v1037_v43 = vshrl.u32 %v9305_v28, 5  ;;  %v1917_v34 = vshrl.u32 %v9308_v11, 5 }
 0x221   : > { %v5416_v35 = vmul.f32 %v5256_v13, %v3579_v31  ;;  %v2858_v12 = vsel %vm2538_vm3, %v2698_v24, %v1006_v26  ;;  %vm2618_vm14 = vmand %vm2458_vm8, %vm2298_vm5  ;;  %v9323_v48 = vadd.f32 %v9279_v14, %v8824_v15  ;;  %v380_v15 = vadd.s32 1088, %v6884_v50  ;;  %v9344_v31 = vpop.f32.mrb[72].mxu0 }
 0x222   : > { %vm3018_vm0 = vcmp.ge.s32.totalorder %v2858_v12, 2  ;;  %vm3178_vm4 = vcmp.lt.s32.totalorder %v2858_v12, 34  ;;  %v2938_v39 = vsel %vm2618_vm14, %v2778_v40, %v1886_v18  ;;  %v1038_v13 = vmul.u32 40, %v1037_v43 }
 0x223   : > { %5576 = vst.msk [vmem:[%s6806_s30 + $0x488] sm:$0xff] %vm222_vm1, %v5416_v35  ;;  %vm3338_vm7 = vmand %vm3018_vm0, %vm3178_vm4  ;;  %vm3098_vm9 = vcmp.ge.s32.totalorder %v2938_v39, 2  ;;  %vm3258_vm11 = vcmp.lt.s32.totalorder %v2938_v39, 34  ;;  %v1918_v46 = vmul.u32 40, %v1917_v34  ;;  %v5258_v38 = vmax.f32 %v9299_v49, 0.0 }
 0x224   : > { %v3498_v23 = vsel %vm3338_vm7, 1.0, %v10107_v10  ;;  %vm3418_vm2 = vmand %vm3098_vm9, %vm3258_vm11  ;;  %v9331_v21 = vmul.u32.u64.low 3435973837, %v9314_v27  ;;  %v9332_v0 = vmul.u32.u64.high 3435973837, %v9314_v27, %v9331_v21  ;;  %v1039_v28 = vsub.s32 %v301_v51, %v1038_v13 }
 0x225   : > { %v5335_v22 = vmul.f32 %v5175_v54, %v3498_v23  ;;  %v3578_v37 = vsel %vm3418_vm2, 1.0, %v10107_v10  ;;  %v1919_v5 = vsub.s32 %v381_v63, %v1918_v46  ;;  %v5177_v51 = vmax.f32 %v9323_v48, 0.0  ;;  %v9350_v63 = vpop.f32.mrb[72].mxu1 }
 0x226   : > { %v5415_v26 = vmul.f32 %v5255_v36, %v3578_v37  ;;  %v9339_v11 = vmul.u32.u64.low 3435973837, %v380_v15  ;;  %v9340_v18 = vmul.u32.u64.high 3435973837, %v380_v15, %v9339_v11  ;;  %vm2221_vm6 = vcmp.ne.s32.totalorder %v1039_v28, 0 }
 0x227   : > { %5495 = vst.msk [vmem:[%s6806_s30 + $0x200] sm:$0xff] %vm222_vm1, %v5335_v22  ;;  %vm2381_vm10 = vcmp.lt.s32.totalorder %v1039_v28, 0  ;;  %v2701_v24 = vadd.s32 40, %v1039_v28  ;;  %vm2301_vm12 = vcmp.ne.s32.totalorder %v1919_v5, 0  ;;  %vm2461_vm15 = vcmp.lt.s32.totalorder %v1919_v5, 0 }
 0x228   : > { %5575 = vst.msk [vmem:[%s6806_s30 + $0x480] sm:$0xff] %vm222_vm1, %v5415_v26  ;;  %vm2541_vm13 = vmand %vm2381_vm10, %vm2221_vm6  ;;  %v2781_v55 = vadd.s32 40, %v1919_v5  ;;  %v1026_v54 = vshrl.u32 %v9332_v0, 5  ;;  %v9354_v36 = vadd.f32 %v9279_v14, %v8848_v6  ;;  %v303_v40 = vadd.s32 472, %v6884_v50 }
 0x229   : > { %v2861_v49 = vsel %vm2541_vm13, %v2701_v24, %v1039_v28  ;;  %vm2621_vm3 = vmand %vm2461_vm15, %vm2301_vm12  ;;  %v9359_v35 = vadd.f32 %v9279_v14, %v8866_v57  ;;  %v1906_v34 = vshrl.u32 %v9340_v18, 5  ;;  %v383_v39 = vadd.s32 1112, %v6884_v50 }
 0x22a   : > { %vm3021_vm5 = vcmp.ge.s32.totalorder %v2861_v49, 2  ;;  %vm3181_vm8 = vcmp.lt.s32.totalorder %v2861_v49, 34  ;;  %v2941_v12 = vsel %vm2621_vm3, %v2781_v55, %v1919_v5  ;;  %v1027_v43 = vmul.u32 40, %v1026_v54 }
 0x22b   : > { %vm3341_vm14 = vmand %vm3021_vm5, %vm3181_vm8  ;;  %vm3101_vm0 = vcmp.ge.s32.totalorder %v2941_v12, 2  ;;  %vm3261_vm4 = vcmp.lt.s32.totalorder %v2941_v12, 34  ;;  %v9365_v57 = vmul.u32.u64.low 3435973837, %v303_v40  ;;  %v9366_v13 = vmul.u32.u64.high 3435973837, %v303_v40, %v9365_v57 }
 0x22c   : > { %v3501_v6 = vsel %vm3341_vm14, 1.0, %v10107_v10  ;;  %vm3421_vm7 = vmand %vm3101_vm0, %vm3261_vm4  ;;  %v1028_v48 = vsub.s32 %v9314_v27, %v1027_v43  ;;  %v1907_v21 = vmul.u32 40, %v1906_v34  ;;  %v5257_v0 = vmax.f32 %v9354_v36, 0.0 }
 0x22d   : > { %v5338_v46 = vmul.f32 %v5178_v16, %v3501_v6  ;;  %v3581_v23 = vsel %vm3421_vm7, 1.0, %v10107_v10  ;;  %v9374_v28 = vmul.u32.u64.low 3435973837, %v383_v39  ;;  %v9375_v5 = vmul.u32.u64.high 3435973837, %v383_v39, %v9374_v28  ;;  %v9381_v16 = vpop.f32.mrb[73].mxu0 }
 0x22e   : > { %v5418_v22 = vmul.f32 %v5258_v38, %v3581_v23  ;;  %vm2220_vm9 = vcmp.ne.s32.totalorder %v1028_v48, 0  ;;  %vm2380_vm11 = vcmp.lt.s32.totalorder %v1028_v48, 0  ;;  %v2700_v37 = vadd.s32 40, %v1028_v48 }
 0x22f   : > { %5498 = vst.msk [vmem:[%s6806_s30 + $0x218] sm:$0xff] %vm222_vm1, %v5338_v46  ;;  %vm2540_vm2 = vmand %vm2380_vm11, %vm2220_vm9  ;;  %v1908_v27 = vsub.s32 %v380_v15, %v1907_v21  ;;  %v9379_v58 = vadd.f32 %v9279_v14, %v8887_v41  ;;  %v1059_v38 = vshrl.u32 %v9366_v13, 5  ;;  %v5180_v11 = vmax.f32 %v9359_v35, 0.0 }
 0x230   : > { %5578 = vst.msk [vmem:[%s6806_s30 + $0x498] sm:$0xff] %vm222_vm1, %v5418_v22  ;;  %v2860_v26 = vsel %vm2540_vm2, %v2700_v37, %v1028_v48  ;;  %v302_v18 = vadd.s32 464, %v6884_v50  ;;  %v1939_v49 = vshrl.u32 %v9375_v5, 5  ;;  %v382_v35 = vadd.s32 1104, %v6884_v50  ;;  %v9415_v5 = vpop.f32.mrb[74].mxu0 }
 0x231   : > { %vm3020_vm6 = vcmp.ge.s32.totalorder %v2860_v26, 2  ;;  %vm3180_vm10 = vcmp.lt.s32.totalorder %v2860_v26, 34  ;;  %vm2300_vm12 = vcmp.ne.s32.totalorder %v1908_v27, 0  ;;  %vm2460_vm13 = vcmp.lt.s32.totalorder %v1908_v27, 0 }
 0x232   : > { %vm3340_vm15 = vmand %vm3020_vm6, %vm3180_vm10  ;;  %v2780_v15 = vadd.s32 40, %v1908_v27  ;;  %v1060_v41 = vmul.u32 40, %v1059_v38  ;;  %v9388_v24 = vmul.u32.u64.low 3435973837, %v302_v18  ;;  %v9389_v55 = vmul.u32.u64.high 3435973837, %v302_v18, %v9388_v24 }
 0x233   : > { %v3500_v54 = vsel %vm3340_vm15, 1.0, %v10107_v10  ;;  %vm2620_vm3 = vmand %vm2460_vm13, %vm2300_vm12  ;;  %v5260_v36 = vmax.f32 %v9379_v58, 0.0  ;;  %v9397_v6 = vadd.f32 %v9279_v14, %v8898_v17  ;;  %v1940_v48 = vmul.u32 40, %v1939_v49 }
 0x234   : > { %v5337_v12 = vmul.f32 %v5177_v51, %v3500_v54  ;;  %v2940_v43 = vsel %vm2620_vm3, %v2780_v15, %v1908_v27  ;;  %v1061_v34 = vsub.s32 %v303_v40, %v1060_v41  ;;  %v9400_v57 = vadd.s32 488, %v6884_v50  ;;  %v9405_v40 = vpop.f32.mrb[73].mxu1 }
 0x235   : > { %vm3100_vm5 = vcmp.ge.s32.totalorder %v2940_v43, 2  ;;  %vm3260_vm8 = vcmp.lt.s32.totalorder %v2940_v43, 34  ;;  %v1048_v51 = vshrl.u32 %v9389_v55, 5  ;;  %v1941_v46 = vsub.s32 %v383_v39, %v1940_v48  ;;  %v9432_v43 = vpop.f32.mrb[75].mxu0 }
 0x236   : > { %5497 = vst.msk [vmem:[%s6806_s30 + $0x210] sm:$0xff] %vm222_vm1, %v5337_v12  ;;  %vm3420_vm14 = vmand %vm3100_vm5, %vm3260_vm8  ;;  %vm2223_vm0 = vcmp.ne.s32.totalorder %v1061_v34, 0  ;;  %vm2383_vm4 = vcmp.lt.s32.totalorder %v1061_v34, 0  ;;  %v2703_v13 = vadd.s32 40, %v1061_v34  ;;  %v9413_v28 = vadd.f32 %v9279_v14, %v8909_v59 }
 0x237   : > { %v3580_v17 = vsel %vm3420_vm14, 1.0, %v10107_v10  ;;  %vm2543_vm7 = vmand %vm2383_vm4, %vm2223_vm0  ;;  %v9408_v23 = vmul.u32.u64.low 3435973837, %v382_v35  ;;  %v9409_v21 = vmul.u32.u64.high 3435973837, %v382_v35, %v9408_v23  ;;  %v1049_v27 = vmul.u32 40, %v1048_v51 }
 0x238   : > { %v5417_v22 = vmul.f32 %v5257_v0, %v3580_v17  ;;  %v2863_v37 = vsel %vm2543_vm7, %v2703_v13, %v1061_v34  ;;  %vm2303_vm2 = vcmp.ne.s32.totalorder %v1941_v46, 0  ;;  %vm2463_vm6 = vcmp.lt.s32.totalorder %v1941_v46, 0 }
 0x239   : > { %vm3023_vm9 = vcmp.ge.s32.totalorder %v2863_v37, 2  ;;  %vm3183_vm11 = vcmp.lt.s32.totalorder %v2863_v37, 34  ;;  %v2783_v39 = vadd.s32 40, %v1941_v46  ;;  %v1050_v26 = vsub.s32 %v302_v18, %v1049_v27  ;;  %vm2623_vm12 = vmand %vm2463_vm6, %vm2303_vm2  ;;  %v9430_v18 = vpop.f32.mrb[74].mxu1 }
 0x23a   : > { %5577 = vst.msk [vmem:[%s6806_s30 + $0x490] sm:$0xff] %vm222_vm1, %v5417_v22  ;;  %vm3343_vm10 = vmand %vm3023_vm9, %vm3183_vm11  ;;  %v9420_v38 = vmul.u32.u64.low 3435973837, %v9400_v57  ;;  %v9421_v0 = vmul.u32.u64.high 3435973837, %v9400_v57, %v9420_v38  ;;  %v1928_v59 = vshrl.u32 %v9409_v21, 5  ;;  %v9427_v41 = vadd.f32 %v9279_v14, %v8926_v3  ;;  %v9446_v37 = vpop.f32.mrb[75].mxu1 }
 0x23b   : > { %v3503_v15 = vsel %vm3343_vm10, 1.0, %v10107_v10  ;;  %v385_v24 = vadd.s32 1128, %v6884_v50  ;;  %v2943_v54 = vsel %vm2623_vm12, %v2783_v39, %v1941_v46  ;;  %vm2222_vm13 = vcmp.ne.s32.totalorder %v1050_v26, 0 }
 0x23c   : > { %v5340_v55 = vmul.f32 %v5180_v11, %v3503_v15  ;;  %vm2382_vm15 = vcmp.lt.s32.totalorder %v1050_v26, 0  ;;  %vm3103_vm3 = vcmp.ge.s32.totalorder %v2943_v54, 2  ;;  %vm3263_vm5 = vcmp.lt.s32.totalorder %v2943_v54, 34 }
 0x23d   : > { %vm2542_vm8 = vmand %vm2382_vm15, %vm2222_vm13  ;;  %v2702_v49 = vadd.s32 40, %v1050_v26  ;;  %v1929_v12 = vmul.u32 40, %v1928_v59  ;;  %v5179_v3 = vmax.f32 %v9397_v6, 0.0  ;;  %v1081_v34 = vshrl.u32 %v9421_v0, 5 }
 0x23e   : > { %5500 = vst.msk [vmem:[%s6806_s30 + $0x228] sm:$0xff] %vm222_vm1, %v5340_v55  ;;  %vm3423_vm14 = vmand %vm3103_vm3, %vm3263_vm5  ;;  %v9438_v11 = vmul.u32.u64.low 3435973837, %v385_v24  ;;  %v9439_v48 = vmul.u32.u64.high 3435973837, %v385_v24, %v9438_v11  ;;  %v5259_v46 = vmax.f32 %v9413_v28, 0.0  ;;  %v5182_v22 = vmax.f32 %v9427_v41, 0.0  ;;  %v9462_v41 = vpop.f32.mrb[76].mxu0 }
 0x23f   : > { %v3583_v13 = vsel %vm3423_vm14, 1.0, %v10107_v10  ;;  %v2862_v51 = vsel %vm2542_vm8, %v2702_v49, %v1050_v26  ;;  %v1930_v17 = vsub.s32 %v382_v35, %v1929_v12  ;;  %v1082_v21 = vmul.u32 40, %v1081_v34 }
 0x240   : > { %v5420_v23 = vmul.f32 %v5260_v36, %v3583_v13  ;;  %vm3022_vm0 = vcmp.ge.s32.totalorder %v2862_v51, 2  ;;  %vm3182_vm4 = vcmp.lt.s32.totalorder %v2862_v51, 34  ;;  %v1961_v36 = vshrl.u32 %v9439_v48, 5 }
 0x241   : > { %vm3342_vm7 = vmand %vm3022_vm0, %vm3182_vm4  ;;  %vm2302_vm9 = vcmp.ne.s32.totalorder %v1930_v17, 0  ;;  %vm2462_vm11 = vcmp.lt.s32.totalorder %v1930_v17, 0  ;;  %v2782_v6 = vadd.s32 40, %v1930_v17  ;;  %v1083_v58 = vsub.s32 %v9400_v57, %v1082_v21 }
 0x242   : > { %5580 = vst.msk [vmem:[%s6806_s30 + $0x4a8] sm:$0xff] %vm222_vm1, %v5420_v23  ;;  %v3502_v35 = vsel %vm3342_vm7, 1.0, %v10107_v10  ;;  %vm2622_vm2 = vmand %vm2462_vm11, %vm2302_vm9  ;;  %v304_v27 = vadd.s32 480, %v6884_v50  ;;  %v5028_v26 = vadd.f32 %v9279_v14, %v8946_v61  ;;  %v384_v38 = vadd.s32 1120, %v6884_v50 }
 0x243   : > { %v5339_v28 = vmul.f32 %v5179_v3, %v3502_v35  ;;  %v2942_v39 = vsel %vm2622_vm2, %v2782_v6, %v1930_v17  ;;  %vm2225_vm12 = vcmp.ne.s32.totalorder %v1083_v58, 0  ;;  %vm2385_vm13 = vcmp.lt.s32.totalorder %v1083_v58, 0 }
 0x244   : > { %vm3102_vm6 = vcmp.ge.s32.totalorder %v2942_v39, 2  ;;  %vm3262_vm10 = vcmp.lt.s32.totalorder %v2942_v39, 34  ;;  %v2705_v0 = vadd.s32 40, %v1083_v58  ;;  %v1962_v57 = vmul.u32 40, %v1961_v36  ;;  %vm2545_vm3 = vmand %vm2385_vm13, %vm2225_vm12 }
 0x245   : > { %5499 = vst.msk [vmem:[%s6806_s30 + $0x220] sm:$0xff] %vm222_vm1, %v5339_v28  ;;  %vm3422_vm15 = vmand %vm3102_vm6, %vm3262_vm10  ;;  %v9459_v15 = vmul.u32.u64.low 3435973837, %v304_v27  ;;  %v9460_v59 = vmul.u32.u64.high 3435973837, %v304_v27, %v9459_v15  ;;  %v9467_v61 = vadd.f32 %v9279_v14, %v8982_v7  ;;  %v5262_v11 = vmax.f32 %v5028_v26, 0.0 }
 0x246   : > { %v3582_v55 = vsel %vm3422_vm15, 1.0, %v10107_v10  ;;  %v9469_v54 = vmul.u32.u64.low 3435973837, %v384_v38  ;;  %v9470_v49 = vmul.u32.u64.high 3435973837, %v384_v38, %v9469_v54  ;;  %v2865_v3 = vsel %vm2545_vm3, %v2705_v0, %v1083_v58 }
 0x247   : > { %v5419_v12 = vmul.f32 %v5259_v46, %v3582_v55  ;;  %v1963_v34 = vsub.s32 %v385_v24, %v1962_v57  ;;  %vm3025_vm5 = vcmp.ge.s32.totalorder %v2865_v3, 2  ;;  %vm3185_vm8 = vcmp.lt.s32.totalorder %v2865_v3, 34 }
 0x248   : > { %v9474_v48 = vadd.f32 %v9279_v14, %v8985_v20  ;;  %v9477_v13 = vadd.s32 504, %v6884_v50  ;;  %vm3345_vm14 = vmand %vm3025_vm5, %vm3185_vm8  ;;  %v1070_v51 = vshrl.u32 %v9460_v59, 5  ;;  %v5181_v17 = vmax.f32 %v9467_v61, 0.0  ;;  %v9502_v59 = vpop.f32.mrb[76].mxu1 }
 0x249   : > { %5579 = vst.msk [vmem:[%s6806_s30 + $0x4a0] sm:$0xff] %vm222_vm1, %v5419_v12  ;;  %vm2305_vm0 = vcmp.ne.s32.totalorder %v1963_v34, 0  ;;  %vm2465_vm4 = vcmp.lt.s32.totalorder %v1963_v34, 0  ;;  %v2785_v7 = vadd.s32 40, %v1963_v34  ;;  %v3505_v24 = vsel %vm3345_vm14, 1.0, %v10107_v10 }
 0x24a   : > { %vm2625_vm7 = vmand %vm2465_vm4, %vm2305_vm0  ;;  %v1950_v20 = vshrl.u32 %v9470_v49, 5  ;;  %v9487_v46 = vadd.f32 %v9279_v14, %v9006_v30  ;;  %v5342_v23 = vmul.f32 %v5182_v22, %v3505_v24  ;;  %v1071_v6 = vmul.u32 40, %v1070_v51  ;;  %v9508_v49 = vpop.f32.mrb[77].mxu0 }
 0x24b   : > { %v2945_v21 = vsel %vm2625_vm7, %v2785_v7, %v1963_v34  ;;  %v387_v35 = vadd.s32 1144, %v6884_v50  ;;  %v5261_v36 = vmax.f32 %v9474_v48, 0.0  ;;  %v306_v30 = vadd.s32 496, %v6884_v50 }
 0x24c   : > { %vm3105_vm9 = vcmp.ge.s32.totalorder %v2945_v21, 2  ;;  %vm3265_vm11 = vcmp.lt.s32.totalorder %v2945_v21, 34  ;;  %v1951_v58 = vmul.u32 40, %v1950_v20  ;;  %5502 = vst.msk [vmem:[%s6806_s30 + $0x238] sm:$0xff] %vm222_vm1, %v5342_v23  ;;  %v1072_v28 = vsub.s32 %v304_v27, %v1071_v6  ;;  %v9523_v21 = vpop.f32.mrb[77].mxu1 }
 0x24d   : > { %vm3425_vm2 = vmand %vm3105_vm9, %vm3265_vm11  ;;  %v9494_v39 = vmul.u32.u64.low 3435973837, %v9477_v13  ;;  %v9495_v26 = vmul.u32.u64.high 3435973837, %v9477_v13, %v9494_v39  ;;  %v9499_v57 = vmul.u32.u64.low 3435973837, %v387_v35  ;;  %v9500_v15 = vmul.u32.u64.high 3435973837, %v387_v35, %v9499_v57 }
 0x24e   : > { %v3585_v22 = vsel %vm3425_vm2, 1.0, %v10107_v10  ;;  %v1952_v0 = vsub.s32 %v384_v38, %v1951_v58  ;;  %vm2224_vm6 = vcmp.ne.s32.totalorder %v1072_v28, 0  ;;  %vm2384_vm10 = vcmp.lt.s32.totalorder %v1072_v28, 0 }
 0x24f   : > { %v5422_v55 = vmul.f32 %v5262_v11, %v3585_v22  ;;  %v2704_v61 = vadd.s32 40, %v1072_v28  ;;  %vm2544_vm12 = vmand %vm2384_vm10, %vm2224_vm6  ;;  %v9506_v54 = vadd.f32 %v9279_v14, %v9012_v1  ;;  %v1103_v12 = vshrl.u32 %v9495_v26, 5 }
 0x250   : > { %vm2304_vm13 = vcmp.ne.s32.totalorder %v1952_v0, 0  ;;  %vm2464_vm15 = vcmp.lt.s32.totalorder %v1952_v0, 0  ;;  %v2784_v27 = vadd.s32 40, %v1952_v0  ;;  %v1983_v48 = vshrl.u32 %v9500_v15, 5  ;;  %v9536_v15 = vpop.f32.mrb[78].mxu0 }
 0x251   : > { %5582 = vst.msk [vmem:[%s6806_s30 + $0x4b8] sm:$0xff] %vm222_vm1, %v5422_v55  ;;  %v2864_v38 = vsel %vm2544_vm12, %v2704_v61, %v1072_v28  ;;  %vm2624_vm3 = vmand %vm2464_vm15, %vm2304_vm13  ;;  %v9513_v3 = vmul.u32.u64.low 3435973837, %v306_v30  ;;  %v9514_v34 = vmul.u32.u64.high 3435973837, %v306_v30, %v9513_v3  ;;  %v1104_v1 = vmul.u32 40, %v1103_v12 }
 0x252   : > { %vm3024_vm5 = vcmp.ge.s32.totalorder %v2864_v38, 2  ;;  %vm3184_vm8 = vcmp.lt.s32.totalorder %v2864_v38, 34  ;;  %v2944_v11 = vsel %vm2624_vm3, %v2784_v27, %v1952_v0  ;;  %v5184_v7 = vmax.f32 %v9487_v46, 0.0 }
 0x253   : > { %vm3344_vm14 = vmand %vm3024_vm5, %vm3184_vm8  ;;  %vm3104_vm0 = vcmp.ge.s32.totalorder %v2944_v11, 2  ;;  %vm3264_vm4 = vcmp.lt.s32.totalorder %v2944_v11, 34  ;;  %v1984_v24 = vmul.u32 40, %v1983_v48  ;;  %v5264_v20 = vmax.f32 %v9506_v54, 0.0  ;;  %v9545_v54 = vpop.f32.mrb[78].mxu1 }
 0x254   : > { %v3504_v51 = vsel %vm3344_vm14, 1.0, %v10107_v10  ;;  %vm3424_vm7 = vmand %vm3104_vm0, %vm3264_vm4  ;;  %v9521_v23 = vadd.s32 1136, %v6884_v50  ;;  %v1105_v28 = vsub.s32 %v9477_v13, %v1104_v1  ;;  %v1092_v39 = vshrl.u32 %v9514_v34, 5 }
 0x255   : > { %v5341_v6 = vmul.f32 %v5181_v17, %v3504_v51  ;;  %v3584_v58 = vsel %vm3424_vm7, 1.0, %v10107_v10  ;;  %v1985_v26 = vsub.s32 %v387_v35, %v1984_v24  ;;  %v4633_v22 = vadd.f32 %v9279_v14, %v9023_v44 }
 0x256   : > { %v5421_v46 = vmul.f32 %v5261_v36, %v3584_v58  ;;  %v9532_v0 = vadd.f32 %v9279_v14, %v9052_v62  ;;  %vm2227_vm9 = vcmp.ne.s32.totalorder %v1105_v28, 0  ;;  %vm2387_vm11 = vcmp.lt.s32.totalorder %v1105_v28, 0 }
 0x257   : > { %5501 = vst.msk [vmem:[%s6806_s30 + $0x230] sm:$0xff] %vm222_vm1, %v5341_v6  ;;  %v2707_v17 = vadd.s32 40, %v1105_v28  ;;  %v1093_v57 = vmul.u32 40, %v1092_v39  ;;  %vm2547_vm2 = vmand %vm2387_vm11, %vm2227_vm9  ;;  %vm2307_vm6 = vcmp.ne.s32.totalorder %v1985_v26, 0  ;;  %vm2467_vm10 = vcmp.lt.s32.totalorder %v1985_v26, 0 }
 0x258   : > { %5581 = vst.msk [vmem:[%s6806_s30 + $0x4b0] sm:$0xff] %vm222_vm1, %v5421_v46  ;;  %v2787_v13 = vadd.s32 40, %v1985_v26  ;;  %v309_v44 = vadd.s32 520, %v6884_v50  ;;  %vm2627_vm12 = vmand %vm2467_vm10, %vm2307_vm6  ;;  %v9542_v36 = vmul.u32.u64.low 3435973837, %v9521_v23  ;;  %v9543_v55 = vmul.u32.u64.high 3435973837, %v9521_v23, %v9542_v36 }
 0x259   : > { %v2867_v35 = vsel %vm2547_vm2, %v2707_v17, %v1105_v28  ;;  %v1094_v62 = vsub.s32 %v306_v30, %v1093_v57  ;;  %v5183_v27 = vmax.f32 %v4633_v22, 0.0  ;;  %v9555_v1 = vadd.f32 %v9279_v14, %v9080_v8  ;;  %v9562_v28 = vpop.f32.mrb[79].mxu0 }
 0x25a   : > { %vm3027_vm13 = vcmp.ge.s32.totalorder %v2867_v35, 2  ;;  %vm3187_vm15 = vcmp.lt.s32.totalorder %v2867_v35, 34  ;;  %v2947_v61 = vsel %vm2627_vm12, %v2787_v13, %v1985_v26  ;;  %v1972_v48 = vshrl.u32 %v9543_v55, 5  ;;  %v9581_v55 = vpop.f32.mrb[79].mxu1 }
 0x25b   : > { %vm3347_vm3 = vmand %vm3027_vm13, %vm3187_vm15  ;;  %vm3107_vm5 = vcmp.ge.s32.totalorder %v2947_v61, 2  ;;  %vm3267_vm8 = vcmp.lt.s32.totalorder %v2947_v61, 34  ;;  %vm2226_vm14 = vcmp.ne.s32.totalorder %v1094_v62, 0  ;;  %vm2386_vm0 = vcmp.lt.s32.totalorder %v1094_v62, 0 }
 0x25c   : > { %v3507_v38 = vsel %vm3347_vm3, 1.0, %v10107_v10  ;;  %vm3427_vm4 = vmand %vm3107_vm5, %vm3267_vm8  ;;  %v2706_v30 = vadd.s32 40, %v1094_v62  ;;  %v9548_v12 = vmul.u32.u64.low 3435973837, %v309_v44  ;;  %v9549_v3 = vmul.u32.u64.high 3435973837, %v309_v44, %v9548_v12 }
 0x25d   : > { %v5344_v34 = vmul.f32 %v5184_v7, %v3507_v38  ;;  %v3587_v11 = vsel %vm3427_vm4, 1.0, %v10107_v10  ;;  %vm2546_vm7 = vmand %vm2386_vm0, %vm2226_vm14  ;;  %v389_v6 = vadd.s32 1160, %v6884_v50  ;;  %v9560_v58 = vadd.f32 %v9279_v14, %v9105_v47 }
 0x25e   : > { %v5424_v51 = vmul.f32 %v5264_v20, %v3587_v11  ;;  %v2866_v24 = vsel %vm2546_vm7, %v2706_v30, %v1094_v62  ;;  %v1973_v7 = vmul.u32 40, %v1972_v48  ;;  %v308_v39 = vadd.s32 512, %v6884_v50 }
 0x25f   : > { %5504 = vst.msk [vmem:[%s6806_s30 + $0x248] sm:$0xff] %vm222_vm1, %v5344_v34  ;;  %vm3026_vm9 = vcmp.ge.s32.totalorder %v2866_v24, 2  ;;  %vm3186_vm11 = vcmp.lt.s32.totalorder %v2866_v24, 34  ;;  %v5263_v8 = vmax.f32 %v9532_v0, 0.0  ;;  %v1125_v20 = vshrl.u32 %v9549_v3, 5 }
 0x260   : > { %5584 = vst.msk [vmem:[%s6806_s30 + $0x4c8] sm:$0xff] %vm222_vm1, %v5424_v51  ;;  %vm3346_vm2 = vmand %vm3026_vm9, %vm3186_vm11  ;;  %v9571_v46 = vmul.u32.u64.low 3435973837, %v389_v6  ;;  %v9572_v47 = vmul.u32.u64.high 3435973837, %v389_v6, %v9571_v46  ;;  %v1974_v22 = vsub.s32 %v9521_v23, %v1973_v7  ;;  %v5186_v62 = vmax.f32 %v9555_v1, 0.0 }
 0x261   : > { %v3506_v26 = vsel %vm3346_vm2, 1.0, %v10107_v10  ;;  %v9576_v17 = vmul.u32.u64.low 3435973837, %v308_v39  ;;  %v9577_v57 = vmul.u32.u64.high 3435973837, %v308_v39, %v9576_v17  ;;  %v1126_v35 = vmul.u32 40, %v1125_v20 }
 0x262   : > { %v5343_v13 = vmul.f32 %v5183_v27, %v3506_v26  ;;  %v388_v36 = vadd.s32 1152, %v6884_v50  ;;  %vm2306_vm6 = vcmp.ne.s32.totalorder %v1974_v22, 0  ;;  %vm2466_vm10 = vcmp.lt.s32.totalorder %v1974_v22, 0 }
 0x263   : > { %v2786_v0 = vadd.s32 40, %v1974_v22  ;;  %v5266_v61 = vmax.f32 %v9560_v58, 0.0  ;;  %vm2626_vm12 = vmand %vm2466_vm10, %vm2306_vm6  ;;  %v1127_v23 = vsub.s32 %v309_v44, %v1126_v35  ;;  %v2005_v38 = vshrl.u32 %v9572_v47, 5 }
 0x264   : > { %5503 = vst.msk [vmem:[%s6806_s30 + $0x240] sm:$0xff] %vm222_vm1, %v5343_v13  ;;  %v9589_v27 = vadd.f32 %v9279_v14, %v9107_v25  ;;  %v311_v30 = vadd.s32 536, %v6884_v50  ;;  %v1114_v3 = vshrl.u32 %v9577_v57, 5  ;;  %v9598_v25 = vadd.f32 %v9279_v14, %v9122_v53 }
 0x265   : > { %v2946_v12 = vsel %vm2626_vm12, %v2786_v0, %v1974_v22  ;;  %v9593_v34 = vmul.u32.u64.low 3435973837, %v388_v36  ;;  %v9594_v11 = vmul.u32.u64.high 3435973837, %v388_v36, %v9593_v34  ;;  %vm2229_vm3 = vcmp.ne.s32.totalorder %v1127_v23, 0 }
 0x266   : > { %vm3106_vm13 = vcmp.ge.s32.totalorder %v2946_v12, 2  ;;  %vm3266_vm15 = vcmp.lt.s32.totalorder %v2946_v12, 34  ;;  %vm2389_vm5 = vcmp.lt.s32.totalorder %v1127_v23, 0  ;;  %v2709_v44 = vadd.s32 40, %v1127_v23 }
 0x267   : > { %vm3426_vm8 = vmand %vm3106_vm13, %vm3266_vm15  ;;  %v2006_v48 = vmul.u32 40, %v2005_v38  ;;  %v1115_v1 = vmul.u32 40, %v1114_v3  ;;  %v5185_v24 = vmax.f32 %v9589_v27, 0.0  ;;  %v1994_v17 = vshrl.u32 %v9594_v11, 5 }
 0x268   : > { %v3586_v51 = vsel %vm3426_vm8, 1.0, %v10107_v10  ;;  %vm2549_vm14 = vmand %vm2389_vm5, %vm2229_vm3  ;;  %v9602_v7 = vmul.u32.u64.low 3435973837, %v311_v30  ;;  %v9603_v20 = vmul.u32.u64.high 3435973837, %v311_v30, %v9602_v7  ;;  %v9608_v53 = vadd.f32 %v9279_v14, %v9134_v42 }
 0x269   : > { %v5423_v46 = vmul.f32 %v5263_v8, %v3586_v51  ;;  %v2869_v47 = vsel %vm2549_vm14, %v2709_v44, %v1127_v23  ;;  %v2007_v26 = vsub.s32 %v389_v6, %v2006_v48  ;;  %v1116_v22 = vsub.s32 %v308_v39, %v1115_v1 }
 0x26a   : > { %vm3029_vm0 = vcmp.ge.s32.totalorder %v2869_v47, 2  ;;  %vm3189_vm4 = vcmp.lt.s32.totalorder %v2869_v47, 34  ;;  %v1995_v39 = vmul.u32 40, %v1994_v17  ;;  %v1147_v42 = vshrl.u32 %v9603_v20, 5 }
 0x26b   : > { %5583 = vst.msk [vmem:[%s6806_s30 + $0x4c0] sm:$0xff] %vm222_vm1, %v5423_v46  ;;  %vm3349_vm7 = vmand %vm3029_vm0, %vm3189_vm4  ;;  %vm2309_vm9 = vcmp.ne.s32.totalorder %v2007_v26, 0  ;;  %vm2469_vm11 = vcmp.lt.s32.totalorder %v2007_v26, 0  ;;  %v2789_v57 = vadd.s32 40, %v2007_v26  ;;  %vm2228_vm2 = vcmp.ne.s32.totalorder %v1116_v22, 0 }
 0x26c   : > { %v3509_v8 = vsel %vm3349_vm7, 1.0, %v10107_v10  ;;  %vm2629_vm6 = vmand %vm2469_vm11, %vm2309_vm9  ;;  %vm2388_vm10 = vcmp.lt.s32.totalorder %v1116_v22, 0  ;;  %v2708_v6 = vadd.s32 40, %v1116_v22  ;;  %v391_v0 = vadd.s32 1176, %v6884_v50 }
 0x26d   : > { %v5346_v13 = vmul.f32 %v5186_v62, %v3509_v8  ;;  %v2949_v35 = vsel %vm2629_vm6, %v2789_v57, %v2007_v26  ;;  %vm2548_vm12 = vmand %vm2388_vm10, %vm2228_vm2  ;;  %v1996_v38 = vsub.s32 %v388_v36, %v1995_v39  ;;  %v5265_v27 = vmax.f32 %v9598_v25, 0.0 }
 0x26e   : > { %vm3109_vm13 = vcmp.ge.s32.totalorder %v2949_v35, 2  ;;  %vm3269_vm15 = vcmp.lt.s32.totalorder %v2949_v35, 34  ;;  %v2868_v23 = vsel %vm2548_vm12, %v2708_v6, %v1116_v22  ;;  %v1148_v12 = vmul.u32 40, %v1147_v42 }
 0x26f   : > { %5506 = vst.msk [vmem:[%s6806_s30 + $0x258] sm:$0xff] %vm222_vm1, %v5346_v13  ;;  %vm3429_vm3 = vmand %vm3109_vm13, %vm3269_vm15  ;;  %vm3028_vm5 = vcmp.ge.s32.totalorder %v2868_v23, 2  ;;  %vm3188_vm8 = vcmp.lt.s32.totalorder %v2868_v23, 34  ;;  %vm2308_vm0 = vcmp.ne.s32.totalorder %v1996_v38, 0  ;;  %vm2468_vm4 = vcmp.lt.s32.totalorder %v1996_v38, 0 }
 0x270   : > { %v3589_v62 = vsel %vm3429_vm3, 1.0, %v10107_v10  ;;  %vm3348_vm14 = vmand %vm3028_vm5, %vm3188_vm8  ;;  %v2788_v3 = vadd.s32 40, %v1996_v38  ;;  %v1149_v11 = vsub.s32 %v311_v30, %v1148_v12  ;;  %v5188_v44 = vmax.f32 %v9608_v53, 0.0 }
 0x271   : > { %v5426_v34 = vmul.f32 %v5266_v61, %v3589_v62  ;;  %v3508_v36 = vsel %vm3348_vm14, 1.0, %v10107_v10  ;;  %vm2628_vm7 = vmand %vm2468_vm4, %vm2308_vm0  ;;  %v9623_v25 = vmul.u32.u64.low 3435973837, %v391_v0  ;;  %v9624_v51 = vmul.u32.u64.high 3435973837, %v391_v0, %v9623_v25 }
 0x272   : > { %v5345_v48 = vmul.f32 %v5185_v24, %v3508_v36  ;;  %v2948_v1 = vsel %vm2628_vm7, %v2788_v3, %v1996_v38  ;;  %vm2231_vm2 = vcmp.ne.s32.totalorder %v1149_v11, 0  ;;  %vm2391_vm6 = vcmp.lt.s32.totalorder %v1149_v11, 0 }
 0x273   : > { %5586 = vst.msk [vmem:[%s6806_s30 + $0x4d8] sm:$0xff] %vm222_vm1, %v5426_v34  ;;  %vm3108_vm9 = vcmp.ge.s32.totalorder %v2948_v1, 2  ;;  %vm3268_vm11 = vcmp.lt.s32.totalorder %v2948_v1, 34  ;;  %v2711_v58 = vadd.s32 40, %v1149_v11  ;;  %v5058_v61 = vadd.f32 %v9279_v14, %v9164_v33  ;;  %vm2551_vm12 = vmand %vm2391_vm6, %vm2231_vm2 }
 0x274   : > { %5505 = vst.msk [vmem:[%s6806_s30 + $0x250] sm:$0xff] %vm222_vm1, %v5345_v48  ;;  %vm3428_vm10 = vmand %vm3108_vm9, %vm3268_vm11  ;;  %v310_v30 = vadd.s32 528, %v6884_v50  ;;  %v390_v24 = vadd.s32 1168, %v6884_v50  ;;  %v9637_v20 = vadd.f32 %v9279_v14, %v9190_v32  ;;  %v9641_v46 = vadd.f32 %v9279_v14, %v9194_v29 }
 0x275   : > { %v3588_v7 = vsel %vm3428_vm10, 1.0, %v10107_v10  ;;  %v313_v47 = vadd.s32 552, %v6884_v50  ;;  %v2871_v22 = vsel %vm2551_vm12, %v2711_v58, %v1149_v11  ;;  %v2027_v33 = vshrl.u32 %v9624_v51, 5 }
 0x276   : > { %v5425_v26 = vmul.f32 %v5265_v27, %v3588_v7  ;;  %v9647_v17 = vadd.f32 %v9279_v14, %v9216_v52  ;;  %vm3031_vm13 = vcmp.ge.s32.totalorder %v2871_v22, 2  ;;  %vm3191_vm15 = vcmp.lt.s32.totalorder %v2871_v22, 34 }
 0x277   : > { %v9649_v53 = vmul.u32.u64.low 3435973837, %v310_v30  ;;  %v9650_v57 = vmul.u32.u64.high 3435973837, %v310_v30, %v9649_v53  ;;  %vm3351_vm3 = vmand %vm3031_vm13, %vm3191_vm15  ;;  %v2028_v32 = vmul.u32 40, %v2027_v33  ;;  %v5268_v29 = vmax.f32 %v5058_v61, 0.0 }
 0x278   : > { %5585 = vst.msk [vmem:[%s6806_s30 + $0x4d0] sm:$0xff] %vm222_vm1, %v5425_v26  ;;  %v9654_v8 = vmul.u32.u64.low 3435973837, %v390_v24  ;;  %v9655_v6 = vmul.u32.u64.high 3435973837, %v390_v24, %v9654_v8  ;;  %v3511_v39 = vsel %vm3351_vm3, 1.0, %v10107_v10  ;;  %v5187_v13 = vmax.f32 %v9637_v20, 0.0 }
 0x279   : > { %v9659_v52 = vmul.u32.u64.low 3435973837, %v313_v47  ;;  %v9660_v35 = vmul.u32.u64.high 3435973837, %v313_v47, %v9659_v52  ;;  %v5348_v42 = vmul.f32 %v5188_v44, %v3511_v39  ;;  %v2029_v23 = vsub.s32 %v391_v0, %v2028_v32  ;;  %v9714_v20 = vld [vmem:[%s10032_s2] ss:$0 sm:$0xff] }
 0x27a   : > { %v5267_v38 = vmax.f32 %v9641_v46, 0.0  ;;  %v9664_v27 = vadd.s32 1192, %v6884_v50  ;;  %v1136_v12 = vshrl.u32 %v9650_v57, 5  ;;  %v5190_v62 = vmax.f32 %v9647_v17, 0.0 }
 0x27b   : > { %v9670_v3 = vadd.f32 %v9279_v14, %v9226_v45  ;;  %v312_v34 = vadd.s32 544, %v6884_v50  ;;  %5508 = vst.msk [vmem:[%s6806_s30 + $0x268] sm:$0xff] %vm222_vm1, %v5348_v42  ;;  %vm2311_vm5 = vcmp.ne.s32.totalorder %v2029_v23, 0  ;;  %vm2471_vm8 = vcmp.lt.s32.totalorder %v2029_v23, 0 }
 0x27c   : > { %v2791_v0 = vadd.s32 40, %v2029_v23  ;;  %v2016_v36 = vshrl.u32 %v9655_v6, 5  ;;  %vm2631_vm14 = vmand %vm2471_vm8, %vm2311_vm5  ;;  %v1137_v11 = vmul.u32 40, %v1136_v12  ;;  %v1169_v44 = vshrl.u32 %v9660_v35, 5 }
 0x27d   : > { %v9678_v48 = vmul.u32.u64.low 3435973837, %v9664_v27  ;;  %v9679_v1 = vmul.u32.u64.high 3435973837, %v9664_v27, %v9678_v48  ;;  %v9683_v51 = vadd.f32 %v9279_v14, %v9234_v19  ;;  %v9686_v58 = vadd.s32 1184, %v6884_v50 }
 0x27e   : > { %v2951_v25 = vsel %vm2631_vm14, %v2791_v0, %v2029_v23  ;;  %v2017_v45 = vmul.u32 40, %v2016_v36  ;;  %v1138_v61 = vsub.s32 %v310_v30, %v1137_v11  ;;  %v1170_v7 = vmul.u32 40, %v1169_v44 }
 0x27f   : > { %vm3111_vm0 = vcmp.ge.s32.totalorder %v2951_v25, 2  ;;  %vm3271_vm4 = vcmp.lt.s32.totalorder %v2951_v25, 34  ;;  %v5270_v22 = vmax.f32 %v9670_v3, 0.0  ;;  %v5189_v6 = vmax.f32 %v9683_v51, 0.0 }
 0x280   : > { %vm3431_vm7 = vmand %vm3111_vm0, %vm3271_vm4  ;;  %v2018_v26 = vsub.s32 %v390_v24, %v2017_v45  ;;  %v9689_v33 = vmul.u32.u64.low 3435973837, %v312_v34  ;;  %v9690_v53 = vmul.u32.u64.high 3435973837, %v312_v34, %v9689_v33  ;;  %vm2230_vm9 = vcmp.ne.s32.totalorder %v1138_v61, 0 }
 0x281   : > { %v3591_v57 = vsel %vm3431_vm7, 1.0, %v10107_v10  ;;  %vm2390_vm11 = vcmp.lt.s32.totalorder %v1138_v61, 0  ;;  %v2710_v19 = vadd.s32 40, %v1138_v61  ;;  %v1171_v8 = vsub.s32 %v313_v47, %v1170_v7 }
 0x282   : > { %v5428_v14 = vmul.f32 %v5268_v29, %v3591_v57  ;;  %vm2550_vm2 = vmand %vm2390_vm11, %vm2230_vm9  ;;  %vm2310_vm6 = vcmp.ne.s32.totalorder %v2018_v26, 0  ;;  %vm2470_vm10 = vcmp.lt.s32.totalorder %v2018_v26, 0  ;;  %v2790_v32 = vadd.s32 40, %v2018_v26 }
 0x283   : > { %v2870_v30 = vsel %vm2550_vm2, %v2710_v19, %v1138_v61  ;;  %vm2630_vm12 = vmand %vm2470_vm10, %vm2310_vm6  ;;  %v2049_v24 = vshrl.u32 %v9679_v1, 5  ;;  %v1158_v52 = vshrl.u32 %v9690_v53, 5  ;;  %vm2233_vm14 = vcmp.ne.s32.totalorder %v1171_v8, 0 }
 0x284   : > { %5588 = vst.msk [vmem:[%s6806_s30 + $0x4e8] sm:$0xff] %vm222_vm1, %v5428_v14  ;;  %vm3030_vm13 = vcmp.ge.s32.totalorder %v2870_v30, 2  ;;  %vm3190_vm15 = vcmp.lt.s32.totalorder %v2870_v30, 34  ;;  %v2950_v39 = vsel %vm2630_vm12, %v2790_v32, %v2018_v26  ;;  %vm2393_vm0 = vcmp.lt.s32.totalorder %v1171_v8, 0 }
 0x285   : > { %vm3350_vm3 = vmand %vm3030_vm13, %vm3190_vm15  ;;  %vm3110_vm5 = vcmp.ge.s32.totalorder %v2950_v39, 2  ;;  %vm3270_vm8 = vcmp.lt.s32.totalorder %v2950_v39, 34  ;;  %v2713_v47 = vadd.s32 40, %v1171_v8  ;;  %v2050_v35 = vmul.u32 40, %v2049_v24 }
 0x286   : > { %v3510_v29 = vsel %vm3350_vm3, 1.0, %v10107_v10  ;;  %vm3430_vm4 = vmand %vm3110_vm5, %vm3270_vm8  ;;  %v1159_v42 = vmul.u32 40, %v1158_v52  ;;  %v9703_v0 = vmul.u32.u64.low 3435973837, %v9686_v58  ;;  %v9704_v36 = vmul.u32.u64.high 3435973837, %v9686_v58, %v9703_v0 }
 0x287   : > { %v5347_v23 = vmul.f32 %v5187_v13, %v3510_v29  ;;  %v3590_v12 = vsel %vm3430_vm4, 1.0, %v10107_v10  ;;  %vm2553_vm7 = vmand %vm2393_vm0, %vm2233_vm14  ;;  %v2051_v48 = vsub.s32 %v9664_v27, %v2050_v35  ;;  %v9718_v13 = vadd.f32 %v9714_v20, %v9258_v9 }
 0x288   : > { %v5427_v11 = vmul.f32 %v5267_v38, %v3590_v12  ;;  %v2873_v44 = vsel %vm2553_vm7, %v2713_v47, %v1171_v8  ;;  %v1160_v1 = vsub.s32 %v312_v34, %v1159_v42  ;;  %v315_v46 = vadd.s32 568, %v6884_v50 }
 0x289   : > { %5507 = vst.msk [vmem:[%s6806_s30 + $0x260] sm:$0xff] %vm222_vm1, %v5347_v23  ;;  %vm3033_vm9 = vcmp.ge.s32.totalorder %v2873_v44, 2  ;;  %vm3193_vm11 = vcmp.lt.s32.totalorder %v2873_v44, 34  ;;  %vm2313_vm6 = vcmp.ne.s32.totalorder %v2051_v48, 0  ;;  %vm2473_vm10 = vcmp.lt.s32.totalorder %v2051_v48, 0 }
 0x28a   : > { %5587 = vst.msk [vmem:[%s6806_s30 + $0x4e0] sm:$0xff] %vm222_vm1, %v5427_v11  ;;  %vm3353_vm2 = vmand %vm3033_vm9, %vm3193_vm11  ;;  %v2793_v38 = vadd.s32 40, %v2051_v48  ;;  %vm2232_vm12 = vcmp.ne.s32.totalorder %v1160_v1, 0  ;;  %vm2392_vm15 = vcmp.lt.s32.totalorder %v1160_v1, 0  ;;  %v2712_v34 = vadd.s32 40, %v1160_v1 }
 0x28b   : > { %v3513_v27 = vsel %vm3353_vm2, 1.0, %v10107_v10  ;;  %vm2633_vm13 = vmand %vm2473_vm10, %vm2313_vm6  ;;  %v2038_v25 = vshrl.u32 %v9704_v36, 5  ;;  %v9727_v61 = vmul.u32.u64.low 3435973837, %v315_v46  ;;  %v9728_v7 = vmul.u32.u64.high 3435973837, %v315_v46, %v9727_v61 }
 0x28c   : > { %v5350_v9 = vmul.f32 %v5190_v62, %v3513_v27  ;;  %v2953_v45 = vsel %vm2633_vm13, %v2793_v38, %v2051_v48  ;;  %vm2552_vm3 = vmand %vm2392_vm15, %vm2232_vm12  ;;  %v4678_v53 = vadd.f32 %v9714_v20, %v9272_v56  ;;  %v395_v17 = vadd.s32 1208, %v6884_v50 }
 0x28d   : > { %vm3113_vm5 = vcmp.ge.s32.totalorder %v2953_v45, 2  ;;  %vm3273_vm8 = vcmp.lt.s32.totalorder %v2953_v45, 34  ;;  %v2872_v26 = vsel %vm2552_vm3, %v2712_v34, %v1160_v1  ;;  %v2039_v33 = vmul.u32 40, %v2038_v25 }
 0x28e   : > { %5510 = vst.msk [vmem:[%s6806_s30 + $0x278] sm:$0xff] %vm222_vm1, %v5350_v9  ;;  %vm3433_vm14 = vmand %vm3113_vm5, %vm3273_vm8  ;;  %vm3032_vm0 = vcmp.ge.s32.totalorder %v2872_v26, 2  ;;  %vm3192_vm4 = vcmp.lt.s32.totalorder %v2872_v26, 34  ;;  %v9739_v19 = vadd.f32 %v9714_v20, %v9311_v60  ;;  %v314_v14 = vadd.s32 560, %v6884_v50 }
 0x28f   : > { %v3593_v62 = vsel %vm3433_vm14, 1.0, %v10107_v10  ;;  %vm3352_vm7 = vmand %vm3032_vm0, %vm3192_vm4  ;;  %v2040_v57 = vsub.s32 %v9686_v58, %v2039_v33  ;;  %v1191_v56 = vshrl.u32 %v9728_v7, 5  ;;  %v9748_v8 = vadd.f32 %v9714_v20, %v9316_v4 }
 0x290   : > { %v5430_v32 = vmul.f32 %v5270_v22, %v3593_v62  ;;  %v3512_v30 = vsel %vm3352_vm7, 1.0, %v10107_v10  ;;  %v5269_v3 = vmax.f32 %v9718_v13, 0.0  ;;  %v5192_v4 = vmax.f32 %v4678_v53, 0.0 }
 0x291   : > { %v5349_v58 = vmul.f32 %v5189_v6, %v3512_v30  ;;  %vm2312_vm9 = vcmp.ne.s32.totalorder %v2040_v57, 0  ;;  %vm2472_vm11 = vcmp.lt.s32.totalorder %v2040_v57, 0  ;;  %v2792_v60 = vadd.s32 40, %v2040_v57 }
 0x292   : > { %5590 = vst.msk [vmem:[%s6806_s30 + $0x4f8] sm:$0xff] %vm222_vm1, %v5430_v32  ;;  %vm2632_vm2 = vmand %vm2472_vm11, %vm2312_vm9  ;;  %v1192_v22 = vmul.u32 40, %v1191_v56  ;;  %v9755_v24 = vmul.u32.u64.low 3435973837, %v395_v17  ;;  %v9756_v39 = vmul.u32.u64.high 3435973837, %v395_v17, %v9755_v24  ;;  %v394_v6 = vadd.s32 1200, %v6884_v50 }
 0x293   : > { %5509 = vst.msk [vmem:[%s6806_s30 + $0x270] sm:$0xff] %vm222_vm1, %v5349_v58  ;;  %v2952_v52 = vsel %vm2632_vm2, %v2792_v60, %v2040_v57  ;;  %v9760_v29 = vmul.u32.u64.low 3435973837, %v314_v14  ;;  %v9761_v47 = vmul.u32.u64.high 3435973837, %v314_v14, %v9760_v29  ;;  %v5272_v35 = vmax.f32 %v9739_v19, 0.0 }
 0x294   : > { %vm3112_vm6 = vcmp.ge.s32.totalorder %v2952_v52, 2  ;;  %vm3272_vm10 = vcmp.lt.s32.totalorder %v2952_v52, 34  ;;  %v1193_v51 = vsub.s32 %v315_v46, %v1192_v22  ;;  %v5191_v42 = vmax.f32 %v9748_v8, 0.0 }
 0x295   : > { %vm3432_vm12 = vmand %vm3112_vm6, %vm3272_vm10  ;;  %v9767_v23 = vadd.s32 584, %v6884_v50  ;;  %v9770_v12 = vadd.s32 1224, %v6884_v50  ;;  %v2071_v44 = vshrl.u32 %v9756_v39, 5  ;;  %v1180_v48 = vshrl.u32 %v9761_v47, 5 }
 0x296   : > { %v3592_v0 = vsel %vm3432_vm12, 1.0, %v10107_v10  ;;  %vm2235_vm13 = vcmp.ne.s32.totalorder %v1193_v51, 0  ;;  %vm2395_vm15 = vcmp.lt.s32.totalorder %v1193_v51, 0  ;;  %v2715_v36 = vadd.s32 40, %v1193_v51 }
 0x297   : > { %v5429_v11 = vmul.f32 %v5269_v3, %v3592_v0  ;;  %vm2555_vm3 = vmand %vm2395_vm15, %vm2235_vm13  ;;  %v9777_v1 = vadd.f32 %v9714_v20, %v9327_v2  ;;  %v9779_v46 = vmul.u32.u64.low 3435973837, %v394_v6  ;;  %v9780_v38 = vmul.u32.u64.high 3435973837, %v394_v6, %v9779_v46 }
 0x298   : > { %v2875_v13 = vsel %vm2555_vm3, %v2715_v36, %v1193_v51  ;;  %v9784_v27 = vadd.f32 %v9714_v20, %v9344_v31  ;;  %v2072_v34 = vmul.u32 40, %v2071_v44  ;;  %v1181_v25 = vmul.u32 40, %v1180_v48 }
 0x299   : > { %5589 = vst.msk [vmem:[%s6806_s30 + $0x4f0] sm:$0xff] %vm222_vm1, %v5429_v11  ;;  %vm3035_vm5 = vcmp.ge.s32.totalorder %v2875_v13, 2  ;;  %vm3195_vm8 = vcmp.lt.s32.totalorder %v2875_v13, 34  ;;  %v9789_v9 = vmul.u32.u64.low 3435973837, %v9767_v23  ;;  %v9790_v2 = vmul.u32.u64.high 3435973837, %v9767_v23, %v9789_v9 }
 0x29a   : > { %vm3355_vm14 = vmand %vm3035_vm5, %vm3195_vm8  ;;  %v9793_v45 = vmul.u32.u64.low 3435973837, %v9770_v12  ;;  %v9794_v61 = vmul.u32.u64.high 3435973837, %v9770_v12, %v9793_v45  ;;  %v2073_v31 = vsub.s32 %v395_v17, %v2072_v34  ;;  %v1182_v26 = vsub.s32 %v314_v14, %v1181_v25 }
 0x29b   : > { %v3515_v7 = vsel %vm3355_vm14, 1.0, %v10107_v10  ;;  %v5271_v33 = vmax.f32 %v9777_v1, 0.0  ;;  %v2060_v62 = vshrl.u32 %v9780_v38, 5  ;;  %v5194_v57 = vmax.f32 %v9784_v27, 0.0 }
 0x29c   : > { %v5352_v53 = vmul.f32 %v5192_v4, %v3515_v7  ;;  %v9802_v32 = vadd.f32 %v9714_v20, %v9350_v63  ;;  %vm2315_vm0 = vcmp.ne.s32.totalorder %v2073_v31, 0  ;;  %vm2475_vm4 = vcmp.lt.s32.totalorder %v2073_v31, 0 }
 0x29d   : > { %v2795_v30 = vadd.s32 40, %v2073_v31  ;;  %vm2234_vm7 = vcmp.ne.s32.totalorder %v1182_v26, 0  ;;  %vm2635_vm9 = vmand %vm2475_vm4, %vm2315_vm0  ;;  %vm2394_vm11 = vcmp.lt.s32.totalorder %v1182_v26, 0  ;;  %v2714_v17 = vadd.s32 40, %v1182_v26 }
 0x29e   : > { %5512 = vst.msk [vmem:[%s6806_s30 + $0x288] sm:$0xff] %vm222_vm1, %v5352_v53  ;;  %v2061_v14 = vmul.u32 40, %v2060_v62  ;;  %v1213_v56 = vshrl.u32 %v9790_v2, 5  ;;  %vm2554_vm2 = vmand %vm2394_vm11, %vm2234_vm7  ;;  %v2093_v60 = vshrl.u32 %v9794_v61, 5  ;;  %v316_v3 = vadd.s32 576, %v6884_v50 }
 0x29f   : > { %v2955_v58 = vsel %vm2635_vm9, %v2795_v30, %v2073_v31  ;;  %v9811_v63 = vadd.f32 %v9714_v20, %v9381_v16  ;;  %v2874_v22 = vsel %vm2554_vm2, %v2714_v17, %v1182_v26  ;;  %v9835_v46 = vadd.f32 %v9714_v20, %v9405_v40 }
 0x2a0   : > { %vm3115_vm6 = vcmp.ge.s32.totalorder %v2955_v58, 2  ;;  %vm3275_vm10 = vcmp.lt.s32.totalorder %v2955_v58, 34  ;;  %v2062_v24 = vsub.s32 %v394_v6, %v2061_v14  ;;  %vm3034_vm13 = vcmp.ge.s32.totalorder %v2874_v22, 2 }
 0x2a1   : > { %vm3435_vm12 = vmand %vm3115_vm6, %vm3275_vm10  ;;  %vm3194_vm15 = vcmp.lt.s32.totalorder %v2874_v22, 34  ;;  %v1214_v39 = vmul.u32 40, %v1213_v56  ;;  %v2094_v52 = vmul.u32 40, %v2093_v60  ;;  %v319_v34 = vadd.s32 600, %v6884_v50 }
 0x2a2   : > { %v3595_v4 = vsel %vm3435_vm12, 1.0, %v10107_v10  ;;  %vm3354_vm3 = vmand %vm3034_vm13, %vm3194_vm15  ;;  %vm2314_vm5 = vcmp.ne.s32.totalorder %v2062_v24, 0  ;;  %vm2474_vm8 = vcmp.lt.s32.totalorder %v2062_v24, 0  ;;  %v2794_v29 = vadd.s32 40, %v2062_v24 }
 0x2a3   : > { %v5432_v16 = vmul.f32 %v5272_v35, %v3595_v4  ;;  %v3514_v47 = vsel %vm3354_vm3, 1.0, %v10107_v10  ;;  %vm2634_vm14 = vmand %vm2474_vm8, %vm2314_vm5  ;;  %v1215_v51 = vsub.s32 %v9767_v23, %v1214_v39  ;;  %v2095_v6 = vsub.s32 %v9770_v12, %v2094_v52 }
 0x2a4   : > { %v5351_v0 = vmul.f32 %v5191_v42, %v3514_v47  ;;  %v2954_v36 = vsel %vm2634_vm14, %v2794_v29, %v2062_v24  ;;  %v9821_v11 = vmul.u32.u64.low 3435973837, %v316_v3  ;;  %v9822_v44 = vmul.u32.u64.high 3435973837, %v316_v3, %v9821_v11 }
 0x2a5   : > { %5592 = vst.msk [vmem:[%s6806_s30 + $0x508] sm:$0xff] %vm222_vm1, %v5432_v16  ;;  %vm3114_vm0 = vcmp.ge.s32.totalorder %v2954_v36, 2  ;;  %vm3274_vm4 = vcmp.lt.s32.totalorder %v2954_v36, 34  ;;  %vm2237_vm7 = vcmp.ne.s32.totalorder %v1215_v51, 0  ;;  %vm2397_vm9 = vcmp.lt.s32.totalorder %v1215_v51, 0 }
 0x2a6   : > { %5511 = vst.msk [vmem:[%s6806_s30 + $0x280] sm:$0xff] %vm222_vm1, %v5351_v0  ;;  %vm3434_vm11 = vmand %vm3114_vm0, %vm3274_vm4  ;;  %v2717_v19 = vadd.s32 40, %v1215_v51  ;;  %vm2317_vm2 = vcmp.ne.s32.totalorder %v2095_v6, 0  ;;  %vm2477_vm6 = vcmp.lt.s32.totalorder %v2095_v6, 0  ;;  %v2797_v35 = vadd.s32 40, %v2095_v6 }
 0x2a7   : > { %v3594_v8 = vsel %vm3434_vm11, 1.0, %v10107_v10  ;;  %vm2557_vm10 = vmand %vm2397_vm9, %vm2237_vm7  ;;  %v5274_v42 = vmax.f32 %v9802_v32, 0.0  ;;  %v5193_v23 = vmax.f32 %v9811_v63, 0.0  ;;  %v396_v12 = vadd.s32 1216, %v6884_v50 }
 0x2a8   : > { %v5431_v48 = vmul.f32 %v5271_v33, %v3594_v8  ;;  %v2877_v1 = vsel %vm2557_vm10, %v2717_v19, %v1215_v51  ;;  %vm2637_vm12 = vmand %vm2477_vm6, %vm2317_vm2  ;;  %v1202_v13 = vshrl.u32 %v9822_v44, 5  ;;  %v9842_v9 = vadd.f32 %v9714_v20, %v9415_v5 }
 0x2a9   : > { %vm3037_vm13 = vcmp.ge.s32.totalorder %v2877_v1, 2  ;;  %vm3197_vm15 = vcmp.lt.s32.totalorder %v2877_v1, 34  ;;  %v2957_v38 = vsel %vm2637_vm12, %v2797_v35, %v2095_v6  ;;  %v399_v61 = vadd.s32 1240, %v6884_v50 }
 0x2aa   : > { %5591 = vst.msk [vmem:[%s6806_s30 + $0x500] sm:$0xff] %vm222_vm1, %v5431_v48  ;;  %vm3357_vm3 = vmand %vm3037_vm13, %vm3197_vm15  ;;  %vm3117_vm5 = vcmp.ge.s32.totalorder %v2957_v38, 2  ;;  %vm3277_vm8 = vcmp.lt.s32.totalorder %v2957_v38, 34  ;;  %v1203_v25 = vmul.u32 40, %v1202_v13  ;;  %v5273_v33 = vmax.f32 %v9835_v46, 0.0 }
 0x2ab   : > { %v3517_v2 = vsel %vm3357_vm3, 1.0, %v10107_v10  ;;  %vm3437_vm14 = vmand %vm3117_vm5, %vm3277_vm8  ;;  %v9845_v40 = vmul.u32.u64.low 3435973837, %v396_v12  ;;  %v9846_v45 = vmul.u32.u64.high 3435973837, %v396_v12, %v9845_v40  ;;  %v318_v32 = vadd.s32 592, %v6884_v50 }
 0x2ac   : > { %v5354_v7 = vmul.f32 %v5194_v57, %v3517_v2  ;;  %v3597_v31 = vsel %vm3437_vm14, 1.0, %v10107_v10  ;;  %v1204_v26 = vsub.s32 %v316_v3, %v1203_v25  ;;  %v9861_v27 = vadd.f32 %v9714_v20, %v9430_v18 }
 0x2ad   : > { %v5434_v53 = vmul.f32 %v5274_v42, %v3597_v31  ;;  %v9853_v5 = vmul.u32.u64.low 3435973837, %v319_v34  ;;  %v9854_v62 = vmul.u32.u64.high 3435973837, %v319_v34, %v9853_v5  ;;  %v2082_v57 = vshrl.u32 %v9846_v45, 5 }
 0x2ae   : > { %5514 = vst.msk [vmem:[%s6806_s30 + $0x298] sm:$0xff] %vm222_vm1, %v5354_v7  ;;  %vm2236_vm0 = vcmp.ne.s32.totalorder %v1204_v26, 0  ;;  %vm2396_vm4 = vcmp.lt.s32.totalorder %v1204_v26, 0  ;;  %v2716_v30 = vadd.s32 40, %v1204_v26  ;;  %v9871_v56 = vadd.f32 %v9714_v20, %v9432_v43 }
 0x2af   : > { %5594 = vst.msk [vmem:[%s6806_s30 + $0x518] sm:$0xff] %vm222_vm1, %v5434_v53  ;;  %vm2556_vm7 = vmand %vm2396_vm4, %vm2236_vm0  ;;  %v9866_v17 = vmul.u32.u64.low 3435973837, %v399_v61  ;;  %v9867_v14 = vmul.u32.u64.high 3435973837, %v399_v61, %v9866_v17  ;;  %v9873_v60 = vmul.u32.u64.low 3435973837, %v318_v32  ;;  %v9874_v3 = vmul.u32.u64.high 3435973837, %v318_v32, %v9873_v60 }
 0x2b0   : > { %v2876_v58 = vsel %vm2556_vm7, %v2716_v30, %v1204_v26  ;;  %v398_v63 = vadd.s32 1232, %v6884_v50  ;;  %v2083_v18 = vmul.u32 40, %v2082_v57  ;;  %v1235_v22 = vshrl.u32 %v9854_v62, 5 }
 0x2b1   : > { %vm3036_vm9 = vcmp.ge.s32.totalorder %v2876_v58, 2  ;;  %vm3196_vm11 = vcmp.lt.s32.totalorder %v2876_v58, 34  ;;  %v5196_v24 = vmax.f32 %v9842_v9, 0.0  ;;  %v5276_v39 = vmax.f32 %v9861_v27, 0.0 }
 0x2b2   : > { %vm3356_vm2 = vmand %vm3036_vm9, %vm3196_vm11  ;;  %v9880_v52 = vmul.u32.u64.low 3435973837, %v398_v63  ;;  %v9881_v43 = vmul.u32.u64.high 3435973837, %v398_v63, %v9880_v52  ;;  %v2084_v29 = vsub.s32 %v396_v12, %v2083_v18  ;;  %v1236_v16 = vmul.u32 40, %v1235_v22 }
 0x2b3   : > { %v3516_v4 = vsel %vm3356_vm2, 1.0, %v10107_v10  ;;  %v2115_v47 = vshrl.u32 %v9867_v14, 5  ;;  %v1224_v6 = vshrl.u32 %v9874_v3, 5  ;;  %v5195_v0 = vmax.f32 %v9871_v56, 0.0 }
 0x2b4   : > { %v5353_v51 = vmul.f32 %v5193_v23, %v3516_v4  ;;  %v9888_v36 = vadd.s32 616, %v6884_v50  ;;  %vm2316_vm6 = vcmp.ne.s32.totalorder %v2084_v29, 0  ;;  %vm2476_vm10 = vcmp.lt.s32.totalorder %v2084_v29, 0 }
 0x2b5   : > { %v2796_v11 = vadd.s32 40, %v2084_v29  ;;  %v1237_v44 = vsub.s32 %v319_v34, %v1236_v16  ;;  %vm2636_vm12 = vmand %vm2476_vm10, %vm2316_vm6  ;;  %v2116_v19 = vmul.u32 40, %v2115_v47  ;;  %v1225_v35 = vmul.u32 40, %v1224_v6 }
 0x2b6   : > { %5513 = vst.msk [vmem:[%s6806_s30 + $0x290] sm:$0xff] %vm222_vm1, %v5353_v51  ;;  %v2104_v8 = vshrl.u32 %v9881_v43, 5  ;;  %v9895_v42 = vadd.f32 %v9714_v20, %v9446_v37  ;;  %v9898_v34 = vmul.u32.u64.low 3435973837, %v9888_v36  ;;  %v9899_v25 = vmul.u32.u64.high 3435973837, %v9888_v36, %v9898_v34 }
 0x2b7   : > { %v2956_v23 = vsel %vm2636_vm12, %v2796_v11, %v2084_v29  ;;  %vm2239_vm13 = vcmp.ne.s32.totalorder %v1237_v44, 0  ;;  %vm2399_vm15 = vcmp.lt.s32.totalorder %v1237_v44, 0  ;;  %v2719_v12 = vadd.s32 40, %v1237_v44 }
 0x2b8   : > { %vm3116_vm3 = vcmp.ge.s32.totalorder %v2956_v23, 2  ;;  %vm3276_vm5 = vcmp.lt.s32.totalorder %v2956_v23, 34  ;;  %vm2559_vm8 = vmand %vm2399_vm15, %vm2239_vm13  ;;  %v2117_v48 = vsub.s32 %v399_v61, %v2116_v19  ;;  %v1226_v1 = vsub.s32 %v318_v32, %v1225_v35 }
 0x2b9   : > { %vm3436_vm14 = vmand %vm3116_vm3, %vm3276_vm5  ;;  %v2879_v13 = vsel %vm2559_vm8, %v2719_v12, %v1237_v44  ;;  %v2105_v38 = vmul.u32 40, %v2104_v8  ;;  %v1257_v26 = vshrl.u32 %v9899_v25, 5  ;;  %v4708_v46 = vadd.f32 %v9714_v20, %v9462_v41 }
 0x2ba   : > { %v3596_v37 = vsel %vm3436_vm14, 1.0, %v10107_v10  ;;  %vm3039_vm0 = vcmp.ge.s32.totalorder %v2879_v13, 2  ;;  %vm3199_vm4 = vcmp.lt.s32.totalorder %v2879_v13, 34  ;;  %vm2319_vm7 = vcmp.ne.s32.totalorder %v2117_v48, 0 }
 0x2bb   : > { %v5433_v9 = vmul.f32 %v5273_v33, %v3596_v37  ;;  %vm3359_vm9 = vmand %vm3039_vm0, %vm3199_vm4  ;;  %vm2479_vm11 = vcmp.lt.s32.totalorder %v2117_v48, 0  ;;  %v2799_v2 = vadd.s32 40, %v2117_v48  ;;  %vm2238_vm2 = vcmp.ne.s32.totalorder %v1226_v1, 0 }
 0x2bc   : > { %v3519_v40 = vsel %vm3359_vm9, 1.0, %v10107_v10  ;;  %vm2639_vm6 = vmand %vm2479_vm11, %vm2319_vm7  ;;  %vm2398_vm10 = vcmp.lt.s32.totalorder %v1226_v1, 0  ;;  %v2718_v45 = vadd.s32 40, %v1226_v1  ;;  %v2106_v61 = vsub.s32 %v398_v63, %v2105_v38 }
 0x2bd   : > { %5593 = vst.msk [vmem:[%s6806_s30 + $0x510] sm:$0xff] %vm222_vm1, %v5433_v9  ;;  %v5356_v7 = vmul.f32 %v5196_v24, %v3519_v40  ;;  %v2959_v31 = vsel %vm2639_vm6, %v2799_v2, %v2117_v48  ;;  %vm2558_vm12 = vmand %vm2398_vm10, %vm2238_vm2  ;;  %v1258_v62 = vmul.u32 40, %v1257_v26  ;;  %v401_v32 = vadd.s32 1256, %v6884_v50 }
 0x2be   : > { %vm3119_vm13 = vcmp.ge.s32.totalorder %v2959_v31, 2  ;;  %vm3279_vm15 = vcmp.lt.s32.totalorder %v2959_v31, 34  ;;  %v2878_v33 = vsel %vm2558_vm12, %v2718_v45, %v1226_v1  ;;  %vm2318_vm3 = vcmp.ne.s32.totalorder %v2106_v61, 0 }
 0x2bf   : > { %5516 = vst.msk [vmem:[%s6806_s30 + $0x2a8] sm:$0xff] %vm222_vm1, %v5356_v7  ;;  %vm3439_vm5 = vmand %vm3119_vm13, %vm3279_vm15  ;;  %vm3038_vm8 = vcmp.ge.s32.totalorder %v2878_v33, 2  ;;  %vm3198_vm14 = vcmp.lt.s32.totalorder %v2878_v33, 34  ;;  %vm2478_vm0 = vcmp.lt.s32.totalorder %v2106_v61, 0  ;;  %v2798_v53 = vadd.s32 40, %v2106_v61 }
 0x2c0   : > { %v3599_v5 = vsel %vm3439_vm5, 1.0, %v10107_v10  ;;  %vm3358_vm4 = vmand %vm3038_vm8, %vm3198_vm14  ;;  %v5275_v57 = vmax.f32 %v9895_v42, 0.0  ;;  %v320_v17 = vadd.s32 608, %v6884_v50  ;;  %v1259_v60 = vsub.s32 %v9888_v36, %v1258_v62 }
 0x2c1   : > { %v5436_v41 = vmul.f32 %v5276_v39, %v3599_v5  ;;  %v3518_v30 = vsel %vm3358_vm4, 1.0, %v10107_v10  ;;  %vm2638_vm7 = vmand %vm2478_vm0, %vm2318_vm3  ;;  %v5198_v3 = vmax.f32 %v4708_v46, 0.0  ;;  %v9931_v56 = vadd.f32 %v9714_v20, %v9502_v59 }
 0x2c2   : > { %v5355_v14 = vmul.f32 %v5195_v0, %v3518_v30  ;;  %v2958_v58 = vsel %vm2638_vm7, %v2798_v53, %v2106_v61  ;;  %v9924_v27 = vmul.u32.u64.low 3435973837, %v401_v32  ;;  %v9925_v63 = vmul.u32.u64.high 3435973837, %v401_v32, %v9924_v27 }
 0x2c3   : > { %5596 = vst.msk [vmem:[%s6806_s30 + $0x528] sm:$0xff] %vm222_vm1, %v5436_v41  ;;  %vm3118_vm9 = vcmp.ge.s32.totalorder %v2958_v58, 2  ;;  %vm3278_vm11 = vcmp.lt.s32.totalorder %v2958_v58, 34  ;;  %vm2241_vm6 = vcmp.ne.s32.totalorder %v1259_v60, 0  ;;  %vm2401_vm10 = vcmp.lt.s32.totalorder %v1259_v60, 0 }
 0x2c4   : > { %5515 = vst.msk [vmem:[%s6806_s30 + $0x2a0] sm:$0xff] %vm222_vm1, %v5355_v14  ;;  %vm3438_vm2 = vmand %vm3118_vm9, %vm3278_vm11  ;;  %v2721_v18 = vadd.s32 40, %v1259_v60  ;;  %v9934_v24 = vmul.u32.u64.low 3435973837, %v320_v17  ;;  %v9935_v39 = vmul.u32.u64.high 3435973837, %v320_v17, %v9934_v24  ;;  %v400_v52 = vadd.s32 1248, %v6884_v50 }
 0x2c5   : > { %v3598_v22 = vsel %vm3438_vm2, 1.0, %v10107_v10  ;;  %vm2561_vm12 = vmand %vm2401_vm10, %vm2241_vm6  ;;  %v9940_v29 = vadd.f32 %v9714_v20, %v9508_v49  ;;  %v323_v16 = vadd.s32 632, %v6884_v50  ;;  %v2137_v59 = vshrl.u32 %v9925_v63, 5 }
 0x2c6   : > { %v5435_v43 = vmul.f32 %v5275_v57, %v3598_v22  ;;  %v2881_v4 = vsel %vm2561_vm12, %v2721_v18, %v1259_v60  ;;  %v9946_v47 = vmul.u32.u64.low 3435973837, %v400_v52  ;;  %v9947_v51 = vmul.u32.u64.high 3435973837, %v400_v52, %v9946_v47 }
 0x2c7   : > { %vm3041_vm13 = vcmp.ge.s32.totalorder %v2881_v4, 2  ;;  %vm3201_vm15 = vcmp.lt.s32.totalorder %v2881_v4, 34  ;;  %v9950_v6 = vadd.s32 1272, %v6884_v50  ;;  %v2138_v49 = vmul.u32 40, %v2137_v59 }
 0x2c8   : > { %5595 = vst.msk [vmem:[%s6806_s30 + $0x520] sm:$0xff] %vm222_vm1, %v5435_v43  ;;  %vm3361_vm3 = vmand %vm3041_vm13, %vm3201_vm15  ;;  %v5278_v36 = vmax.f32 %v9931_v56, 0.0  ;;  %v1246_v11 = vshrl.u32 %v9935_v39, 5  ;;  %v5197_v19 = vmax.f32 %v9940_v29, 0.0  ;;  %v2126_v1 = vshrl.u32 %v9947_v51, 5 }
 0x2c9   : > { %v3521_v0 = vsel %vm3361_vm3, 1.0, %v10107_v10  ;;  %v9956_v35 = vmul.u32.u64.low 3435973837, %v323_v16  ;;  %v9957_v8 = vmul.u32.u64.high 3435973837, %v323_v16, %v9956_v35  ;;  %v2139_v42 = vsub.s32 %v401_v32, %v2138_v49 }
 0x2ca   : > { %v5358_v44 = vmul.f32 %v5198_v3, %v3521_v0  ;;  %v1247_v23 = vmul.u32 40, %v1246_v11  ;;  %v9960_v12 = vmul.u32.u64.low 3435973837, %v9950_v6  ;;  %v9961_v48 = vmul.u32.u64.high 3435973837, %v9950_v6, %v9960_v12 }
 0x2cb   : > { %v5103_v13 = vadd.f32 %v9714_v20, %v9523_v21  ;;  %v9970_v38 = vadd.f32 %v9714_v20, %v9536_v15  ;;  %v9973_v34 = vadd.s32 624, %v6884_v50  ;;  %vm2321_vm5 = vcmp.ne.s32.totalorder %v2139_v42, 0 }
 0x2cc   : > { %5518 = vst.msk [vmem:[%s6806_s30 + $0x2b8] sm:$0xff] %vm222_vm1, %v5358_v44  ;;  %vm2481_vm8 = vcmp.lt.s32.totalorder %v2139_v42, 0  ;;  %v2801_v25 = vadd.s32 40, %v2139_v42  ;;  %v1248_v37 = vsub.s32 %v320_v17, %v1247_v23  ;;  %v2127_v9 = vmul.u32 40, %v2126_v1 }
 0x2cd   : > { %vm2641_vm14 = vmand %vm2481_vm8, %vm2321_vm5  ;;  %v1279_v2 = vshrl.u32 %v9957_v8, 5  ;;  %v9977_v40 = vmul.u32.u64.low 3435973837, %v9973_v34  ;;  %v9978_v45 = vmul.u32.u64.high 3435973837, %v9973_v34, %v9977_v40  ;;  %v5277_v26 = vmax.f32 %v5103_v13, 0.0 }
 0x2ce   : > { %v2961_v21 = vsel %vm2641_vm14, %v2801_v25, %v2139_v42  ;;  %vm2240_vm0 = vcmp.ne.s32.totalorder %v1248_v37, 0  ;;  %vm2400_vm4 = vcmp.lt.s32.totalorder %v1248_v37, 0  ;;  %v2720_v15 = vadd.s32 40, %v1248_v37 }
 0x2cf   : > { %vm3121_vm7 = vcmp.ge.s32.totalorder %v2961_v21, 2  ;;  %vm3281_vm9 = vcmp.lt.s32.totalorder %v2961_v21, 34  ;;  %vm2560_vm11 = vmand %vm2400_vm4, %vm2240_vm0  ;;  %v2128_v61 = vsub.s32 %v400_v52, %v2127_v9  ;;  %v1280_v7 = vmul.u32 40, %v1279_v2 }
 0x2d0   : > { %vm3441_vm2 = vmand %vm3121_vm7, %vm3281_vm9  ;;  %v2880_v31 = vsel %vm2560_vm11, %v2720_v15, %v1248_v37  ;;  %v2159_v46 = vshrl.u32 %v9961_v48, 5  ;;  %v9982_v33 = vadd.s32 1264, %v6884_v50  ;;  %v5200_v30 = vmax.f32 %v9970_v38, 0.0 }
 0x2d1   : > { %v3601_v53 = vsel %vm3441_vm2, 1.0, %v10107_v10  ;;  %vm3040_vm6 = vcmp.ge.s32.totalorder %v2880_v31, 2  ;;  %vm3200_vm10 = vcmp.lt.s32.totalorder %v2880_v31, 34  ;;  %vm2320_vm12 = vcmp.ne.s32.totalorder %v2128_v61, 0 }
 0x2d2   : > { %v5438_v5 = vmul.f32 %v5278_v36, %v3601_v53  ;;  %vm3360_vm13 = vmand %vm3040_vm6, %vm3200_vm10  ;;  %vm2480_vm15 = vcmp.lt.s32.totalorder %v2128_v61, 0  ;;  %v2800_v62 = vadd.s32 40, %v2128_v61  ;;  %v1281_v32 = vsub.s32 %v323_v16, %v1280_v7 }
 0x2d3   : > { %v3520_v41 = vsel %vm3360_vm13, 1.0, %v10107_v10  ;;  %vm2640_vm3 = vmand %vm2480_vm15, %vm2320_vm12  ;;  %v2160_v57 = vmul.u32 40, %v2159_v46  ;;  %v1268_v50 = vshrl.u32 %v9978_v45, 5  ;;  %v5118_v3 = vadd.f32 %v9714_v20, %v9545_v54 }
 0x2d4   : > { %5598 = vst.msk [vmem:[%s6806_s30 + $0x538] sm:$0xff] %vm222_vm1, %v5438_v5  ;;  %v5357_v17 = vmul.f32 %v5197_v19, %v3520_v41  ;;  %v2960_v14 = vsel %vm2640_vm3, %v2800_v62, %v2128_v61  ;;  %vm2243_vm5 = vcmp.ne.s32.totalorder %v1281_v32, 0  ;;  %vm2403_vm8 = vcmp.lt.s32.totalorder %v1281_v32, 0 }
 0x2d5   : > { %vm3120_vm14 = vcmp.ge.s32.totalorder %v2960_v14, 2  ;;  %vm3280_vm0 = vcmp.lt.s32.totalorder %v2960_v14, 34  ;;  %vm2563_vm4 = vmand %vm2403_vm8, %vm2243_vm5  ;;  %v2723_v58 = vadd.s32 40, %v1281_v32  ;;  %v2161_v60 = vsub.s32 %v9950_v6, %v2160_v57 }
 0x2d6   : > { %5517 = vst.msk [vmem:[%s6806_s30 + $0x2b0] sm:$0xff] %vm222_vm1, %v5357_v17  ;;  %vm3440_vm7 = vmand %vm3120_vm14, %vm3280_vm0  ;;  %v1269_v27 = vmul.u32 40, %v1268_v50  ;;  %v9996_v63 = vmul.u32.u64.low 3435973837, %v9982_v33  ;;  %v9997_v18 = vmul.u32.u64.high 3435973837, %v9982_v33, %v9996_v63  ;;  %v4713_v54 = vadd.f32 %v9714_v20, %v9562_v28 }
 0x2d7   : > { %v3600_v56 = vsel %vm3440_vm7, 1.0, %v10107_v10  ;;  %v2883_v22 = vsel %vm2563_vm4, %v2723_v58, %v1281_v32  ;;  %vm2323_vm9 = vcmp.ne.s32.totalorder %v2161_v60, 0  ;;  %vm2483_vm11 = vcmp.lt.s32.totalorder %v2161_v60, 0 }
 0x2d8   : > { %v5437_v24 = vmul.f32 %v5277_v26, %v3600_v56  ;;  %vm3043_vm2 = vcmp.ge.s32.totalorder %v2883_v22, 2  ;;  %vm3203_vm6 = vcmp.lt.s32.totalorder %v2883_v22, 34  ;;  %vm2643_vm10 = vmand %vm2483_vm11, %vm2323_vm9  ;;  %v2803_v39 = vadd.s32 40, %v2161_v60 }
 0x2d9   : > { %vm3363_vm12 = vmand %vm3043_vm2, %vm3203_vm6  ;;  %v1270_v52 = vsub.s32 %v9973_v34, %v1269_v27  ;;  %v5280_v29 = vmax.f32 %v5118_v3, 0.0  ;;  %v2148_v16 = vshrl.u32 %v9997_v18, 5  ;;  %v5199_v6 = vmax.f32 %v4713_v54, 0.0 }
 0x2da   : > { %5597 = vst.msk [vmem:[%s6806_s30 + $0x530] sm:$0xff] %vm222_vm1, %v5437_v24  ;;  %v3523_v43 = vsel %vm3363_vm12, 1.0, %v10107_v10  ;;  %v2963_v4 = vsel %vm2643_vm10, %v2803_v39, %v2161_v60  ;;  %v5113_v11 = vadd.f32 %v9714_v20, %v9581_v55 }
 0x2db   : > { %v5360_v59 = vmul.f32 %v5200_v30, %v3523_v43  ;;  %vm3123_vm13 = vcmp.ge.s32.totalorder %v2963_v4, 2  ;;  %vm3283_vm15 = vcmp.lt.s32.totalorder %v2963_v4, 34  ;;  %vm2242_vm3 = vcmp.ne.s32.totalorder %v1270_v52, 0 }
 0x2dc   : > { %vm3443_vm5 = vmand %vm3123_vm13, %vm3283_vm15  ;;  %vm2402_vm8 = vcmp.lt.s32.totalorder %v1270_v52, 0  ;;  %v2722_v47 = vadd.s32 40, %v1270_v52  ;;  %v2149_v51 = vmul.u32 40, %v2148_v16  ;;  %v5279_v42 = vmax.f32 %v5113_v11, 0.0 }
 0x2dd   : > { %5520 = vst.msk [vmem:[%s6806_s30 + $0x2c8] sm:$0xff] %vm222_vm1, %v5360_v59  ;;  %v3603_v28 = vsel %vm3443_vm5, 1.0, %v10107_v10  ;;  %vm2562_vm14 = vmand %vm2402_vm8, %vm2242_vm3 }
 0x2de   : > { %v5440_v0 = vmul.f32 %v5280_v29, %v3603_v28  ;;  %v2882_v49 = vsel %vm2562_vm14, %v2722_v47, %v1270_v52  ;;  %v2150_v36 = vsub.s32 %v9982_v33, %v2149_v51 }
 0x2df   : > { %vm3042_vm0 = vcmp.ge.s32.totalorder %v2882_v49, 2  ;;  %vm3202_vm4 = vcmp.lt.s32.totalorder %v2882_v49, 34 }
 0x2e0   : > { %5600 = vst.msk [vmem:[%s6806_s30 + $0x548] sm:$0xff] %vm222_vm1, %v5440_v0  ;;  %vm3362_vm7 = vmand %vm3042_vm0, %vm3202_vm4  ;;  %vm2322_vm9 = vcmp.ne.s32.totalorder %v2150_v36, 0  ;;  %vm2482_vm11 = vcmp.lt.s32.totalorder %v2150_v36, 0  ;;  %v2802_v44 = vadd.s32 40, %v2150_v36 }
 0x2e1   : > { %v3522_v19 = vsel %vm3362_vm7, 1.0, %v10107_v10  ;;  %vm2642_vm2 = vmand %vm2482_vm11, %vm2322_vm9 }
 0x2e2   : > { %v5359_v35 = vmul.f32 %v5199_v6, %v3522_v19  ;;  %v2962_v8 = vsel %vm2642_vm2, %v2802_v44, %v2150_v36 }
 0x2e3   : > { %vm3122_vm6 = vcmp.ge.s32.totalorder %v2962_v8, 2  ;;  %vm3282_vm10 = vcmp.lt.s32.totalorder %v2962_v8, 34 }
 0x2e4   : > { %5519 = vst.msk [vmem:[%s6806_s30 + $0x2c0] sm:$0xff] %vm222_vm1, %v5359_v35  ;;  %vm3442_vm12 = vmand %vm3122_vm6, %vm3282_vm10 }
 0x2e5   : > { %v3602_v55 = vsel %vm3442_vm12, 1.0, %v10107_v10 }
 0x2e6   : > { %v5439_v20 = vmul.f32 %v5279_v42, %v3602_v55 }
 0x2e8   : > { %5599 = vst.msk [vmem:[%s6806_s30 + $0x540] sm:$0xff] %vm222_vm1, %v5439_v20 }
 0x2e9 PF: > { %s13_s14 = sadd.s32 1, %s6674_s14   ;;  %s10124_s12 = smov %s6670_s13 }
 0x2ea   : > { %p10_p5 = scmp.ge.s32.totalorder %s13_s14, 4   ;;  %s10125_s13 = smov %s10127_s15 }
 0x2ec   :  { %12 = sbr.rel (!%p10_p5) target bundleno = 2 (0x2), region = 68 }

</bundles_post_ra>
